<compile_context>
chip_gen: v5e
topology: v5e:2x2
jax: 0.10.0
libtpu: 0.0.40
codegen_flags: <defaults>
</compile_context>

<pallas_src>
import math

import jax
import jax.numpy as jnp
from jax.experimental import pallas as pl
from jax.experimental.pallas import tpu as pltpu


_VMEM_LIMIT = 32 * 1024 * 1024  # raise v5e's 16 MiB scoped default; safe on v6e/v7x


def _round_up(x, m):
    return ((x + m - 1) // m) * m


# ----------------------------------------------------------------------------
# Kernel 1: hoisted input projection on flattened (T*B) rows, both directions
# ----------------------------------------------------------------------------
def input_proj_kernel(emb_ref, wih_ref, bias_ref, out_ref):
    # emb_ref : (TM, Hp)    bf16   TM = TPB * Bp rows (~256 MXU rows)
    # wih_ref : (Hp, 6*Hp)  bf16   [Wih_fwd(r|z|n) | Wih_bwd(r|z|n)]
    # bias_ref: (1, 6*Hp)   f32    b_ih + b_hh(r,z folded), per direction
    # out_ref : (TM, 6*Hp)  bf16
    proj = jnp.dot(emb_ref[...], wih_ref[...], preferred_element_type=jnp.float32)
    out_ref[...] = (proj + bias_ref[...]).astype(out_ref.dtype)


# ----------------------------------------------------------------------------
# Kernel 2: time-blocked bidirectional GRU recurrence + final FC
# ----------------------------------------------------------------------------
def gru_recurrence_kernel(gx_f_ref, gx_b_ref,
                          whh_f_ref, whh_b_ref,
                          bhn_f_ref, bhn_b_ref,
                          lens_ref,
                          wfc_b_ref, wfc_f_ref, bfc_ref,
                          out_ref,
                          h_fwd_ref, h_bwd_ref):
    tb = pl.program_id(0)
    NT = pl.num_programs(0)
    K_T = gx_f_ref.shape[0]
    Hp = h_fwd_ref.shape[1]
    Tp = NT * K_T

    @pl.when(tb == 0)
    def _init():
        h_fwd_ref[...] = jnp.zeros_like(h_fwd_ref)
        h_bwd_ref[...] = jnp.zeros_like(h_bwd_ref)

    lens = lens_ref[...]                      # (Bp, 1) int32
    whh_f = whh_f_ref[...]
    whh_b = whh_b_ref[...]
    bhn_f = bhn_f_ref[...]
    bhn_b = bhn_b_ref[...]

    def gru_step(h, gx, whh, bhn, time_idx):
        # h: (Bp, Hp) f32 carry; gx: (Bp, 3Hp) bf16 precomputed x-projection
        gh = jnp.dot(h.astype(jnp.bfloat16), whh,
                     preferred_element_type=jnp.float32)      # (Bp, 3Hp) f32
        gx = gx.astype(jnp.float32)
        r = jax.nn.sigmoid(gx[:, 0:Hp] + gh[:, 0:Hp])
        z = jax.nn.sigmoid(gx[:, Hp:2 * Hp] + gh[:, Hp:2 * Hp])
        n = jnp.tanh(gx[:, 2 * Hp:3 * Hp] + r * (gh[:, 2 * Hp:3 * Hp] + bhn))
        h_new = (1.0 - z) * n + z * h
        # pack_padded_sequence mask: freeze h outside [0, len)
        return jnp.where(time_idx < lens, h_new, h)

    h_f = h_fwd_ref[...]
    h_b = h_bwd_ref[...]
    t0 = tb * K_T
    # Statically unrolled K_T-step window: amortizes per-grid-step overhead and
    # interleaves fwd MXU pushes with bwd sigmoid/tanh (independent carries).
    # Backward reads its gx block time-reversed (block delivered by index_map).
    for j in range(K_T):
        h_f = gru_step(h_f, gx_f_ref[j], whh_f, bhn_f, t0 + j)
        h_b = gru_step(h_b, gx_b_ref[K_T - 1 - j], whh_b, bhn_b,
                       Tp - 1 - (t0 + j))
    h_fwd_ref[...] = h_f
    h_bwd_ref[...] = h_b

    @pl.when(tb == NT - 1)
    def _finalize():
        # fc(torch.cat([hidden[-1] (backward), hidden[-2] (forward)], dim=1))
        # implemented without a concat by splitting the FC weight.
        hb = h_b.astype(jnp.bfloat16)
        hf = h_f.astype(jnp.bfloat16)
        out = (jnp.dot(hb, wfc_b_ref[...], preferred_element_type=jnp.float32)
               + jnp.dot(hf, wfc_f_ref[...], preferred_element_type=jnp.float32)
               + bfc_ref[...])
        out_ref[...] = out.astype(out_ref.dtype)


# ----------------------------------------------------------------------------
# Wrapper: weight prep (fuse gates, fold biases, pad, bf16) + two pallas_calls
# ----------------------------------------------------------------------------
def _prep_gru_direction(w_ih, w_hh, b_ih, b_hh, H, Hp):
    """PyTorch GRU params (gate order r,z,n) -> fused, padded x@W layouts."""
    def pad_w(w):                              # (3H, H_in) -> (Hp, 3*Hp)
        w = w.T.reshape(H, 3, H)               # (H_in, gate, H_out)
        w = jnp.pad(w, ((0, Hp - H), (0, 0), (0, Hp - H)))
        return w.reshape(Hp, 3 * Hp)

    def pad_b(b):                              # (3H,) -> (3, Hp)
        return jnp.pad(b.reshape(3, H), ((0, 0), (0, Hp - H)))

    w_ih3 = pad_w(w_ih)
    w_hh3 = pad_w(w_hh)
    b_ih3 = pad_b(b_ih)
    b_hh3 = pad_b(b_hh)
    # Fold b_hh for the r/z gates into the precomputed projection bias;
    # only b_hn must remain inside r * (h @ W_hn + b_hn).
    b_x3 = (b_ih3 + b_hh3.at[2].set(0.0)).reshape(1, 3 * Hp)
    b_hn = b_hh3[2].reshape(1, Hp)
    return w_ih3, w_hh3, b_x3, b_hn


def rnn_classifier_forward(tokens, lengths, params):
    """tokens: (B, T) int32, lengths: (B,) int32 (sorted descending)."""
    emb_table = params["embedding"]            # (V, H)
    w_fc, b_fc = params["w_fc"], params["b_fc"]  # (O, 2H), (O,)
    B, T = tokens.shape
    H = emb_table.shape[1]
    O = b_fc.shape[0]

    K_T = 8                                    # timesteps per recurrence grid step
    Hp = _round_up(H, 128)
    Bp = _round_up(B, 8)
    Op = _round_up(O, 128)

    Tp = _round_up(T, K_T)                     # recurrence time extent
    NT = Tp // K_T
    # timesteps per projection tile -> ~256 MXU rows; power of two for clean tiling
    tpb = max(1, 256 // Bp)
    TPB = min(1 << (tpb.bit_length() - 1), Tp)
    Tproj = _round_up(Tp, TPB)                 # projection time extent (>= Tp)
    TM = TPB * Bp                              # rows per projection MXU tile

    # --- fused / padded GRU weights ---
    wih3_f, whh3_f, bx3_f, bhn_f = _prep_gru_direction(
        params["w_ih_f"], params["w_hh_f"], params["b_ih_f"], params["b_hh_f"], H, Hp)
    wih3_b, whh3_b, bx3_b, bhn_b = _prep_gru_direction(
        params["w_ih_b"], params["w_hh_b"], params["b_ih_b"], params["b_hh_b"], H, Hp)

    wih6 = jnp.concatenate([wih3_f, wih3_b], axis=1).astype(jnp.bfloat16)  # (Hp, 6Hp)
    bx6 = jnp.concatenate([bx3_f, bx3_b], axis=1)                          # (1, 6Hp) f32
    whh3_f = whh3_f.astype(jnp.bfloat16)
    whh3_b = whh3_b.astype(jnp.bfloat16)

    # --- FC split: cat order is [h_bwd, h_fwd] (hidden[-1], hidden[-2]) ---
    wfc_b = jnp.pad(w_fc[:, :H].T, ((0, Hp - H), (0, Op - O))).astype(jnp.bfloat16)
    wfc_f = jnp.pad(w_fc[:, H:].T, ((0, Hp - H), (0, Op - O))).astype(jnp.bfloat16)
    bfc = jnp.pad(b_fc, (0, Op - O)).reshape(1, Op)

    # --- embedding lookup: seq-major gather directly (no activation transpose) ---
    emb = jnp.take(emb_table.astype(jnp.bfloat16), tokens.T, axis=0)   # (T, B, H)
    emb = jnp.pad(emb, ((0, Tproj - T), (0, Bp - B), (0, Hp - H)))     # zeros -> masked
    emb2d = emb.reshape(Tproj * Bp, Hp)        # free: contiguous row-major

    # Padded batch rows get length 0 -> their hidden state stays zero.
    lens = jnp.pad(lengths.astype(jnp.int32), (0, Bp - B)).reshape(Bp, 1)

    # ---------------- kernel 1: X_proj = emb @ [Wih_f | Wih_b] + biases ------
    xproj2d = pl.pallas_call(
        input_proj_kernel,
        out_shape=jax.ShapeDtypeStruct((Tproj * Bp, 6 * Hp), jnp.bfloat16),
        grid=(Tproj // TPB,),
        in_specs=[
            pl.BlockSpec((TM, Hp), lambda i: (i, 0)),
            pl.BlockSpec((Hp, 6 * Hp), lambda i: (0, 0)),
            pl.BlockSpec((1, 6 * Hp), lambda i: (0, 0)),
        ],
        out_specs=pl.BlockSpec((TM, 6 * Hp), lambda i: (i, 0)),
        compiler_params=pltpu.CompilerParams(
            dimension_semantics=("parallel",),
            vmem_limit_bytes=_VMEM_LIMIT),
    )(emb2d, wih6, bx6)
    xproj = xproj2d.reshape(Tproj, Bp, 6 * Hp)  # free: contiguous row-major

    # ---------------- kernel 2: sequential bidirectional recurrence + FC -----
    # Same xproj array is passed twice with different index_maps: forward reads
    # time block tb / columns [0:3Hp], backward reads block NT-1-tb / [3Hp:6Hp].
    out_padded = pl.pallas_call(
        gru_recurrence_kernel,
        out_shape=jax.ShapeDtypeStruct((Bp, Op), jnp.float32),
        grid=(NT,),
        in_specs=[
            pl.BlockSpec((K_T, Bp, 3 * Hp), lambda t: (t, 0, 0)),            # gx fwd
            pl.BlockSpec((K_T, Bp, 3 * Hp), lambda t: (NT - 1 - t, 0, 1)),   # gx bwd
            pl.BlockSpec((Hp, 3 * Hp), lambda t: (0, 0)),                    # Whh fwd
            pl.BlockSpec((Hp, 3 * Hp), lambda t: (0, 0)),                    # Whh bwd
            pl.BlockSpec((1, Hp), lambda t: (0, 0)),                         # b_hn fwd
            pl.BlockSpec((1, Hp), lambda t: (0, 0)),                         # b_hn bwd
            pl.BlockSpec((Bp, 1), lambda t: (0, 0)),                         # lengths
            pl.BlockSpec((Hp, Op), lambda t: (0, 0)),                        # Wfc bwd
            pl.BlockSpec((Hp, Op), lambda t: (0, 0)),                        # Wfc fwd
            pl.BlockSpec((1, Op), lambda t: (0, 0)),                         # b_fc
        ],
        out_specs=pl.BlockSpec((Bp, Op), lambda t: (0, 0)),
        scratch_shapes=[
            pltpu.VMEM((Bp, Hp), jnp.float32),   # h_fwd carry
            pltpu.VMEM((Bp, Hp), jnp.float32),   # h_bwd carry
        ],
        compiler_params=pltpu.CompilerParams(
            dimension_semantics=("arbitrary",),
            vmem_limit_bytes=_VMEM_LIMIT),
    )(xproj, xproj, whh3_f, whh3_b, bhn_f, bhn_b, lens, wfc_b, wfc_f, bfc)

    return out_padded[:B, :O]


def init_params(key, vocab, hidden, output):
    ks = jax.random.split(key, 11)
    k = 1.0 / math.sqrt(hidden)

    def u(kk, shape):
        return jax.random.uniform(kk, shape, jnp.float32, -k, k)

    return dict(
        embedding=jax.random.normal(ks[0], (vocab, hidden), jnp.float32),
        # PyTorch nn.GRU parameter layout, gate order (r, z, n)
        w_ih_f=u(ks[1], (3 * hidden, hidden)),
        w_hh_f=u(ks[2], (3 * hidden, hidden)),
        b_ih_f=u(ks[3], (3 * hidden,)),
        b_hh_f=u(ks[4], (3 * hidden,)),
        w_ih_b=u(ks[5], (3 * hidden, hidden)),
        w_hh_b=u(ks[6], (3 * hidden, hidden)),
        b_ih_b=u(ks[7], (3 * hidden,)),
        b_hh_b=u(ks[8], (3 * hidden,)),
        # nn.Linear(2*hidden, output) layout
        w_fc=u(ks[9], (output, 2 * hidden)),
        b_fc=u(ks[10], (output,)),
    )


if __name__ == "__main__":
    vocab_size, hidden_size, output_size = 64, 32, 18
    B, T = 2, 8

    key = jax.random.PRNGKey(0)
    kp, kt = jax.random.split(key)
    params = init_params(kp, vocab_size, hidden_size, output_size)

    tokens = jax.random.randint(kt, (B, T), 1, vocab_size, dtype=jnp.int32)
    # pack_padded_sequence requires lengths sorted in decreasing order.
    lengths = jnp.array([8, 5], dtype=jnp.int32)
    pad_mask = jnp.arange(T)[None, :] < lengths[:, None]
    tokens = jnp.where(pad_mask, tokens, 0)          # zero-pad past each length

    forward = jax.jit(rnn_classifier_forward)
    out = forward(tokens, lengths, params)
    out = jax.block_until_ready(out)
    assert out.shape == (B, output_size)
    assert bool(jnp.all(jnp.isfinite(out)))
    print("KERNEL_OK")
</pallas_src>

<mosaic_0001>
module attributes {stable_mosaic.version = 11 : i64} {
  func.func @input_proj_kernel(%arg0: i32, %arg1: memref<64x128xbf16, #tpu.memory_space<vmem>>, %arg2: memref<128x768xbf16, #tpu.memory_space<vmem>>, %arg3: memref<1x768xf32, #tpu.memory_space<vmem>>, %arg4: memref<64x768xbf16, #tpu.memory_space<vmem>>) attributes {dimension_semantics = [#tpu.dimension_semantics<parallel>], iteration_bounds = array<i64: 1>, scalar_prefetch = 0 : i64, scratch_operands = 0 : i64, tpu.core_type = #tpu.core_type<tc>, window_params = [{transform_indices = @transform_0, window_bounds = array<i64: 64, 128>}, {pipeline_mode = #tpu.pipeline_mode<synchronous>, transform_indices = @transform_1, window_bounds = array<i64: 128, 768>}, {pipeline_mode = #tpu.pipeline_mode<synchronous>, transform_indices = @transform_2, window_bounds = array<i64: 1, 768>}, {transform_indices = @transform_3, window_bounds = array<i64: 64, 768>}]} {
    %c0 = arith.constant 0 : index
    %c0_0 = arith.constant 0 : index
    %0 = vector.load %arg1[%c0, %c0_0] : memref<64x128xbf16, #tpu.memory_space<vmem>>, vector<64x128xbf16>
    %c0_1 = arith.constant 0 : index
    %c0_2 = arith.constant 0 : index
    %1 = vector.load %arg2[%c0_1, %c0_2] : memref<128x768xbf16, #tpu.memory_space<vmem>>, vector<128x768xbf16>
    %cst = arith.constant dense<0.000000e+00> : vector<64x768xf32>
    %2 = tpu.matmul %0, %1, %cst {dimension_numbers = #tpu.dot_dimension_numbers<[1], [0], [0], [1], [0, 0, 1, 1], [], []>} : vector<64x128xbf16>, vector<128x768xbf16>, vector<64x768xf32> -> vector<64x768xf32>
    %c0_3 = arith.constant 0 : index
    %c0_4 = arith.constant 0 : index
    %3 = vector.load %arg3[%c0_3, %c0_4] : memref<1x768xf32, #tpu.memory_space<vmem>>, vector<1x768xf32>
    %4 = vector.broadcast %3 : vector<1x768xf32> to vector<64x768xf32>
    %5 = arith.addf %2, %4 : vector<64x768xf32>
    %6 = arith.truncf %5 : vector<64x768xf32> to vector<64x768xbf16>
    %c0_5 = arith.constant 0 : index
    %c0_6 = arith.constant 0 : index
    %7 = vector.load %arg4[%c0_5, %c0_6] : memref<64x768xbf16, #tpu.memory_space<vmem>>, vector<64x768xbf16>
    tpu.vector_store %arg4[%c0_5, %c0_6], %6 {strides = array<i32>} : memref<64x768xbf16, #tpu.memory_space<vmem>>, vector<64x768xbf16>,
    return
  }
  func.func @transform_0(%arg0: i32) -> (i32, i32) {
    %c0_i32 = arith.constant 0 : i32
    %c0_i32_0 = arith.constant 0 : i32
    return %arg0, %c0_i32 : i32, i32
  }
  func.func @transform_1(%arg0: i32) -> (i32, i32) {
    %c0_i32 = arith.constant 0 : i32
    %c0_i32_0 = arith.constant 0 : i32
    %c0_i32_1 = arith.constant 0 : i32
    return %c0_i32, %c0_i32_0 : i32, i32
  }
  func.func @transform_2(%arg0: i32) -> (i32, i32) {
    %c0_i32 = arith.constant 0 : i32
    %c0_i32_0 = arith.constant 0 : i32
    %c0_i32_1 = arith.constant 0 : i32
    return %c0_i32, %c0_i32_0 : i32, i32
  }
  func.func @transform_3(%arg0: i32) -> (i32, i32) {
    %c0_i32 = arith.constant 0 : i32
    %c0_i32_0 = arith.constant 0 : i32
    return %arg0, %c0_i32 : i32, i32
  }
}

module attributes {stable_mosaic.version = 11 : i64} {
  func.func @gru_recurrence_kernel(%arg0: i32, %arg1: memref<8x8x384xbf16, #tpu.memory_space<vmem>>, %arg2: memref<8x8x384xbf16, #tpu.memory_space<vmem>>, %arg3: memref<128x384xbf16, #tpu.memory_space<vmem>>, %arg4: memref<128x384xbf16, #tpu.memory_space<vmem>>, %arg5: memref<1x128xf32, #tpu.memory_space<vmem>>, %arg6: memref<1x128xf32, #tpu.memory_space<vmem>>, %arg7: memref<8x1xi32, #tpu.memory_space<vmem>>, %arg8: memref<128x128xbf16, #tpu.memory_space<vmem>>, %arg9: memref<128x128xbf16, #tpu.memory_space<vmem>>, %arg10: memref<1x128xf32, #tpu.memory_space<vmem>>, %arg11: memref<8x128xf32, #tpu.memory_space<vmem>>, %arg12: memref<8x128xf32, #tpu.memory_space<vmem>>, %arg13: memref<8x128xf32, #tpu.memory_space<vmem>>) attributes {dimension_semantics = [#tpu.dimension_semantics<arbitrary>], iteration_bounds = array<i64: 1>, scalar_prefetch = 0 : i64, scratch_operands = 2 : i64, tpu.core_type = #tpu.core_type<tc>, window_params = [{transform_indices = @transform_0, window_bounds = array<i64: 8, 8, 384>}, {transform_indices = @transform_1, window_bounds = array<i64: 8, 8, 384>}, {pipeline_mode = #tpu.pipeline_mode<synchronous>, transform_indices = @transform_2, window_bounds = array<i64: 128, 384>}, {pipeline_mode = #tpu.pipeline_mode<synchronous>, transform_indices = @transform_3, window_bounds = array<i64: 128, 384>}, {pipeline_mode = #tpu.pipeline_mode<synchronous>, transform_indices = @transform_4, window_bounds = array<i64: 1, 128>}, {pipeline_mode = #tpu.pipeline_mode<synchronous>, transform_indices = @transform_5, window_bounds = array<i64: 1, 128>}, {pipeline_mode = #tpu.pipeline_mode<synchronous>, transform_indices = @transform_6, window_bounds = array<i64: 8, 1>}, {pipeline_mode = #tpu.pipeline_mode<synchronous>, transform_indices = @transform_7, window_bounds = array<i64: 128, 128>}, {pipeline_mode = #tpu.pipeline_mode<synchronous>, transform_indices = @transform_8, window_bounds = array<i64: 128, 128>}, {pipeline_mode = #tpu.pipeline_mode<synchronous>, transform_indices = @transform_9, window_bounds = array<i64: 1, 128>}, {pipeline_mode = #tpu.pipeline_mode<synchronous>, transform_indices = @transform_10, window_bounds = array<i64: 8, 128>}]} {
    %c0_i32 = arith.constant 0 : i32
    %0 = arith.cmpi eq, %arg0, %c0_i32 : i32
    %1 = arith.extui %0 : i1 to i32
    %c0_i32_0 = arith.constant 0 : i32
    %2 = arith.cmpi ne, %1, %c0_i32_0 : i32
    scf.if %2 {
      %cst_141 = arith.constant 0.000000e+00 : f32
      %648 = vector.broadcast %cst_141 : f32 to vector<8x128xf32>
      %c0_142 = arith.constant 0 : index
      %c0_143 = arith.constant 0 : index
      %649 = vector.load %arg12[%c0_142, %c0_143] : memref<8x128xf32, #tpu.memory_space<vmem>>, vector<8x128xf32>
      tpu.vector_store %arg12[%c0_142, %c0_143], %648 {strides = array<i32>} : memref<8x128xf32, #tpu.memory_space<vmem>>, vector<8x128xf32>,
      %cst_144 = arith.constant 0.000000e+00 : f32
      %650 = vector.broadcast %cst_144 : f32 to vector<8x128xf32>
      %c0_145 = arith.constant 0 : index
      %c0_146 = arith.constant 0 : index
      %651 = vector.load %arg13[%c0_145, %c0_146] : memref<8x128xf32, #tpu.memory_space<vmem>>, vector<8x128xf32>
      tpu.vector_store %arg13[%c0_145, %c0_146], %650 {strides = array<i32>} : memref<8x128xf32, #tpu.memory_space<vmem>>, vector<8x128xf32>,
    } else {
    }
    %c0 = arith.constant 0 : index
    %c0_1 = arith.constant 0 : index
    %3 = vector.load %arg7[%c0, %c0_1] : memref<8x1xi32, #tpu.memory_space<vmem>>, vector<8x1xi32>
    %c0_2 = arith.constant 0 : index
    %c0_3 = arith.constant 0 : index
    %4 = vector.load %arg3[%c0_2, %c0_3] : memref<128x384xbf16, #tpu.memory_space<vmem>>, vector<128x384xbf16>
    %c0_4 = arith.constant 0 : index
    %c0_5 = arith.constant 0 : index
    %5 = vector.load %arg4[%c0_4, %c0_5] : memref<128x384xbf16, #tpu.memory_space<vmem>>, vector<128x384xbf16>
    %c0_6 = arith.constant 0 : index
    %c0_7 = arith.constant 0 : index
    %6 = vector.load %arg5[%c0_6, %c0_7] : memref<1x128xf32, #tpu.memory_space<vmem>>, vector<1x128xf32>
    %c0_8 = arith.constant 0 : index
    %c0_9 = arith.constant 0 : index
    %7 = vector.load %arg6[%c0_8, %c0_9] : memref<1x128xf32, #tpu.memory_space<vmem>>, vector<1x128xf32>
    %c0_10 = arith.constant 0 : index
    %c0_11 = arith.constant 0 : index
    %8 = vector.load %arg12[%c0_10, %c0_11] : memref<8x128xf32, #tpu.memory_space<vmem>>, vector<8x128xf32>
    %c0_12 = arith.constant 0 : index
    %c0_13 = arith.constant 0 : index
    %9 = vector.load %arg13[%c0_12, %c0_13] : memref<8x128xf32, #tpu.memory_space<vmem>>, vector<8x128xf32>
    %c8_i32 = arith.constant 8 : i32
    %10 = arith.muli %arg0, %c8_i32 : i32
    %c0_14 = arith.constant 0 : index
    %c0_15 = arith.constant 0 : index
    %c0_16 = arith.constant 0 : index
    %11 = vector.load %arg1[%c0_14, %c0_15, %c0_16] : memref<8x8x384xbf16, #tpu.memory_space<vmem>>, vector<1x8x384xbf16>
    %12 = vector.shape_cast %11 : vector<1x8x384xbf16> to vector<8x384xbf16>
    %c0_i32_17 = arith.constant 0 : i32
    %13 = arith.addi %10, %c0_i32_17 : i32
    %14 = arith.truncf %8 : vector<8x128xf32> to vector<8x128xbf16>
    %cst = arith.constant dense<0.000000e+00> : vector<8x384xf32>
    %15 = tpu.matmul %14, %4, %cst {dimension_numbers = #tpu.dot_dimension_numbers<[1], [0], [0], [1], [0, 0, 1, 1], [], []>} : vector<8x128xbf16>, vector<128x384xbf16>, vector<8x384xf32> -> vector<8x384xf32>
    %16 = arith.extf %12 : vector<8x384xbf16> to vector<8x384xf32>
    %17 = vector.extract_strided_slice %16 {offsets = [0, 0], sizes = [8, 128], strides = [1, 1]} : vector<8x384xf32> to vector<8x128xf32>
    %18 = vector.extract_strided_slice %15 {offsets = [0, 0], sizes = [8, 128], strides = [1, 1]} : vector<8x384xf32> to vector<8x128xf32>
    %19 = arith.addf %17, %18 : vector<8x128xf32>
    %20 = arith.negf %19 : vector<8x128xf32>
    %21 = math.exp %20 : vector<8x128xf32>
    %cst_18 = arith.constant 1.000000e+00 : f32
    %22 = vector.broadcast %cst_18 : f32 to vector<8x128xf32>
    %23 = arith.addf %22, %21 : vector<8x128xf32>
    %24 = arith.divf %22, %23 : vector<8x128xf32>
    %25 = vector.extract_strided_slice %16 {offsets = [0, 128], sizes = [8, 128], strides = [1, 1]} : vector<8x384xf32> to vector<8x128xf32>
    %26 = vector.extract_strided_slice %15 {offsets = [0, 128], sizes = [8, 128], strides = [1, 1]} : vector<8x384xf32> to vector<8x128xf32>
    %27 = arith.addf %25, %26 : vector<8x128xf32>
    %28 = arith.negf %27 : vector<8x128xf32>
    %29 = math.exp %28 : vector<8x128xf32>
    %cst_19 = arith.constant 1.000000e+00 : f32
    %30 = vector.broadcast %cst_19 : f32 to vector<8x128xf32>
    %31 = arith.addf %30, %29 : vector<8x128xf32>
    %32 = arith.divf %30, %31 : vector<8x128xf32>
    %33 = vector.extract_strided_slice %16 {offsets = [0, 256], sizes = [8, 128], strides = [1, 1]} : vector<8x384xf32> to vector<8x128xf32>
    %34 = vector.extract_strided_slice %15 {offsets = [0, 256], sizes = [8, 128], strides = [1, 1]} : vector<8x384xf32> to vector<8x128xf32>
    %35 = vector.broadcast %6 : vector<1x128xf32> to vector<8x128xf32>
    %36 = arith.addf %34, %35 : vector<8x128xf32>
    %37 = arith.mulf %24, %36 : vector<8x128xf32>
    %38 = arith.addf %33, %37 : vector<8x128xf32>
    %39 = math.tanh %38 : vector<8x128xf32>
    %cst_20 = arith.constant 1.000000e+00 : f32
    %40 = vector.broadcast %cst_20 : f32 to vector<8x128xf32>
    %41 = arith.subf %40, %32 : vector<8x128xf32>
    %42 = arith.mulf %41, %39 : vector<8x128xf32>
    %43 = arith.mulf %32, %8 : vector<8x128xf32>
    %44 = arith.addf %42, %43 : vector<8x128xf32>
    %45 = vector.broadcast %13 : i32 to vector<8x1xi32>
    %46 = arith.cmpi slt, %45, %3 : vector<8x1xi32>
    %47 = vector.shape_cast %46 : vector<8x1xi1> to vector<8x1xi1>
    %48 = vector.broadcast %47 : vector<8x1xi1> to vector<8x128xi1>
    %49 = arith.select %48, %44, %8 : vector<8x128xi1>, vector<8x128xf32>
    %c7 = arith.constant 7 : index
    %c0_21 = arith.constant 0 : index
    %c0_22 = arith.constant 0 : index
    %50 = vector.load %arg2[%c7, %c0_21, %c0_22] : memref<8x8x384xbf16, #tpu.memory_space<vmem>>, vector<1x8x384xbf16>
    %51 = vector.shape_cast %50 : vector<1x8x384xbf16> to vector<8x384xbf16>
    %c0_i32_23 = arith.constant 0 : i32
    %52 = arith.addi %10, %c0_i32_23 : i32
    %c7_i32 = arith.constant 7 : i32
    %53 = arith.subi %c7_i32, %52 : i32
    %54 = arith.truncf %9 : vector<8x128xf32> to vector<8x128xbf16>
    %cst_24 = arith.constant dense<0.000000e+00> : vector<8x384xf32>
    %55 = tpu.matmul %54, %5, %cst_24 {dimension_numbers = #tpu.dot_dimension_numbers<[1], [0], [0], [1], [0, 0, 1, 1], [], []>} : vector<8x128xbf16>, vector<128x384xbf16>, vector<8x384xf32> -> vector<8x384xf32>
    %56 = arith.extf %51 : vector<8x384xbf16> to vector<8x384xf32>
    %57 = vector.extract_strided_slice %56 {offsets = [0, 0], sizes = [8, 128], strides = [1, 1]} : vector<8x384xf32> to vector<8x128xf32>
    %58 = vector.extract_strided_slice %55 {offsets = [0, 0], sizes = [8, 128], strides = [1, 1]} : vector<8x384xf32> to vector<8x128xf32>
    %59 = arith.addf %57, %58 : vector<8x128xf32>
    %60 = arith.negf %59 : vector<8x128xf32>
    %61 = math.exp %60 : vector<8x128xf32>
    %cst_25 = arith.constant 1.000000e+00 : f32
    %62 = vector.broadcast %cst_25 : f32 to vector<8x128xf32>
    %63 = arith.addf %62, %61 : vector<8x128xf32>
    %64 = arith.divf %62, %63 : vector<8x128xf32>
    %65 = vector.extract_strided_slice %56 {offsets = [0, 128], sizes = [8, 128], strides = [1, 1]} : vector<8x384xf32> to vector<8x128xf32>
    %66 = vector.extract_strided_slice %55 {offsets = [0, 128], sizes = [8, 128], strides = [1, 1]} : vector<8x384xf32> to vector<8x128xf32>
    %67 = arith.addf %65, %66 : vector<8x128xf32>
    %68 = arith.negf %67 : vector<8x128xf32>
    %69 = math.exp %68 : vector<8x128xf32>
    %cst_26 = arith.constant 1.000000e+00 : f32
    %70 = vector.broadcast %cst_26 : f32 to vector<8x128xf32>
    %71 = arith.addf %70, %69 : vector<8x128xf32>
    %72 = arith.divf %70, %71 : vector<8x128xf32>
    %73 = vector.extract_strided_slice %56 {offsets = [0, 256], sizes = [8, 128], strides = [1, 1]} : vector<8x384xf32> to vector<8x128xf32>
    %74 = vector.extract_strided_slice %55 {offsets = [0, 256], sizes = [8, 128], strides = [1, 1]} : vector<8x384xf32> to vector<8x128xf32>
    %75 = vector.broadcast %7 : vector<1x128xf32> to vector<8x128xf32>
    %76 = arith.addf %74, %75 : vector<8x128xf32>
    %77 = arith.mulf %64, %76 : vector<8x128xf32>
    %78 = arith.addf %73, %77 : vector<8x128xf32>
    %79 = math.tanh %78 : vector<8x128xf32>
    %cst_27 = arith.constant 1.000000e+00 : f32
    %80 = vector.broadcast %cst_27 : f32 to vector<8x128xf32>
    %81 = arith.subf %80, %72 : vector<8x128xf32>
    %82 = arith.mulf %81, %79 : vector<8x128xf32>
    %83 = arith.mulf %72, %9 : vector<8x128xf32>
    %84 = arith.addf %82, %83 : vector<8x128xf32>
    %85 = vector.broadcast %53 : i32 to vector<8x1xi32>
    %86 = arith.cmpi slt, %85, %3 : vector<8x1xi32>
    %87 = vector.shape_cast %86 : vector<8x1xi1> to vector<8x1xi1>
    %88 = vector.broadcast %87 : vector<8x1xi1> to vector<8x128xi1>
    %89 = arith.select %88, %84, %9 : vector<8x128xi1>, vector<8x128xf32>
    %c1 = arith.constant 1 : index
    %c0_28 = arith.constant 0 : index
    %c0_29 = arith.constant 0 : index
    %90 = vector.load %arg1[%c1, %c0_28, %c0_29] : memref<8x8x384xbf16, #tpu.memory_space<vmem>>, vector<1x8x384xbf16>
    %91 = vector.shape_cast %90 : vector<1x8x384xbf16> to vector<8x384xbf16>
    %c1_i32 = arith.constant 1 : i32
    %92 = arith.addi %10, %c1_i32 : i32
    %93 = arith.truncf %49 : vector<8x128xf32> to vector<8x128xbf16>
    %cst_30 = arith.constant dense<0.000000e+00> : vector<8x384xf32>
    %94 = tpu.matmul %93, %4, %cst_30 {dimension_numbers = #tpu.dot_dimension_numbers<[1], [0], [0], [1], [0, 0, 1, 1], [], []>} : vector<8x128xbf16>, vector<128x384xbf16>, vector<8x384xf32> -> vector<8x384xf32>
    %95 = arith.extf %91 : vector<8x384xbf16> to vector<8x384xf32>
    %96 = vector.extract_strided_slice %95 {offsets = [0, 0], sizes = [8, 128], strides = [1, 1]} : vector<8x384xf32> to vector<8x128xf32>
    %97 = vector.extract_strided_slice %94 {offsets = [0, 0], sizes = [8, 128], strides = [1, 1]} : vector<8x384xf32> to vector<8x128xf32>
    %98 = arith.addf %96, %97 : vector<8x128xf32>
    %99 = arith.negf %98 : vector<8x128xf32>
    %100 = math.exp %99 : vector<8x128xf32>
    %cst_31 = arith.constant 1.000000e+00 : f32
    %101 = vector.broadcast %cst_31 : f32 to vector<8x128xf32>
    %102 = arith.addf %101, %100 : vector<8x128xf32>
    %103 = arith.divf %101, %102 : vector<8x128xf32>
    %104 = vector.extract_strided_slice %95 {offsets = [0, 128], sizes = [8, 128], strides = [1, 1]} : vector<8x384xf32> to vector<8x128xf32>
    %105 = vector.extract_strided_slice %94 {offsets = [0, 128], sizes = [8, 128], strides = [1, 1]} : vector<8x384xf32> to vector<8x128xf32>
    %106 = arith.addf %104, %105 : vector<8x128xf32>
    %107 = arith.negf %106 : vector<8x128xf32>
    %108 = math.exp %107 : vector<8x128xf32>
    %cst_32 = arith.constant 1.000000e+00 : f32
    %109 = vector.broadcast %cst_32 : f32 to vector<8x128xf32>
    %110 = arith.addf %109, %108 : vector<8x128xf32>
    %111 = arith.divf %109, %110 : vector<8x128xf32>
    %112 = vector.extract_strided_slice %95 {offsets = [0, 256], sizes = [8, 128], strides = [1, 1]} : vector<8x384xf32> to vector<8x128xf32>
    %113 = vector.extract_strided_slice %94 {offsets = [0, 256], sizes = [8, 128], strides = [1, 1]} : vector<8x384xf32> to vector<8x128xf32>
    %114 = vector.broadcast %6 : vector<1x128xf32> to vector<8x128xf32>
    %115 = arith.addf %113, %114 : vector<8x128xf32>
    %116 = arith.mulf %103, %115 : vector<8x128xf32>
    %117 = arith.addf %112, %116 : vector<8x128xf32>
    %118 = math.tanh %117 : vector<8x128xf32>
    %cst_33 = arith.constant 1.000000e+00 : f32
    %119 = vector.broadcast %cst_33 : f32 to vector<8x128xf32>
    %120 = arith.subf %119, %111 : vector<8x128xf32>
    %121 = arith.mulf %120, %118 : vector<8x128xf32>
    %122 = arith.mulf %111, %49 : vector<8x128xf32>
    %123 = arith.addf %121, %122 : vector<8x128xf32>
    %124 = vector.broadcast %92 : i32 to vector<8x1xi32>
    %125 = arith.cmpi slt, %124, %3 : vector<8x1xi32>
    %126 = vector.shape_cast %125 : vector<8x1xi1> to vector<8x1xi1>
    %127 = vector.broadcast %126 : vector<8x1xi1> to vector<8x128xi1>
    %128 = arith.select %127, %123, %49 : vector<8x128xi1>, vector<8x128xf32>
    %c6 = arith.constant 6 : index
    %c0_34 = arith.constant 0 : index
    %c0_35 = arith.constant 0 : index
    %129 = vector.load %arg2[%c6, %c0_34, %c0_35] : memref<8x8x384xbf16, #tpu.memory_space<vmem>>, vector<1x8x384xbf16>
    %130 = vector.shape_cast %129 : vector<1x8x384xbf16> to vector<8x384xbf16>
    %c1_i32_36 = arith.constant 1 : i32
    %131 = arith.addi %10, %c1_i32_36 : i32
    %c7_i32_37 = arith.constant 7 : i32
    %132 = arith.subi %c7_i32_37, %131 : i32
    %133 = arith.truncf %89 : vector<8x128xf32> to vector<8x128xbf16>
    %cst_38 = arith.constant dense<0.000000e+00> : vector<8x384xf32>
    %134 = tpu.matmul %133, %5, %cst_38 {dimension_numbers = #tpu.dot_dimension_numbers<[1], [0], [0], [1], [0, 0, 1, 1], [], []>} : vector<8x128xbf16>, vector<128x384xbf16>, vector<8x384xf32> -> vector<8x384xf32>
    %135 = arith.extf %130 : vector<8x384xbf16> to vector<8x384xf32>
    %136 = vector.extract_strided_slice %135 {offsets = [0, 0], sizes = [8, 128], strides = [1, 1]} : vector<8x384xf32> to vector<8x128xf32>
    %137 = vector.extract_strided_slice %134 {offsets = [0, 0], sizes = [8, 128], strides = [1, 1]} : vector<8x384xf32> to vector<8x128xf32>
    %138 = arith.addf %136, %137 : vector<8x128xf32>
    %139 = arith.negf %138 : vector<8x128xf32>
    %140 = math.exp %139 : vector<8x128xf32>
    %cst_39 = arith.constant 1.000000e+00 : f32
    %141 = vector.broadcast %cst_39 : f32 to vector<8x128xf32>
    %142 = arith.addf %141, %140 : vector<8x128xf32>
    %143 = arith.divf %141, %142 : vector<8x128xf32>
    %144 = vector.extract_strided_slice %135 {offsets = [0, 128], sizes = [8, 128], strides = [1, 1]} : vector<8x384xf32> to vector<8x128xf32>
    %145 = vector.extract_strided_slice %134 {offsets = [0, 128], sizes = [8, 128], strides = [1, 1]} : vector<8x384xf32> to vector<8x128xf32>
    %146 = arith.addf %144, %145 : vector<8x128xf32>
    %147 = arith.negf %146 : vector<8x128xf32>
    %148 = math.exp %147 : vector<8x128xf32>
    %cst_40 = arith.constant 1.000000e+00 : f32
    %149 = vector.broadcast %cst_40 : f32 to vector<8x128xf32>
    %150 = arith.addf %149, %148 : vector<8x128xf32>
    %151 = arith.divf %149, %150 : vector<8x128xf32>
    %152 = vector.extract_strided_slice %135 {offsets = [0, 256], sizes = [8, 128], strides = [1, 1]} : vector<8x384xf32> to vector<8x128xf32>
    %153 = vector.extract_strided_slice %134 {offsets = [0, 256], sizes = [8, 128], strides = [1, 1]} : vector<8x384xf32> to vector<8x128xf32>
    %154 = vector.broadcast %7 : vector<1x128xf32> to vector<8x128xf32>
    %155 = arith.addf %153, %154 : vector<8x128xf32>
    %156 = arith.mulf %143, %155 : vector<8x128xf32>
    %157 = arith.addf %152, %156 : vector<8x128xf32>
    %158 = math.tanh %157 : vector<8x128xf32>
    %cst_41 = arith.constant 1.000000e+00 : f32
    %159 = vector.broadcast %cst_41 : f32 to vector<8x128xf32>
    %160 = arith.subf %159, %151 : vector<8x128xf32>
    %161 = arith.mulf %160, %158 : vector<8x128xf32>
    %162 = arith.mulf %151, %89 : vector<8x128xf32>
    %163 = arith.addf %161, %162 : vector<8x128xf32>
    %164 = vector.broadcast %132 : i32 to vector<8x1xi32>
    %165 = arith.cmpi slt, %164, %3 : vector<8x1xi32>
    %166 = vector.shape_cast %165 : vector<8x1xi1> to vector<8x1xi1>
    %167 = vector.broadcast %166 : vector<8x1xi1> to vector<8x128xi1>
    %168 = arith.select %167, %163, %89 : vector<8x128xi1>, vector<8x128xf32>
    %c2 = arith.constant 2 : index
    %c0_42 = arith.constant 0 : index
    %c0_43 = arith.constant 0 : index
    %169 = vector.load %arg1[%c2, %c0_42, %c0_43] : memref<8x8x384xbf16, #tpu.memory_space<vmem>>, vector<1x8x384xbf16>
    %170 = vector.shape_cast %169 : vector<1x8x384xbf16> to vector<8x384xbf16>
    %c2_i32 = arith.constant 2 : i32
    %171 = arith.addi %10, %c2_i32 : i32
    %172 = arith.truncf %128 : vector<8x128xf32> to vector<8x128xbf16>
    %cst_44 = arith.constant dense<0.000000e+00> : vector<8x384xf32>
    %173 = tpu.matmul %172, %4, %cst_44 {dimension_numbers = #tpu.dot_dimension_numbers<[1], [0], [0], [1], [0, 0, 1, 1], [], []>} : vector<8x128xbf16>, vector<128x384xbf16>, vector<8x384xf32> -> vector<8x384xf32>
    %174 = arith.extf %170 : vector<8x384xbf16> to vector<8x384xf32>
    %175 = vector.extract_strided_slice %174 {offsets = [0, 0], sizes = [8, 128], strides = [1, 1]} : vector<8x384xf32> to vector<8x128xf32>
    %176 = vector.extract_strided_slice %173 {offsets = [0, 0], sizes = [8, 128], strides = [1, 1]} : vector<8x384xf32> to vector<8x128xf32>
    %177 = arith.addf %175, %176 : vector<8x128xf32>
    %178 = arith.negf %177 : vector<8x128xf32>
    %179 = math.exp %178 : vector<8x128xf32>
    %cst_45 = arith.constant 1.000000e+00 : f32
    %180 = vector.broadcast %cst_45 : f32 to vector<8x128xf32>
    %181 = arith.addf %180, %179 : vector<8x128xf32>
    %182 = arith.divf %180, %181 : vector<8x128xf32>
    %183 = vector.extract_strided_slice %174 {offsets = [0, 128], sizes = [8, 128], strides = [1, 1]} : vector<8x384xf32> to vector<8x128xf32>
    %184 = vector.extract_strided_slice %173 {offsets = [0, 128], sizes = [8, 128], strides = [1, 1]} : vector<8x384xf32> to vector<8x128xf32>
    %185 = arith.addf %183, %184 : vector<8x128xf32>
    %186 = arith.negf %185 : vector<8x128xf32>
    %187 = math.exp %186 : vector<8x128xf32>
    %cst_46 = arith.constant 1.000000e+00 : f32
    %188 = vector.broadcast %cst_46 : f32 to vector<8x128xf32>
    %189 = arith.addf %188, %187 : vector<8x128xf32>
    %190 = arith.divf %188, %189 : vector<8x128xf32>
    %191 = vector.extract_strided_slice %174 {offsets = [0, 256], sizes = [8, 128], strides = [1, 1]} : vector<8x384xf32> to vector<8x128xf32>
    %192 = vector.extract_strided_slice %173 {offsets = [0, 256], sizes = [8, 128], strides = [1, 1]} : vector<8x384xf32> to vector<8x128xf32>
    %193 = vector.broadcast %6 : vector<1x128xf32> to vector<8x128xf32>
    %194 = arith.addf %192, %193 : vector<8x128xf32>
    %195 = arith.mulf %182, %194 : vector<8x128xf32>
    %196 = arith.addf %191, %195 : vector<8x128xf32>
    %197 = math.tanh %196 : vector<8x128xf32>
    %cst_47 = arith.constant 1.000000e+00 : f32
    %198 = vector.broadcast %cst_47 : f32 to vector<8x128xf32>
    %199 = arith.subf %198, %190 : vector<8x128xf32>
    %200 = arith.mulf %199, %197 : vector<8x128xf32>
    %201 = arith.mulf %190, %128 : vector<8x128xf32>
    %202 = arith.addf %200, %201 : vector<8x128xf32>
    %203 = vector.broadcast %171 : i32 to vector<8x1xi32>
    %204 = arith.cmpi slt, %203, %3 : vector<8x1xi32>
    %205 = vector.shape_cast %204 : vector<8x1xi1> to vector<8x1xi1>
    %206 = vector.broadcast %205 : vector<8x1xi1> to vector<8x128xi1>
    %207 = arith.select %206, %202, %128 : vector<8x128xi1>, vector<8x128xf32>
    %c5 = arith.constant 5 : index
    %c0_48 = arith.constant 0 : index
    %c0_49 = arith.constant 0 : index
    %208 = vector.load %arg2[%c5, %c0_48, %c0_49] : memref<8x8x384xbf16, #tpu.memory_space<vmem>>, vector<1x8x384xbf16>
    %209 = vector.shape_cast %208 : vector<1x8x384xbf16> to vector<8x384xbf16>
    %c2_i32_50 = arith.constant 2 : i32
    %210 = arith.addi %10, %c2_i32_50 : i32
    %c7_i32_51 = arith.constant 7 : i32
    %211 = arith.subi %c7_i32_51, %210 : i32
    %212 = arith.truncf %168 : vector<8x128xf32> to vector<8x128xbf16>
    %cst_52 = arith.constant dense<0.000000e+00> : vector<8x384xf32>
    %213 = tpu.matmul %212, %5, %cst_52 {dimension_numbers = #tpu.dot_dimension_numbers<[1], [0], [0], [1], [0, 0, 1, 1], [], []>} : vector<8x128xbf16>, vector<128x384xbf16>, vector<8x384xf32> -> vector<8x384xf32>
    %214 = arith.extf %209 : vector<8x384xbf16> to vector<8x384xf32>
    %215 = vector.extract_strided_slice %214 {offsets = [0, 0], sizes = [8, 128], strides = [1, 1]} : vector<8x384xf32> to vector<8x128xf32>
    %216 = vector.extract_strided_slice %213 {offsets = [0, 0], sizes = [8, 128], strides = [1, 1]} : vector<8x384xf32> to vector<8x128xf32>
    %217 = arith.addf %215, %216 : vector<8x128xf32>
    %218 = arith.negf %217 : vector<8x128xf32>
    %219 = math.exp %218 : vector<8x128xf32>
    %cst_53 = arith.constant 1.000000e+00 : f32
    %220 = vector.broadcast %cst_53 : f32 to vector<8x128xf32>
    %221 = arith.addf %220, %219 : vector<8x128xf32>
    %222 = arith.divf %220, %221 : vector<8x128xf32>
    %223 = vector.extract_strided_slice %214 {offsets = [0, 128], sizes = [8, 128], strides = [1, 1]} : vector<8x384xf32> to vector<8x128xf32>
    %224 = vector.extract_strided_slice %213 {offsets = [0, 128], sizes = [8, 128], strides = [1, 1]} : vector<8x384xf32> to vector<8x128xf32>
    %225 = arith.addf %223, %224 : vector<8x128xf32>
    %226 = arith.negf %225 : vector<8x128xf32>
    %227 = math.exp %226 : vector<8x128xf32>
    %cst_54 = arith.constant 1.000000e+00 : f32
    %228 = vector.broadcast %cst_54 : f32 to vector<8x128xf32>
    %229 = arith.addf %228, %227 : vector<8x128xf32>
    %230 = arith.divf %228, %229 : vector<8x128xf32>
    %231 = vector.extract_strided_slice %214 {offsets = [0, 256], sizes = [8, 128], strides = [1, 1]} : vector<8x384xf32> to vector<8x128xf32>
    %232 = vector.extract_strided_slice %213 {offsets = [0, 256], sizes = [8, 128], strides = [1, 1]} : vector<8x384xf32> to vector<8x128xf32>
    %233 = vector.broadcast %7 : vector<1x128xf32> to vector<8x128xf32>
    %234 = arith.addf %232, %233 : vector<8x128xf32>
    %235 = arith.mulf %222, %234 : vector<8x128xf32>
    %236 = arith.addf %231, %235 : vector<8x128xf32>
    %237 = math.tanh %236 : vector<8x128xf32>
    %cst_55 = arith.constant 1.000000e+00 : f32
    %238 = vector.broadcast %cst_55 : f32 to vector<8x128xf32>
    %239 = arith.subf %238, %230 : vector<8x128xf32>
    %240 = arith.mulf %239, %237 : vector<8x128xf32>
    %241 = arith.mulf %230, %168 : vector<8x128xf32>
    %242 = arith.addf %240, %241 : vector<8x128xf32>
    %243 = vector.broadcast %211 : i32 to vector<8x1xi32>
    %244 = arith.cmpi slt, %243, %3 : vector<8x1xi32>
    %245 = vector.shape_cast %244 : vector<8x1xi1> to vector<8x1xi1>
    %246 = vector.broadcast %245 : vector<8x1xi1> to vector<8x128xi1>
    %247 = arith.select %246, %242, %168 : vector<8x128xi1>, vector<8x128xf32>
    %c3 = arith.constant 3 : index
    %c0_56 = arith.constant 0 : index
    %c0_57 = arith.constant 0 : index
    %248 = vector.load %arg1[%c3, %c0_56, %c0_57] : memref<8x8x384xbf16, #tpu.memory_space<vmem>>, vector<1x8x384xbf16>
    %249 = vector.shape_cast %248 : vector<1x8x384xbf16> to vector<8x384xbf16>
    %c3_i32 = arith.constant 3 : i32
    %250 = arith.addi %10, %c3_i32 : i32
    %251 = arith.truncf %207 : vector<8x128xf32> to vector<8x128xbf16>
    %cst_58 = arith.constant dense<0.000000e+00> : vector<8x384xf32>
    %252 = tpu.matmul %251, %4, %cst_58 {dimension_numbers = #tpu.dot_dimension_numbers<[1], [0], [0], [1], [0, 0, 1, 1], [], []>} : vector<8x128xbf16>, vector<128x384xbf16>, vector<8x384xf32> -> vector<8x384xf32>
    %253 = arith.extf %249 : vector<8x384xbf16> to vector<8x384xf32>
    %254 = vector.extract_strided_slice %253 {offsets = [0, 0], sizes = [8, 128], strides = [1, 1]} : vector<8x384xf32> to vector<8x128xf32>
    %255 = vector.extract_strided_slice %252 {offsets = [0, 0], sizes = [8, 128], strides = [1, 1]} : vector<8x384xf32> to vector<8x128xf32>
    %256 = arith.addf %254, %255 : vector<8x128xf32>
    %257 = arith.negf %256 : vector<8x128xf32>
    %258 = math.exp %257 : vector<8x128xf32>
    %cst_59 = arith.constant 1.000000e+00 : f32
    %259 = vector.broadcast %cst_59 : f32 to vector<8x128xf32>
    %260 = arith.addf %259, %258 : vector<8x128xf32>
    %261 = arith.divf %259, %260 : vector<8x128xf32>
    %262 = vector.extract_strided_slice %253 {offsets = [0, 128], sizes = [8, 128], strides = [1, 1]} : vector<8x384xf32> to vector<8x128xf32>
    %263 = vector.extract_strided_slice %252 {offsets = [0, 128], sizes = [8, 128], strides = [1, 1]} : vector<8x384xf32> to vector<8x128xf32>
    %264 = arith.addf %262, %263 : vector<8x128xf32>
    %265 = arith.negf %264 : vector<8x128xf32>
    %266 = math.exp %265 : vector<8x128xf32>
    %cst_60 = arith.constant 1.000000e+00 : f32
    %267 = vector.broadcast %cst_60 : f32 to vector<8x128xf32>
    %268 = arith.addf %267, %266 : vector<8x128xf32>
    %269 = arith.divf %267, %268 : vector<8x128xf32>
    %270 = vector.extract_strided_slice %253 {offsets = [0, 256], sizes = [8, 128], strides = [1, 1]} : vector<8x384xf32> to vector<8x128xf32>
    %271 = vector.extract_strided_slice %252 {offsets = [0, 256], sizes = [8, 128], strides = [1, 1]} : vector<8x384xf32> to vector<8x128xf32>
    %272 = vector.broadcast %6 : vector<1x128xf32> to vector<8x128xf32>
    %273 = arith.addf %271, %272 : vector<8x128xf32>
    %274 = arith.mulf %261, %273 : vector<8x128xf32>
    %275 = arith.addf %270, %274 : vector<8x128xf32>
    %276 = math.tanh %275 : vector<8x128xf32>
    %cst_61 = arith.constant 1.000000e+00 : f32
    %277 = vector.broadcast %cst_61 : f32 to vector<8x128xf32>
    %278 = arith.subf %277, %269 : vector<8x128xf32>
    %279 = arith.mulf %278, %276 : vector<8x128xf32>
    %280 = arith.mulf %269, %207 : vector<8x128xf32>
    %281 = arith.addf %279, %280 : vector<8x128xf32>
    %282 = vector.broadcast %250 : i32 to vector<8x1xi32>
    %283 = arith.cmpi slt, %282, %3 : vector<8x1xi32>
    %284 = vector.shape_cast %283 : vector<8x1xi1> to vector<8x1xi1>
    %285 = vector.broadcast %284 : vector<8x1xi1> to vector<8x128xi1>
    %286 = arith.select %285, %281, %207 : vector<8x128xi1>, vector<8x128xf32>
    %c4 = arith.constant 4 : index
    %c0_62 = arith.constant 0 : index
    %c0_63 = arith.constant 0 : index
    %287 = vector.load %arg2[%c4, %c0_62, %c0_63] : memref<8x8x384xbf16, #tpu.memory_space<vmem>>, vector<1x8x384xbf16>
    %288 = vector.shape_cast %287 : vector<1x8x384xbf16> to vector<8x384xbf16>
    %c3_i32_64 = arith.constant 3 : i32
    %289 = arith.addi %10, %c3_i32_64 : i32
    %c7_i32_65 = arith.constant 7 : i32
    %290 = arith.subi %c7_i32_65, %289 : i32
    %291 = arith.truncf %247 : vector<8x128xf32> to vector<8x128xbf16>
    %cst_66 = arith.constant dense<0.000000e+00> : vector<8x384xf32>
    %292 = tpu.matmul %291, %5, %cst_66 {dimension_numbers = #tpu.dot_dimension_numbers<[1], [0], [0], [1], [0, 0, 1, 1], [], []>} : vector<8x128xbf16>, vector<128x384xbf16>, vector<8x384xf32> -> vector<8x384xf32>
    %293 = arith.extf %288 : vector<8x384xbf16> to vector<8x384xf32>
    %294 = vector.extract_strided_slice %293 {offsets = [0, 0], sizes = [8, 128], strides = [1, 1]} : vector<8x384xf32> to vector<8x128xf32>
    %295 = vector.extract_strided_slice %292 {offsets = [0, 0], sizes = [8, 128], strides = [1, 1]} : vector<8x384xf32> to vector<8x128xf32>
    %296 = arith.addf %294, %295 : vector<8x128xf32>
    %297 = arith.negf %296 : vector<8x128xf32>
    %298 = math.exp %297 : vector<8x128xf32>
    %cst_67 = arith.constant 1.000000e+00 : f32
    %299 = vector.broadcast %cst_67 : f32 to vector<8x128xf32>
    %300 = arith.addf %299, %298 : vector<8x128xf32>
    %301 = arith.divf %299, %300 : vector<8x128xf32>
    %302 = vector.extract_strided_slice %293 {offsets = [0, 128], sizes = [8, 128], strides = [1, 1]} : vector<8x384xf32> to vector<8x128xf32>
    %303 = vector.extract_strided_slice %292 {offsets = [0, 128], sizes = [8, 128], strides = [1, 1]} : vector<8x384xf32> to vector<8x128xf32>
    %304 = arith.addf %302, %303 : vector<8x128xf32>
    %305 = arith.negf %304 : vector<8x128xf32>
    %306 = math.exp %305 : vector<8x128xf32>
    %cst_68 = arith.constant 1.000000e+00 : f32
    %307 = vector.broadcast %cst_68 : f32 to vector<8x128xf32>
    %308 = arith.addf %307, %306 : vector<8x128xf32>
    %309 = arith.divf %307, %308 : vector<8x128xf32>
    %310 = vector.extract_strided_slice %293 {offsets = [0, 256], sizes = [8, 128], strides = [1, 1]} : vector<8x384xf32> to vector<8x128xf32>
    %311 = vector.extract_strided_slice %292 {offsets = [0, 256], sizes = [8, 128], strides = [1, 1]} : vector<8x384xf32> to vector<8x128xf32>
    %312 = vector.broadcast %7 : vector<1x128xf32> to vector<8x128xf32>
    %313 = arith.addf %311, %312 : vector<8x128xf32>
    %314 = arith.mulf %301, %313 : vector<8x128xf32>
    %315 = arith.addf %310, %314 : vector<8x128xf32>
    %316 = math.tanh %315 : vector<8x128xf32>
    %cst_69 = arith.constant 1.000000e+00 : f32
    %317 = vector.broadcast %cst_69 : f32 to vector<8x128xf32>
    %318 = arith.subf %317, %309 : vector<8x128xf32>
    %319 = arith.mulf %318, %316 : vector<8x128xf32>
    %320 = arith.mulf %309, %247 : vector<8x128xf32>
    %321 = arith.addf %319, %320 : vector<8x128xf32>
    %322 = vector.broadcast %290 : i32 to vector<8x1xi32>
    %323 = arith.cmpi slt, %322, %3 : vector<8x1xi32>
    %324 = vector.shape_cast %323 : vector<8x1xi1> to vector<8x1xi1>
    %325 = vector.broadcast %324 : vector<8x1xi1> to vector<8x128xi1>
    %326 = arith.select %325, %321, %247 : vector<8x128xi1>, vector<8x128xf32>
    %c4_70 = arith.constant 4 : index
    %c0_71 = arith.constant 0 : index
    %c0_72 = arith.constant 0 : index
    %327 = vector.load %arg1[%c4_70, %c0_71, %c0_72] : memref<8x8x384xbf16, #tpu.memory_space<vmem>>, vector<1x8x384xbf16>
    %328 = vector.shape_cast %327 : vector<1x8x384xbf16> to vector<8x384xbf16>
    %c4_i32 = arith.constant 4 : i32
    %329 = arith.addi %10, %c4_i32 : i32
    %330 = arith.truncf %286 : vector<8x128xf32> to vector<8x128xbf16>
    %cst_73 = arith.constant dense<0.000000e+00> : vector<8x384xf32>
    %331 = tpu.matmul %330, %4, %cst_73 {dimension_numbers = #tpu.dot_dimension_numbers<[1], [0], [0], [1], [0, 0, 1, 1], [], []>} : vector<8x128xbf16>, vector<128x384xbf16>, vector<8x384xf32> -> vector<8x384xf32>
    %332 = arith.extf %328 : vector<8x384xbf16> to vector<8x384xf32>
    %333 = vector.extract_strided_slice %332 {offsets = [0, 0], sizes = [8, 128], strides = [1, 1]} : vector<8x384xf32> to vector<8x128xf32>
    %334 = vector.extract_strided_slice %331 {offsets = [0, 0], sizes = [8, 128], strides = [1, 1]} : vector<8x384xf32> to vector<8x128xf32>
    %335 = arith.addf %333, %334 : vector<8x128xf32>
    %336 = arith.negf %335 : vector<8x128xf32>
    %337 = math.exp %336 : vector<8x128xf32>
    %cst_74 = arith.constant 1.000000e+00 : f32
    %338 = vector.broadcast %cst_74 : f32 to vector<8x128xf32>
    %339 = arith.addf %338, %337 : vector<8x128xf32>
    %340 = arith.divf %338, %339 : vector<8x128xf32>
    %341 = vector.extract_strided_slice %332 {offsets = [0, 128], sizes = [8, 128], strides = [1, 1]} : vector<8x384xf32> to vector<8x128xf32>
    %342 = vector.extract_strided_slice %331 {offsets = [0, 128], sizes = [8, 128], strides = [1, 1]} : vector<8x384xf32> to vector<8x128xf32>
    %343 = arith.addf %341, %342 : vector<8x128xf32>
    %344 = arith.negf %343 : vector<8x128xf32>
    %345 = math.exp %344 : vector<8x128xf32>
    %cst_75 = arith.constant 1.000000e+00 : f32
    %346 = vector.broadcast %cst_75 : f32 to vector<8x128xf32>
    %347 = arith.addf %346, %345 : vector<8x128xf32>
    %348 = arith.divf %346, %347 : vector<8x128xf32>
    %349 = vector.extract_strided_slice %332 {offsets = [0, 256], sizes = [8, 128], strides = [1, 1]} : vector<8x384xf32> to vector<8x128xf32>
    %350 = vector.extract_strided_slice %331 {offsets = [0, 256], sizes = [8, 128], strides = [1, 1]} : vector<8x384xf32> to vector<8x128xf32>
    %351 = vector.broadcast %6 : vector<1x128xf32> to vector<8x128xf32>
    %352 = arith.addf %350, %351 : vector<8x128xf32>
    %353 = arith.mulf %340, %352 : vector<8x128xf32>
    %354 = arith.addf %349, %353 : vector<8x128xf32>
    %355 = math.tanh %354 : vector<8x128xf32>
    %cst_76 = arith.constant 1.000000e+00 : f32
    %356 = vector.broadcast %cst_76 : f32 to vector<8x128xf32>
    %357 = arith.subf %356, %348 : vector<8x128xf32>
    %358 = arith.mulf %357, %355 : vector<8x128xf32>
    %359 = arith.mulf %348, %286 : vector<8x128xf32>
    %360 = arith.addf %358, %359 : vector<8x128xf32>
    %361 = vector.broadcast %329 : i32 to vector<8x1xi32>
    %362 = arith.cmpi slt, %361, %3 : vector<8x1xi32>
    %363 = vector.shape_cast %362 : vector<8x1xi1> to vector<8x1xi1>
    %364 = vector.broadcast %363 : vector<8x1xi1> to vector<8x128xi1>
    %365 = arith.select %364, %360, %286 : vector<8x128xi1>, vector<8x128xf32>
    %c3_77 = arith.constant 3 : index
    %c0_78 = arith.constant 0 : index
    %c0_79 = arith.constant 0 : index
    %366 = vector.load %arg2[%c3_77, %c0_78, %c0_79] : memref<8x8x384xbf16, #tpu.memory_space<vmem>>, vector<1x8x384xbf16>
    %367 = vector.shape_cast %366 : vector<1x8x384xbf16> to vector<8x384xbf16>
    %c4_i32_80 = arith.constant 4 : i32
    %368 = arith.addi %10, %c4_i32_80 : i32
    %c7_i32_81 = arith.constant 7 : i32
    %369 = arith.subi %c7_i32_81, %368 : i32
    %370 = arith.truncf %326 : vector<8x128xf32> to vector<8x128xbf16>
    %cst_82 = arith.constant dense<0.000000e+00> : vector<8x384xf32>
    %371 = tpu.matmul %370, %5, %cst_82 {dimension_numbers = #tpu.dot_dimension_numbers<[1], [0], [0], [1], [0, 0, 1, 1], [], []>} : vector<8x128xbf16>, vector<128x384xbf16>, vector<8x384xf32> -> vector<8x384xf32>
    %372 = arith.extf %367 : vector<8x384xbf16> to vector<8x384xf32>
    %373 = vector.extract_strided_slice %372 {offsets = [0, 0], sizes = [8, 128], strides = [1, 1]} : vector<8x384xf32> to vector<8x128xf32>
    %374 = vector.extract_strided_slice %371 {offsets = [0, 0], sizes = [8, 128], strides = [1, 1]} : vector<8x384xf32> to vector<8x128xf32>
    %375 = arith.addf %373, %374 : vector<8x128xf32>
    %376 = arith.negf %375 : vector<8x128xf32>
    %377 = math.exp %376 : vector<8x128xf32>
    %cst_83 = arith.constant 1.000000e+00 : f32
    %378 = vector.broadcast %cst_83 : f32 to vector<8x128xf32>
    %379 = arith.addf %378, %377 : vector<8x128xf32>
    %380 = arith.divf %378, %379 : vector<8x128xf32>
    %381 = vector.extract_strided_slice %372 {offsets = [0, 128], sizes = [8, 128], strides = [1, 1]} : vector<8x384xf32> to vector<8x128xf32>
    %382 = vector.extract_strided_slice %371 {offsets = [0, 128], sizes = [8, 128], strides = [1, 1]} : vector<8x384xf32> to vector<8x128xf32>
    %383 = arith.addf %381, %382 : vector<8x128xf32>
    %384 = arith.negf %383 : vector<8x128xf32>
    %385 = math.exp %384 : vector<8x128xf32>
    %cst_84 = arith.constant 1.000000e+00 : f32
    %386 = vector.broadcast %cst_84 : f32 to vector<8x128xf32>
    %387 = arith.addf %386, %385 : vector<8x128xf32>
    %388 = arith.divf %386, %387 : vector<8x128xf32>
    %389 = vector.extract_strided_slice %372 {offsets = [0, 256], sizes = [8, 128], strides = [1, 1]} : vector<8x384xf32> to vector<8x128xf32>
    %390 = vector.extract_strided_slice %371 {offsets = [0, 256], sizes = [8, 128], strides = [1, 1]} : vector<8x384xf32> to vector<8x128xf32>
    %391 = vector.broadcast %7 : vector<1x128xf32> to vector<8x128xf32>
    %392 = arith.addf %390, %391 : vector<8x128xf32>
    %393 = arith.mulf %380, %392 : vector<8x128xf32>
    %394 = arith.addf %389, %393 : vector<8x128xf32>
    %395 = math.tanh %394 : vector<8x128xf32>
    %cst_85 = arith.constant 1.000000e+00 : f32
    %396 = vector.broadcast %cst_85 : f32 to vector<8x128xf32>
    %397 = arith.subf %396, %388 : vector<8x128xf32>
    %398 = arith.mulf %397, %395 : vector<8x128xf32>
    %399 = arith.mulf %388, %326 : vector<8x128xf32>
    %400 = arith.addf %398, %399 : vector<8x128xf32>
    %401 = vector.broadcast %369 : i32 to vector<8x1xi32>
    %402 = arith.cmpi slt, %401, %3 : vector<8x1xi32>
    %403 = vector.shape_cast %402 : vector<8x1xi1> to vector<8x1xi1>
    %404 = vector.broadcast %403 : vector<8x1xi1> to vector<8x128xi1>
    %405 = arith.select %404, %400, %326 : vector<8x128xi1>, vector<8x128xf32>
    %c5_86 = arith.constant 5 : index
    %c0_87 = arith.constant 0 : index
    %c0_88 = arith.constant 0 : index
    %406 = vector.load %arg1[%c5_86, %c0_87, %c0_88] : memref<8x8x384xbf16, #tpu.memory_space<vmem>>, vector<1x8x384xbf16>
    %407 = vector.shape_cast %406 : vector<1x8x384xbf16> to vector<8x384xbf16>
    %c5_i32 = arith.constant 5 : i32
    %408 = arith.addi %10, %c5_i32 : i32
    %409 = arith.truncf %365 : vector<8x128xf32> to vector<8x128xbf16>
    %cst_89 = arith.constant dense<0.000000e+00> : vector<8x384xf32>
    %410 = tpu.matmul %409, %4, %cst_89 {dimension_numbers = #tpu.dot_dimension_numbers<[1], [0], [0], [1], [0, 0, 1, 1], [], []>} : vector<8x128xbf16>, vector<128x384xbf16>, vector<8x384xf32> -> vector<8x384xf32>
    %411 = arith.extf %407 : vector<8x384xbf16> to vector<8x384xf32>
    %412 = vector.extract_strided_slice %411 {offsets = [0, 0], sizes = [8, 128], strides = [1, 1]} : vector<8x384xf32> to vector<8x128xf32>
    %413 = vector.extract_strided_slice %410 {offsets = [0, 0], sizes = [8, 128], strides = [1, 1]} : vector<8x384xf32> to vector<8x128xf32>
    %414 = arith.addf %412, %413 : vector<8x128xf32>
    %415 = arith.negf %414 : vector<8x128xf32>
    %416 = math.exp %415 : vector<8x128xf32>
    %cst_90 = arith.constant 1.000000e+00 : f32
    %417 = vector.broadcast %cst_90 : f32 to vector<8x128xf32>
    %418 = arith.addf %417, %416 : vector<8x128xf32>
    %419 = arith.divf %417, %418 : vector<8x128xf32>
    %420 = vector.extract_strided_slice %411 {offsets = [0, 128], sizes = [8, 128], strides = [1, 1]} : vector<8x384xf32> to vector<8x128xf32>
    %421 = vector.extract_strided_slice %410 {offsets = [0, 128], sizes = [8, 128], strides = [1, 1]} : vector<8x384xf32> to vector<8x128xf32>
    %422 = arith.addf %420, %421 : vector<8x128xf32>
    %423 = arith.negf %422 : vector<8x128xf32>
    %424 = math.exp %423 : vector<8x128xf32>
    %cst_91 = arith.constant 1.000000e+00 : f32
    %425 = vector.broadcast %cst_91 : f32 to vector<8x128xf32>
    %426 = arith.addf %425, %424 : vector<8x128xf32>
    %427 = arith.divf %425, %426 : vector<8x128xf32>
    %428 = vector.extract_strided_slice %411 {offsets = [0, 256], sizes = [8, 128], strides = [1, 1]} : vector<8x384xf32> to vector<8x128xf32>
    %429 = vector.extract_strided_slice %410 {offsets = [0, 256], sizes = [8, 128], strides = [1, 1]} : vector<8x384xf32> to vector<8x128xf32>
    %430 = vector.broadcast %6 : vector<1x128xf32> to vector<8x128xf32>
    %431 = arith.addf %429, %430 : vector<8x128xf32>
    %432 = arith.mulf %419, %431 : vector<8x128xf32>
    %433 = arith.addf %428, %432 : vector<8x128xf32>
    %434 = math.tanh %433 : vector<8x128xf32>
    %cst_92 = arith.constant 1.000000e+00 : f32
    %435 = vector.broadcast %cst_92 : f32 to vector<8x128xf32>
    %436 = arith.subf %435, %427 : vector<8x128xf32>
    %437 = arith.mulf %436, %434 : vector<8x128xf32>
    %438 = arith.mulf %427, %365 : vector<8x128xf32>
    %439 = arith.addf %437, %438 : vector<8x128xf32>
    %440 = vector.broadcast %408 : i32 to vector<8x1xi32>
    %441 = arith.cmpi slt, %440, %3 : vector<8x1xi32>
    %442 = vector.shape_cast %441 : vector<8x1xi1> to vector<8x1xi1>
    %443 = vector.broadcast %442 : vector<8x1xi1> to vector<8x128xi1>
    %444 = arith.select %443, %439, %365 : vector<8x128xi1>, vector<8x128xf32>
    %c2_93 = arith.constant 2 : index
    %c0_94 = arith.constant 0 : index
    %c0_95 = arith.constant 0 : index
    %445 = vector.load %arg2[%c2_93, %c0_94, %c0_95] : memref<8x8x384xbf16, #tpu.memory_space<vmem>>, vector<1x8x384xbf16>
    %446 = vector.shape_cast %445 : vector<1x8x384xbf16> to vector<8x384xbf16>
    %c5_i32_96 = arith.constant 5 : i32
    %447 = arith.addi %10, %c5_i32_96 : i32
    %c7_i32_97 = arith.constant 7 : i32
    %448 = arith.subi %c7_i32_97, %447 : i32
    %449 = arith.truncf %405 : vector<8x128xf32> to vector<8x128xbf16>
    %cst_98 = arith.constant dense<0.000000e+00> : vector<8x384xf32>
    %450 = tpu.matmul %449, %5, %cst_98 {dimension_numbers = #tpu.dot_dimension_numbers<[1], [0], [0], [1], [0, 0, 1, 1], [], []>} : vector<8x128xbf16>, vector<128x384xbf16>, vector<8x384xf32> -> vector<8x384xf32>
    %451 = arith.extf %446 : vector<8x384xbf16> to vector<8x384xf32>
    %452 = vector.extract_strided_slice %451 {offsets = [0, 0], sizes = [8, 128], strides = [1, 1]} : vector<8x384xf32> to vector<8x128xf32>
    %453 = vector.extract_strided_slice %450 {offsets = [0, 0], sizes = [8, 128], strides = [1, 1]} : vector<8x384xf32> to vector<8x128xf32>
    %454 = arith.addf %452, %453 : vector<8x128xf32>
    %455 = arith.negf %454 : vector<8x128xf32>
    %456 = math.exp %455 : vector<8x128xf32>
    %cst_99 = arith.constant 1.000000e+00 : f32
    %457 = vector.broadcast %cst_99 : f32 to vector<8x128xf32>
    %458 = arith.addf %457, %456 : vector<8x128xf32>
    %459 = arith.divf %457, %458 : vector<8x128xf32>
    %460 = vector.extract_strided_slice %451 {offsets = [0, 128], sizes = [8, 128], strides = [1, 1]} : vector<8x384xf32> to vector<8x128xf32>
    %461 = vector.extract_strided_slice %450 {offsets = [0, 128], sizes = [8, 128], strides = [1, 1]} : vector<8x384xf32> to vector<8x128xf32>
    %462 = arith.addf %460, %461 : vector<8x128xf32>
    %463 = arith.negf %462 : vector<8x128xf32>
    %464 = math.exp %463 : vector<8x128xf32>
    %cst_100 = arith.constant 1.000000e+00 : f32
    %465 = vector.broadcast %cst_100 : f32 to vector<8x128xf32>
    %466 = arith.addf %465, %464 : vector<8x128xf32>
    %467 = arith.divf %465, %466 : vector<8x128xf32>
    %468 = vector.extract_strided_slice %451 {offsets = [0, 256], sizes = [8, 128], strides = [1, 1]} : vector<8x384xf32> to vector<8x128xf32>
    %469 = vector.extract_strided_slice %450 {offsets = [0, 256], sizes = [8, 128], strides = [1, 1]} : vector<8x384xf32> to vector<8x128xf32>
    %470 = vector.broadcast %7 : vector<1x128xf32> to vector<8x128xf32>
    %471 = arith.addf %469, %470 : vector<8x128xf32>
    %472 = arith.mulf %459, %471 : vector<8x128xf32>
    %473 = arith.addf %468, %472 : vector<8x128xf32>
    %474 = math.tanh %473 : vector<8x128xf32>
    %cst_101 = arith.constant 1.000000e+00 : f32
    %475 = vector.broadcast %cst_101 : f32 to vector<8x128xf32>
    %476 = arith.subf %475, %467 : vector<8x128xf32>
    %477 = arith.mulf %476, %474 : vector<8x128xf32>
    %478 = arith.mulf %467, %405 : vector<8x128xf32>
    %479 = arith.addf %477, %478 : vector<8x128xf32>
    %480 = vector.broadcast %448 : i32 to vector<8x1xi32>
    %481 = arith.cmpi slt, %480, %3 : vector<8x1xi32>
    %482 = vector.shape_cast %481 : vector<8x1xi1> to vector<8x1xi1>
    %483 = vector.broadcast %482 : vector<8x1xi1> to vector<8x128xi1>
    %484 = arith.select %483, %479, %405 : vector<8x128xi1>, vector<8x128xf32>
    %c6_102 = arith.constant 6 : index
    %c0_103 = arith.constant 0 : index
    %c0_104 = arith.constant 0 : index
    %485 = vector.load %arg1[%c6_102, %c0_103, %c0_104] : memref<8x8x384xbf16, #tpu.memory_space<vmem>>, vector<1x8x384xbf16>
    %486 = vector.shape_cast %485 : vector<1x8x384xbf16> to vector<8x384xbf16>
    %c6_i32 = arith.constant 6 : i32
    %487 = arith.addi %10, %c6_i32 : i32
    %488 = arith.truncf %444 : vector<8x128xf32> to vector<8x128xbf16>
    %cst_105 = arith.constant dense<0.000000e+00> : vector<8x384xf32>
    %489 = tpu.matmul %488, %4, %cst_105 {dimension_numbers = #tpu.dot_dimension_numbers<[1], [0], [0], [1], [0, 0, 1, 1], [], []>} : vector<8x128xbf16>, vector<128x384xbf16>, vector<8x384xf32> -> vector<8x384xf32>
    %490 = arith.extf %486 : vector<8x384xbf16> to vector<8x384xf32>
    %491 = vector.extract_strided_slice %490 {offsets = [0, 0], sizes = [8, 128], strides = [1, 1]} : vector<8x384xf32> to vector<8x128xf32>
    %492 = vector.extract_strided_slice %489 {offsets = [0, 0], sizes = [8, 128], strides = [1, 1]} : vector<8x384xf32> to vector<8x128xf32>
    %493 = arith.addf %491, %492 : vector<8x128xf32>
    %494 = arith.negf %493 : vector<8x128xf32>
    %495 = math.exp %494 : vector<8x128xf32>
    %cst_106 = arith.constant 1.000000e+00 : f32
    %496 = vector.broadcast %cst_106 : f32 to vector<8x128xf32>
    %497 = arith.addf %496, %495 : vector<8x128xf32>
    %498 = arith.divf %496, %497 : vector<8x128xf32>
    %499 = vector.extract_strided_slice %490 {offsets = [0, 128], sizes = [8, 128], strides = [1, 1]} : vector<8x384xf32> to vector<8x128xf32>
    %500 = vector.extract_strided_slice %489 {offsets = [0, 128], sizes = [8, 128], strides = [1, 1]} : vector<8x384xf32> to vector<8x128xf32>
    %501 = arith.addf %499, %500 : vector<8x128xf32>
    %502 = arith.negf %501 : vector<8x128xf32>
    %503 = math.exp %502 : vector<8x128xf32>
    %cst_107 = arith.constant 1.000000e+00 : f32
    %504 = vector.broadcast %cst_107 : f32 to vector<8x128xf32>
    %505 = arith.addf %504, %503 : vector<8x128xf32>
    %506 = arith.divf %504, %505 : vector<8x128xf32>
    %507 = vector.extract_strided_slice %490 {offsets = [0, 256], sizes = [8, 128], strides = [1, 1]} : vector<8x384xf32> to vector<8x128xf32>
    %508 = vector.extract_strided_slice %489 {offsets = [0, 256], sizes = [8, 128], strides = [1, 1]} : vector<8x384xf32> to vector<8x128xf32>
    %509 = vector.broadcast %6 : vector<1x128xf32> to vector<8x128xf32>
    %510 = arith.addf %508, %509 : vector<8x128xf32>
    %511 = arith.mulf %498, %510 : vector<8x128xf32>
    %512 = arith.addf %507, %511 : vector<8x128xf32>
    %513 = math.tanh %512 : vector<8x128xf32>
    %cst_108 = arith.constant 1.000000e+00 : f32
    %514 = vector.broadcast %cst_108 : f32 to vector<8x128xf32>
    %515 = arith.subf %514, %506 : vector<8x128xf32>
    %516 = arith.mulf %515, %513 : vector<8x128xf32>
    %517 = arith.mulf %506, %444 : vector<8x128xf32>
    %518 = arith.addf %516, %517 : vector<8x128xf32>
    %519 = vector.broadcast %487 : i32 to vector<8x1xi32>
    %520 = arith.cmpi slt, %519, %3 : vector<8x1xi32>
    %521 = vector.shape_cast %520 : vector<8x1xi1> to vector<8x1xi1>
    %522 = vector.broadcast %521 : vector<8x1xi1> to vector<8x128xi1>
    %523 = arith.select %522, %518, %444 : vector<8x128xi1>, vector<8x128xf32>
    %c1_109 = arith.constant 1 : index
    %c0_110 = arith.constant 0 : index
    %c0_111 = arith.constant 0 : index
    %524 = vector.load %arg2[%c1_109, %c0_110, %c0_111] : memref<8x8x384xbf16, #tpu.memory_space<vmem>>, vector<1x8x384xbf16>
    %525 = vector.shape_cast %524 : vector<1x8x384xbf16> to vector<8x384xbf16>
    %c6_i32_112 = arith.constant 6 : i32
    %526 = arith.addi %10, %c6_i32_112 : i32
    %c7_i32_113 = arith.constant 7 : i32
    %527 = arith.subi %c7_i32_113, %526 : i32
    %528 = arith.truncf %484 : vector<8x128xf32> to vector<8x128xbf16>
    %cst_114 = arith.constant dense<0.000000e+00> : vector<8x384xf32>
    %529 = tpu.matmul %528, %5, %cst_114 {dimension_numbers = #tpu.dot_dimension_numbers<[1], [0], [0], [1], [0, 0, 1, 1], [], []>} : vector<8x128xbf16>, vector<128x384xbf16>, vector<8x384xf32> -> vector<8x384xf32>
    %530 = arith.extf %525 : vector<8x384xbf16> to vector<8x384xf32>
    %531 = vector.extract_strided_slice %530 {offsets = [0, 0], sizes = [8, 128], strides = [1, 1]} : vector<8x384xf32> to vector<8x128xf32>
    %532 = vector.extract_strided_slice %529 {offsets = [0, 0], sizes = [8, 128], strides = [1, 1]} : vector<8x384xf32> to vector<8x128xf32>
    %533 = arith.addf %531, %532 : vector<8x128xf32>
    %534 = arith.negf %533 : vector<8x128xf32>
    %535 = math.exp %534 : vector<8x128xf32>
    %cst_115 = arith.constant 1.000000e+00 : f32
    %536 = vector.broadcast %cst_115 : f32 to vector<8x128xf32>
    %537 = arith.addf %536, %535 : vector<8x128xf32>
    %538 = arith.divf %536, %537 : vector<8x128xf32>
    %539 = vector.extract_strided_slice %530 {offsets = [0, 128], sizes = [8, 128], strides = [1, 1]} : vector<8x384xf32> to vector<8x128xf32>
    %540 = vector.extract_strided_slice %529 {offsets = [0, 128], sizes = [8, 128], strides = [1, 1]} : vector<8x384xf32> to vector<8x128xf32>
    %541 = arith.addf %539, %540 : vector<8x128xf32>
    %542 = arith.negf %541 : vector<8x128xf32>
    %543 = math.exp %542 : vector<8x128xf32>
    %cst_116 = arith.constant 1.000000e+00 : f32
    %544 = vector.broadcast %cst_116 : f32 to vector<8x128xf32>
    %545 = arith.addf %544, %543 : vector<8x128xf32>
    %546 = arith.divf %544, %545 : vector<8x128xf32>
    %547 = vector.extract_strided_slice %530 {offsets = [0, 256], sizes = [8, 128], strides = [1, 1]} : vector<8x384xf32> to vector<8x128xf32>
    %548 = vector.extract_strided_slice %529 {offsets = [0, 256], sizes = [8, 128], strides = [1, 1]} : vector<8x384xf32> to vector<8x128xf32>
    %549 = vector.broadcast %7 : vector<1x128xf32> to vector<8x128xf32>
    %550 = arith.addf %548, %549 : vector<8x128xf32>
    %551 = arith.mulf %538, %550 : vector<8x128xf32>
    %552 = arith.addf %547, %551 : vector<8x128xf32>
    %553 = math.tanh %552 : vector<8x128xf32>
    %cst_117 = arith.constant 1.000000e+00 : f32
    %554 = vector.broadcast %cst_117 : f32 to vector<8x128xf32>
    %555 = arith.subf %554, %546 : vector<8x128xf32>
    %556 = arith.mulf %555, %553 : vector<8x128xf32>
    %557 = arith.mulf %546, %484 : vector<8x128xf32>
    %558 = arith.addf %556, %557 : vector<8x128xf32>
    %559 = vector.broadcast %527 : i32 to vector<8x1xi32>
    %560 = arith.cmpi slt, %559, %3 : vector<8x1xi32>
    %561 = vector.shape_cast %560 : vector<8x1xi1> to vector<8x1xi1>
    %562 = vector.broadcast %561 : vector<8x1xi1> to vector<8x128xi1>
    %563 = arith.select %562, %558, %484 : vector<8x128xi1>, vector<8x128xf32>
    %c7_118 = arith.constant 7 : index
    %c0_119 = arith.constant 0 : index
    %c0_120 = arith.constant 0 : index
    %564 = vector.load %arg1[%c7_118, %c0_119, %c0_120] : memref<8x8x384xbf16, #tpu.memory_space<vmem>>, vector<1x8x384xbf16>
    %565 = vector.shape_cast %564 : vector<1x8x384xbf16> to vector<8x384xbf16>
    %c7_i32_121 = arith.constant 7 : i32
    %566 = arith.addi %10, %c7_i32_121 : i32
    %567 = arith.truncf %523 : vector<8x128xf32> to vector<8x128xbf16>
    %cst_122 = arith.constant dense<0.000000e+00> : vector<8x384xf32>
    %568 = tpu.matmul %567, %4, %cst_122 {dimension_numbers = #tpu.dot_dimension_numbers<[1], [0], [0], [1], [0, 0, 1, 1], [], []>} : vector<8x128xbf16>, vector<128x384xbf16>, vector<8x384xf32> -> vector<8x384xf32>
    %569 = arith.extf %565 : vector<8x384xbf16> to vector<8x384xf32>
    %570 = vector.extract_strided_slice %569 {offsets = [0, 0], sizes = [8, 128], strides = [1, 1]} : vector<8x384xf32> to vector<8x128xf32>
    %571 = vector.extract_strided_slice %568 {offsets = [0, 0], sizes = [8, 128], strides = [1, 1]} : vector<8x384xf32> to vector<8x128xf32>
    %572 = arith.addf %570, %571 : vector<8x128xf32>
    %573 = arith.negf %572 : vector<8x128xf32>
    %574 = math.exp %573 : vector<8x128xf32>
    %cst_123 = arith.constant 1.000000e+00 : f32
    %575 = vector.broadcast %cst_123 : f32 to vector<8x128xf32>
    %576 = arith.addf %575, %574 : vector<8x128xf32>
    %577 = arith.divf %575, %576 : vector<8x128xf32>
    %578 = vector.extract_strided_slice %569 {offsets = [0, 128], sizes = [8, 128], strides = [1, 1]} : vector<8x384xf32> to vector<8x128xf32>
    %579 = vector.extract_strided_slice %568 {offsets = [0, 128], sizes = [8, 128], strides = [1, 1]} : vector<8x384xf32> to vector<8x128xf32>
    %580 = arith.addf %578, %579 : vector<8x128xf32>
    %581 = arith.negf %580 : vector<8x128xf32>
    %582 = math.exp %581 : vector<8x128xf32>
    %cst_124 = arith.constant 1.000000e+00 : f32
    %583 = vector.broadcast %cst_124 : f32 to vector<8x128xf32>
    %584 = arith.addf %583, %582 : vector<8x128xf32>
    %585 = arith.divf %583, %584 : vector<8x128xf32>
    %586 = vector.extract_strided_slice %569 {offsets = [0, 256], sizes = [8, 128], strides = [1, 1]} : vector<8x384xf32> to vector<8x128xf32>
    %587 = vector.extract_strided_slice %568 {offsets = [0, 256], sizes = [8, 128], strides = [1, 1]} : vector<8x384xf32> to vector<8x128xf32>
    %588 = vector.broadcast %6 : vector<1x128xf32> to vector<8x128xf32>
    %589 = arith.addf %587, %588 : vector<8x128xf32>
    %590 = arith.mulf %577, %589 : vector<8x128xf32>
    %591 = arith.addf %586, %590 : vector<8x128xf32>
    %592 = math.tanh %591 : vector<8x128xf32>
    %cst_125 = arith.constant 1.000000e+00 : f32
    %593 = vector.broadcast %cst_125 : f32 to vector<8x128xf32>
    %594 = arith.subf %593, %585 : vector<8x128xf32>
    %595 = arith.mulf %594, %592 : vector<8x128xf32>
    %596 = arith.mulf %585, %523 : vector<8x128xf32>
    %597 = arith.addf %595, %596 : vector<8x128xf32>
    %598 = vector.broadcast %566 : i32 to vector<8x1xi32>
    %599 = arith.cmpi slt, %598, %3 : vector<8x1xi32>
    %600 = vector.shape_cast %599 : vector<8x1xi1> to vector<8x1xi1>
    %601 = vector.broadcast %600 : vector<8x1xi1> to vector<8x128xi1>
    %602 = arith.select %601, %597, %523 : vector<8x128xi1>, vector<8x128xf32>
    %c0_126 = arith.constant 0 : index
    %c0_127 = arith.constant 0 : index
    %c0_128 = arith.constant 0 : index
    %603 = vector.load %arg2[%c0_126, %c0_127, %c0_128] : memref<8x8x384xbf16, #tpu.memory_space<vmem>>, vector<1x8x384xbf16>
    %604 = vector.shape_cast %603 : vector<1x8x384xbf16> to vector<8x384xbf16>
    %c7_i32_129 = arith.constant 7 : i32
    %605 = arith.addi %10, %c7_i32_129 : i32
    %c7_i32_130 = arith.constant 7 : i32
    %606 = arith.subi %c7_i32_130, %605 : i32
    %607 = arith.truncf %563 : vector<8x128xf32> to vector<8x128xbf16>
    %cst_131 = arith.constant dense<0.000000e+00> : vector<8x384xf32>
    %608 = tpu.matmul %607, %5, %cst_131 {dimension_numbers = #tpu.dot_dimension_numbers<[1], [0], [0], [1], [0, 0, 1, 1], [], []>} : vector<8x128xbf16>, vector<128x384xbf16>, vector<8x384xf32> -> vector<8x384xf32>
    %609 = arith.extf %604 : vector<8x384xbf16> to vector<8x384xf32>
    %610 = vector.extract_strided_slice %609 {offsets = [0, 0], sizes = [8, 128], strides = [1, 1]} : vector<8x384xf32> to vector<8x128xf32>
    %611 = vector.extract_strided_slice %608 {offsets = [0, 0], sizes = [8, 128], strides = [1, 1]} : vector<8x384xf32> to vector<8x128xf32>
    %612 = arith.addf %610, %611 : vector<8x128xf32>
    %613 = arith.negf %612 : vector<8x128xf32>
    %614 = math.exp %613 : vector<8x128xf32>
    %cst_132 = arith.constant 1.000000e+00 : f32
    %615 = vector.broadcast %cst_132 : f32 to vector<8x128xf32>
    %616 = arith.addf %615, %614 : vector<8x128xf32>
    %617 = arith.divf %615, %616 : vector<8x128xf32>
    %618 = vector.extract_strided_slice %609 {offsets = [0, 128], sizes = [8, 128], strides = [1, 1]} : vector<8x384xf32> to vector<8x128xf32>
    %619 = vector.extract_strided_slice %608 {offsets = [0, 128], sizes = [8, 128], strides = [1, 1]} : vector<8x384xf32> to vector<8x128xf32>
    %620 = arith.addf %618, %619 : vector<8x128xf32>
    %621 = arith.negf %620 : vector<8x128xf32>
    %622 = math.exp %621 : vector<8x128xf32>
    %cst_133 = arith.constant 1.000000e+00 : f32
    %623 = vector.broadcast %cst_133 : f32 to vector<8x128xf32>
    %624 = arith.addf %623, %622 : vector<8x128xf32>
    %625 = arith.divf %623, %624 : vector<8x128xf32>
    %626 = vector.extract_strided_slice %609 {offsets = [0, 256], sizes = [8, 128], strides = [1, 1]} : vector<8x384xf32> to vector<8x128xf32>
    %627 = vector.extract_strided_slice %608 {offsets = [0, 256], sizes = [8, 128], strides = [1, 1]} : vector<8x384xf32> to vector<8x128xf32>
    %628 = vector.broadcast %7 : vector<1x128xf32> to vector<8x128xf32>
    %629 = arith.addf %627, %628 : vector<8x128xf32>
    %630 = arith.mulf %617, %629 : vector<8x128xf32>
    %631 = arith.addf %626, %630 : vector<8x128xf32>
    %632 = math.tanh %631 : vector<8x128xf32>
    %cst_134 = arith.constant 1.000000e+00 : f32
    %633 = vector.broadcast %cst_134 : f32 to vector<8x128xf32>
    %634 = arith.subf %633, %625 : vector<8x128xf32>
    %635 = arith.mulf %634, %632 : vector<8x128xf32>
    %636 = arith.mulf %625, %563 : vector<8x128xf32>
    %637 = arith.addf %635, %636 : vector<8x128xf32>
    %638 = vector.broadcast %606 : i32 to vector<8x1xi32>
    %639 = arith.cmpi slt, %638, %3 : vector<8x1xi32>
    %640 = vector.shape_cast %639 : vector<8x1xi1> to vector<8x1xi1>
    %641 = vector.broadcast %640 : vector<8x1xi1> to vector<8x128xi1>
    %642 = arith.select %641, %637, %563 : vector<8x128xi1>, vector<8x128xf32>
    %c0_135 = arith.constant 0 : index
    %c0_136 = arith.constant 0 : index
    %643 = vector.load %arg12[%c0_135, %c0_136] : memref<8x128xf32, #tpu.memory_space<vmem>>, vector<8x128xf32>
    tpu.vector_store %arg12[%c0_135, %c0_136], %602 {strides = array<i32>} : memref<8x128xf32, #tpu.memory_space<vmem>>, vector<8x128xf32>,
    %c0_137 = arith.constant 0 : index
    %c0_138 = arith.constant 0 : index
    %644 = vector.load %arg13[%c0_137, %c0_138] : memref<8x128xf32, #tpu.memory_space<vmem>>, vector<8x128xf32>
    tpu.vector_store %arg13[%c0_137, %c0_138], %642 {strides = array<i32>} : memref<8x128xf32, #tpu.memory_space<vmem>>, vector<8x128xf32>,
    %c0_i32_139 = arith.constant 0 : i32
    %645 = arith.cmpi eq, %arg0, %c0_i32_139 : i32
    %646 = arith.extui %645 : i1 to i32
    %c0_i32_140 = arith.constant 0 : i32
    %647 = arith.cmpi ne, %646, %c0_i32_140 : i32
    scf.if %647 {
      %648 = arith.truncf %642 : vector<8x128xf32> to vector<8x128xbf16>
      %649 = arith.truncf %602 : vector<8x128xf32> to vector<8x128xbf16>
      %c0_141 = arith.constant 0 : index
      %c0_142 = arith.constant 0 : index
      %650 = vector.load %arg8[%c0_141, %c0_142] : memref<128x128xbf16, #tpu.memory_space<vmem>>, vector<128x128xbf16>
      %cst_143 = arith.constant dense<0.000000e+00> : vector<8x128xf32>
      %651 = tpu.matmul %648, %650, %cst_143 {dimension_numbers = #tpu.dot_dimension_numbers<[1], [0], [0], [1], [0, 0, 1, 1], [], []>} : vector<8x128xbf16>, vector<128x128xbf16>, vector<8x128xf32> -> vector<8x128xf32>
      %c0_144 = arith.constant 0 : index
      %c0_145 = arith.constant 0 : index
      %652 = vector.load %arg9[%c0_144, %c0_145] : memref<128x128xbf16, #tpu.memory_space<vmem>>, vector<128x128xbf16>
      %cst_146 = arith.constant dense<0.000000e+00> : vector<8x128xf32>
      %653 = tpu.matmul %649, %652, %cst_146 {dimension_numbers = #tpu.dot_dimension_numbers<[1], [0], [0], [1], [0, 0, 1, 1], [], []>} : vector<8x128xbf16>, vector<128x128xbf16>, vector<8x128xf32> -> vector<8x128xf32>
      %654 = arith.addf %651, %653 : vector<8x128xf32>
      %c0_147 = arith.constant 0 : index
      %c0_148 = arith.constant 0 : index
      %655 = vector.load %arg10[%c0_147, %c0_148] : memref<1x128xf32, #tpu.memory_space<vmem>>, vector<1x128xf32>
      %656 = vector.broadcast %655 : vector<1x128xf32> to vector<8x128xf32>
      %657 = arith.addf %654, %656 : vector<8x128xf32>
      %c0_149 = arith.constant 0 : index
      %c0_150 = arith.constant 0 : index
      %658 = vector.load %arg11[%c0_149, %c0_150] : memref<8x128xf32, #tpu.memory_space<vmem>>, vector<8x128xf32>
      tpu.vector_store %arg11[%c0_149, %c0_150], %657 {strides = array<i32>} : memref<8x128xf32, #tpu.memory_space<vmem>>, vector<8x128xf32>,
    } else {
    }
    return
  }
  func.func @transform_0(%arg0: i32) -> (i32, i32, i32) {
    %c0_i32 = arith.constant 0 : i32
    %c0_i32_0 = arith.constant 0 : i32
    %c0_i32_1 = arith.constant 0 : i32
    return %arg0, %c0_i32, %c0_i32_0 : i32, i32, i32
  }
  func.func @transform_1(%arg0: i32) -> (i32, i32, i32) {
    %c0_i32 = arith.constant 0 : i32
    %0 = arith.subi %c0_i32, %arg0 : i32
    %c0_i32_0 = arith.constant 0 : i32
    %c1_i32 = arith.constant 1 : i32
    %c0_i32_1 = arith.constant 0 : i32
    return %0, %c0_i32_0, %c1_i32 : i32, i32, i32
  }
  func.func @transform_2(%arg0: i32) -> (i32, i32) {
    %c0_i32 = arith.constant 0 : i32
    %c0_i32_0 = arith.constant 0 : i32
    %c0_i32_1 = arith.constant 0 : i32
    return %c0_i32, %c0_i32_0 : i32, i32
  }
  func.func @transform_3(%arg0: i32) -> (i32, i32) {
    %c0_i32 = arith.constant 0 : i32
    %c0_i32_0 = arith.constant 0 : i32
    %c0_i32_1 = arith.constant 0 : i32
    return %c0_i32, %c0_i32_0 : i32, i32
  }
  func.func @transform_4(%arg0: i32) -> (i32, i32) {
    %c0_i32 = arith.constant 0 : i32
    %c0_i32_0 = arith.constant 0 : i32
    %c0_i32_1 = arith.constant 0 : i32
    return %c0_i32, %c0_i32_0 : i32, i32
  }
  func.func @transform_5(%arg0: i32) -> (i32, i32) {
    %c0_i32 = arith.constant 0 : i32
    %c0_i32_0 = arith.constant 0 : i32
    %c0_i32_1 = arith.constant 0 : i32
    return %c0_i32, %c0_i32_0 : i32, i32
  }
  func.func @transform_6(%arg0: i32) -> (i32, i32) {
    %c0_i32 = arith.constant 0 : i32
    %c0_i32_0 = arith.constant 0 : i32
    %c0_i32_1 = arith.constant 0 : i32
    return %c0_i32, %c0_i32_0 : i32, i32
  }
  func.func @transform_7(%arg0: i32) -> (i32, i32) {
    %c0_i32 = arith.constant 0 : i32
    %c0_i32_0 = arith.constant 0 : i32
    %c0_i32_1 = arith.constant 0 : i32
    return %c0_i32, %c0_i32_0 : i32, i32
  }
  func.func @transform_8(%arg0: i32) -> (i32, i32) {
    %c0_i32 = arith.constant 0 : i32
    %c0_i32_0 = arith.constant 0 : i32
    %c0_i32_1 = arith.constant 0 : i32
    return %c0_i32, %c0_i32_0 : i32, i32
  }
  func.func @transform_9(%arg0: i32) -> (i32, i32) {
    %c0_i32 = arith.constant 0 : i32
    %c0_i32_0 = arith.constant 0 : i32
    %c0_i32_1 = arith.constant 0 : i32
    return %c0_i32, %c0_i32_0 : i32, i32
  }
  func.func @transform_10(%arg0: i32) -> (i32, i32) {
    %c0_i32 = arith.constant 0 : i32
    %c0_i32_0 = arith.constant 0 : i32
    %c0_i32_1 = arith.constant 0 : i32
    return %c0_i32, %c0_i32_0 : i32, i32
  }
}

</mosaic_0001>

<bundles_post_ra>
// kernel: rnn_classifier_forward.2
= control target key start
LH: loop header
LB: loop body
LE: loop exit
PB: predicated region body
PF: predicated region fallthrough
CT: control target
= control target key end

     0   :  { %s1317_s1 = inlined_call_operand.vmem [shape: bf16[128,768], index: 1, kind: input, shape index: {}]   ;;  %s1318_s0 = inlined_call_operand.vmem [shape: bf16[64,128], index: 0, kind: input, shape index: {}]   ;;  %s1319_s2 = inlined_call_operand.vmem [shape: f32[1,768], index: 2, kind: input, shape index: {}]   ;;  %s1320_s3 = inlined_call_operand.vmem [shape: bf16[64,768], index: 3, kind: output, shape index: {}]  }
   0x1   :  { %v760_v0 = vld [vmem:[%s1317_s1 + $0x150] sm:$0xf]  ;;  %v831_v1 = vld [vmem:[%s1317_s1 + $0x164] sm:$0xf0]  ;;  %v828_v2 = vld [vmem:[%s1317_s1 + $0x154] sm:$0xf] }
   0x2   :  { %v761_v3 = vor.u32 %v831_v1, %v760_v0  ;;  %v762_v4 = vld [vmem:[%s1317_s1 + $0x168] sm:$0xf0]  ;;  %v736_v5 = vld [vmem:[%s1317_s1 + $0x120] sm:$0xf]  ;;  %v825_v6 = vld [vmem:[%s1317_s1 + $0x134] sm:$0xf0] }
   0x3   :  { %v765_v7 = vor.u32 %v828_v2, %v762_v4  ;;  %v822_v8 = vld [vmem:[%s1317_s1 + $0x124] sm:$0xf]  ;;  %v738_v9 = vld [vmem:[%s1317_s1 + $0x138] sm:$0xf0]  ;;  %v737_v10 = vor.u32 %v825_v6, %v736_v5  ;;  %v712_v12 = vld [vmem:[%s1317_s1 + $0xf0] sm:$0xf] }
   0x4   :  { %348 = vmatpush.bf16.msra.mxu0 %v761_v3  ;;  %834 = vmatpush.bf16.msra.mxu2 %v761_v3  ;;  %v741_v11 = vor.u32 %v822_v8, %v738_v9  ;;  %v819_v13 = vld [vmem:[%s1317_s1 + $0x104] sm:$0xf0]  ;;  %v816_v14 = vld [vmem:[%s1317_s1 + $0xf4] sm:$0xf]  ;;  %v714_v15 = vld [vmem:[%s1317_s1 + $0x108] sm:$0xf0] }
   0x5   :  { %377 = vmatpush.bf16.msra.mxu1 %v765_v7  ;;  %842 = vmatpush.bf16.msra.mxu3 %v765_v7  ;;  %v713_v16 = vor.u32 %v819_v13, %v712_v12  ;;  %v717_v17 = vor.u32 %v816_v14, %v714_v15  ;;  %v688_v18 = vld [vmem:[%s1317_s1 + $0xc0] sm:$0xf]  ;;  %v813_v19 = vld [vmem:[%s1317_s1 + $0xd4] sm:$0xf0]  ;;  %v810_v20 = vld [vmem:[%s1317_s1 + $0xc4] sm:$0xf] }
   0x6   :  { %v690_v21 = vld [vmem:[%s1317_s1 + $0xd8] sm:$0xf0]  ;;  %v689_v22 = vor.u32 %v813_v19, %v688_v18  ;;  %v664_v24 = vld [vmem:[%s1317_s1 + $0x90] sm:$0xf]  ;;  %v807_v25 = vld [vmem:[%s1317_s1 + $0xa4] sm:$0xf0] }
   0x7   :  { %v693_v23 = vor.u32 %v810_v20, %v690_v21  ;;  %v804_v26 = vld [vmem:[%s1317_s1 + $0x94] sm:$0xf]  ;;  %v666_v27 = vld [vmem:[%s1317_s1 + $0xa8] sm:$0xf0]  ;;  %v665_v28 = vor.u32 %v807_v25, %v664_v24  ;;  %v640_v30 = vld [vmem:[%s1317_s1 + $0x60] sm:$0xf] }
   0x8   :  { %349 = vmatpush.bf16.msra.mxu0 %v737_v10  ;;  %835 = vmatpush.bf16.msra.mxu2 %v737_v10  ;;  %v669_v29 = vor.u32 %v804_v26, %v666_v27  ;;  %v801_v31 = vld [vmem:[%s1317_s1 + $0x74] sm:$0xf0]  ;;  %v798_v32 = vld [vmem:[%s1317_s1 + $0x64] sm:$0xf]  ;;  %v642_v33 = vld [vmem:[%s1317_s1 + $0x78] sm:$0xf0] }
   0x9   :  { %378 = vmatpush.bf16.msra.mxu1 %v741_v11  ;;  %843 = vmatpush.bf16.msra.mxu3 %v741_v11  ;;  %v641_v34 = vor.u32 %v801_v31, %v640_v30  ;;  %v645_v35 = vor.u32 %v798_v32, %v642_v33  ;;  %v616_v36 = vld [vmem:[%s1317_s1 + $0x30] sm:$0xf]  ;;  %v795_v37 = vld [vmem:[%s1317_s1 + $0x44] sm:$0xf0]  ;;  %v792_v38 = vld [vmem:[%s1317_s1 + $0x34] sm:$0xf] }
   0xa   :  { %v618_v39 = vld [vmem:[%s1317_s1 + $0x48] sm:$0xf0]  ;;  %v617_v40 = vor.u32 %v795_v37, %v616_v36  ;;  %v592_v42 = vld [vmem:[%s1317_s1] sm:$0xf]  ;;  %v789_v43 = vld [vmem:[%s1317_s1 + $0x14] sm:$0xf0] }
   0xb   :  { %v621_v41 = vor.u32 %v792_v38, %v618_v39  ;;  %v786_v44 = vld [vmem:[%s1317_s1 + $0x4] sm:$0xf]  ;;  %v594_v45 = vld [vmem:[%s1317_s1 + $0x18] sm:$0xf0]  ;;  %v768_v46 = vld [vmem:[%s1317_s1 + $0x158] sm:$0xf]  ;;  %v593_v50 = vor.u32 %v789_v43, %v592_v42 }
   0xc   :  { %350 = vmatpush.bf16.msra.mxu0 %v713_v16  ;;  %836 = vmatpush.bf16.msra.mxu2 %v713_v16  ;;  %v832_v47 = vld [vmem:[%s1317_s1 + $0x16c] sm:$0xf0]  ;;  %v829_v48 = vld [vmem:[%s1317_s1 + $0x15c] sm:$0xf]  ;;  %v770_v49 = vld [vmem:[%s1317_s1 + $0x170] sm:$0xf0]  ;;  %v597_v51 = vor.u32 %v786_v44, %v594_v45 }
   0xd   :  { %379 = vmatpush.bf16.msra.mxu1 %v717_v17  ;;  %844 = vmatpush.bf16.msra.mxu3 %v717_v17  ;;  %v981_v52 = vld [vmem:[%s1318_s0] sm:$0xff]  ;;  %v986_v53 = vld [vmem:[%s1318_s0 + $0x10] sm:$0xff]  ;;  %v833_v55 = vld [vmem:[%s1317_s1 + $0x174] sm:$0xf0]  ;;  %v769_v56 = vor.u32 %v832_v47, %v768_v46  ;;  %v773_v57 = vor.u32 %v829_v48, %v770_v49 }
   0xe   :  { %v776_v54 = vld [vmem:[%s1317_s1 + $0x160] sm:$0xf]  ;;  %v830_v58 = vld [vmem:[%s1317_s1 + $0x164] sm:$0xf]  ;;  %v778_v59 = vld [vmem:[%s1317_s1 + $0x178] sm:$0xf0] }
   0xf   :  { %v744_v60 = vld [vmem:[%s1317_s1 + $0x128] sm:$0xf]  ;;  %v826_v61 = vld [vmem:[%s1317_s1 + $0x13c] sm:$0xf0]  ;;  %v823_v62 = vld [vmem:[%s1317_s1 + $0x12c] sm:$0xf]  ;;  %v777_v0 = vor.u32 %v833_v55, %v776_v54  ;;  %v781_v1 = vor.u32 %v830_v58, %v778_v59 }
  0x10   :  { %351 = vmatpush.bf16.msra.mxu0 %v689_v22  ;;  %837 = vmatpush.bf16.msra.mxu2 %v689_v22  ;;  %v746_v63 = vld [vmem:[%s1317_s1 + $0x140] sm:$0xf0]  ;;  %v752_v2 = vld [vmem:[%s1317_s1 + $0x130] sm:$0xf]  ;;  %v827_v3 = vld [vmem:[%s1317_s1 + $0x144] sm:$0xf0]  ;;  %v745_v4 = vor.u32 %v826_v61, %v744_v60 }
  0x11   :  { %380 = vmatpush.bf16.msra.mxu1 %v693_v23  ;;  %845 = vmatpush.bf16.msra.mxu3 %v693_v23  ;;  %v749_v5 = vor.u32 %v823_v62, %v746_v63  ;;  %v824_v6 = vld [vmem:[%s1317_s1 + $0x134] sm:$0xf]  ;;  %v754_v7 = vld [vmem:[%s1317_s1 + $0x148] sm:$0xf0]  ;;  %v720_v8 = vld [vmem:[%s1317_s1 + $0xf8] sm:$0xf]  ;;  %v753_v12 = vor.u32 %v827_v3, %v752_v2 }
  0x12   :  { %v820_v9 = vld [vmem:[%s1317_s1 + $0x10c] sm:$0xf0]  ;;  %v817_v10 = vld [vmem:[%s1317_s1 + $0xfc] sm:$0xf]  ;;  %v722_v11 = vld [vmem:[%s1317_s1 + $0x110] sm:$0xf0]  ;;  %v757_v13 = vor.u32 %v824_v6, %v754_v7 }
  0x13   :  { %v728_v14 = vld [vmem:[%s1317_s1 + $0x100] sm:$0xf]  ;;  %v821_v15 = vld [vmem:[%s1317_s1 + $0x114] sm:$0xf0]  ;;  %v721_v16 = vor.u32 %v820_v9, %v720_v8  ;;  %v725_v17 = vor.u32 %v817_v10, %v722_v11  ;;  %v818_v18 = vld [vmem:[%s1317_s1 + $0x104] sm:$0xf] }
  0x14   :  { %352 = vmatpush.bf16.msra.mxu0 %v665_v28  ;;  %838 = vmatpush.bf16.msra.mxu2 %v665_v28  ;;  %v730_v19 = vld [vmem:[%s1317_s1 + $0x118] sm:$0xf0]  ;;  %v696_v20 = vld [vmem:[%s1317_s1 + $0xc8] sm:$0xf]  ;;  %v814_v21 = vld [vmem:[%s1317_s1 + $0xdc] sm:$0xf0]  ;;  %v729_v24 = vor.u32 %v821_v15, %v728_v14 }
  0x15   :  { %381 = vmatpush.bf16.msra.mxu1 %v669_v29  ;;  %846 = vmatpush.bf16.msra.mxu3 %v669_v29  ;;  %v811_v22 = vld [vmem:[%s1317_s1 + $0xcc] sm:$0xf]  ;;  %v698_v23 = vld [vmem:[%s1317_s1 + $0xe0] sm:$0xf0]  ;;  %v733_v25 = vor.u32 %v818_v18, %v730_v19  ;;  %v704_v26 = vld [vmem:[%s1317_s1 + $0xd0] sm:$0xf]  ;;  %v697_v28 = vor.u32 %v814_v21, %v696_v20 }
  0x16   :  { %v815_v27 = vld [vmem:[%s1317_s1 + $0xe4] sm:$0xf0]  ;;  %v701_v29 = vor.u32 %v811_v22, %v698_v23  ;;  %v812_v30 = vld [vmem:[%s1317_s1 + $0xd4] sm:$0xf]  ;;  %v706_v31 = vld [vmem:[%s1317_s1 + $0xe8] sm:$0xf0] }
  0x17   :  { %v672_v32 = vld [vmem:[%s1317_s1 + $0x98] sm:$0xf]  ;;  %v808_v33 = vld [vmem:[%s1317_s1 + $0xac] sm:$0xf0]  ;;  %v705_v36 = vor.u32 %v815_v27, %v704_v26  ;;  %v709_v37 = vor.u32 %v812_v30, %v706_v31  ;;  %v1091_v38 = vld [vmem:[%s1318_s0 + $0x8] sm:$0xff] }
  0x18   :  { %353 = vmatpush.bf16.msra.mxu0 %v641_v34  ;;  %839 = vmatpush.bf16.msra.mxu2 %v641_v34  ;;  %v805_v34 = vld [vmem:[%s1317_s1 + $0x9c] sm:$0xf]  ;;  %v673_v42 = vor.u32 %v808_v33, %v672_v32  ;;  %v806_v44 = vld [vmem:[%s1317_s1 + $0xa4] sm:$0xf]  ;;  %v648_v46 = vld [vmem:[%s1317_s1 + $0x68] sm:$0xf] }
  0x19   :  { %382 = vmatpush.bf16.msra.mxu1 %v645_v35  ;;  %847 = vmatpush.bf16.msra.mxu3 %v645_v35  ;;  %v674_v35 = vld [vmem:[%s1317_s1 + $0xb0] sm:$0xf0]  ;;  %v1096_v39 = vld [vmem:[%s1318_s0 + $0x18] sm:$0xff]  ;;  %v802_v47 = vld [vmem:[%s1317_s1 + $0x7c] sm:$0xf0] }
  0x1a   :  { %v677_v43 = vor.u32 %v805_v34, %v674_v35  ;;  %v682_v45 = vld [vmem:[%s1317_s1 + $0xb8] sm:$0xf0]  ;;  %v799_v48 = vld [vmem:[%s1317_s1 + $0x6c] sm:$0xf]  ;;  %v650_v49 = vld [vmem:[%s1317_s1 + $0x80] sm:$0xf0] }
  0x1b   :  { %v656_v54 = vld [vmem:[%s1317_s1 + $0x70] sm:$0xf]  ;;  %v803_v55 = vld [vmem:[%s1317_s1 + $0x84] sm:$0xf0]  ;;  %v800_v58 = vld [vmem:[%s1317_s1 + $0x74] sm:$0xf] }
  0x1c   :  { %354 = vmatpush.bf16.msra.mxu0 %v617_v40  ;;  %840 = vmatpush.bf16.msra.mxu2 %v617_v40  ;;  %v680_v40 = vld [vmem:[%s1317_s1 + $0xa0] sm:$0xf]  ;;  %v658_v59 = vld [vmem:[%s1317_s1 + $0x88] sm:$0xf0]  ;;  %v624_v60 = vld [vmem:[%s1317_s1 + $0x38] sm:$0xf] }
  0x1d   :  { %383 = vmatpush.bf16.msra.mxu1 %v621_v41  ;;  %848 = vmatpush.bf16.msra.mxu3 %v621_v41  ;;  %v809_v41 = vld [vmem:[%s1317_s1 + $0xb4] sm:$0xf0]  ;;  %v796_v61 = vld [vmem:[%s1317_s1 + $0x4c] sm:$0xf0]  ;;  %v793_v62 = vld [vmem:[%s1317_s1 + $0x3c] sm:$0xf] }
  0x1e   :  { %v626_v63 = vld [vmem:[%s1317_s1 + $0x50] sm:$0xf0]  ;;  %v632_v2 = vld [vmem:[%s1317_s1 + $0x40] sm:$0xf]  ;;  %v797_v3 = vld [vmem:[%s1317_s1 + $0x54] sm:$0xf0] }
  0x1f   :  { %v794_v6 = vld [vmem:[%s1317_s1 + $0x44] sm:$0xf]  ;;  %v634_v7 = vld [vmem:[%s1317_s1 + $0x58] sm:$0xf0]  ;;  %v600_v8 = vld [vmem:[%s1317_s1 + $0x8] sm:$0xf] }
  0x20   :  { %355 = vmatpush.bf16.msra.mxu0 %v593_v50  ;;  %841 = vmatpush.bf16.msra.mxu2 %v593_v50  ;;  %v681_v50 = vor.u32 %v809_v41, %v680_v40  ;;  %v790_v9 = vld [vmem:[%s1317_s1 + $0x1c] sm:$0xf0]  ;;  %v787_v10 = vld [vmem:[%s1317_s1 + $0xc] sm:$0xf]  ;;  %v602_v11 = vld [vmem:[%s1317_s1 + $0x20] sm:$0xf0] }
  0x21   :  { %384 = vmatpush.bf16.msra.mxu1 %v597_v51  ;;  %849 = vmatpush.bf16.msra.mxu3 %v597_v51  ;;  %v685_v51 = vor.u32 %v806_v44, %v682_v45  ;;  %v608_v14 = vld [vmem:[%s1317_s1 + $0x10] sm:$0xf]  ;;  %v601_v15 = vor.u32 %v790_v9, %v600_v8  ;;  %v788_v18 = vld [vmem:[%s1317_s1 + $0x14] sm:$0xf]  ;;  %v610_v19 = vld [vmem:[%s1317_s1 + $0x28] sm:$0xf0] }
  0x22   :  { %v613_v21 = vor.u32 %v788_v18, %v610_v19 }
  0x23   :  { %356 = vmatmul.bf16.vlgmr.msra.gmra.mxu0 %v981_v52  ;;  %366 = vmatmul.bf16.vlgmr.msra.gmra.mxu2 %v986_v53 }
  0x24   :  { %406 = vmatpush.bf16.msrb.mxu2 %v769_v56  ;;  %385 = vmatmul.bf16.vlgmr.msra.gmra.mxu1 %v981_v52  ;;  %v649_v56 = vor.u32 %v802_v47, %v648_v46 }
  0x25   :  { %435 = vmatpush.bf16.msrb.mxu3 %v773_v57  ;;  %464 = vmatpush.bf16.msrb.mxu0 %v777_v0  ;;  %v653_v57 = vor.u32 %v799_v48, %v650_v49  ;;  %v657_v0 = vor.u32 %v803_v55, %v656_v54 }
  0x26   :  { %395 = vmatmul.bf16.vlgmr.msra.gmra.mxu3 %v986_v53  ;;  %493 = vmatpush.bf16.msrb.mxu1 %v781_v1  ;;  %v661_v1 = vor.u32 %v800_v58, %v658_v59 }
  0x28   :  { %407 = vmatpush.bf16.msrb.mxu2 %v745_v4  ;;  %v625_v4 = vor.u32 %v796_v61, %v624_v60 }
  0x29   :  { %436 = vmatpush.bf16.msrb.mxu3 %v749_v5  ;;  %465 = vmatpush.bf16.msrb.mxu0 %v753_v12  ;;  %v629_v5 = vor.u32 %v793_v62, %v626_v63  ;;  %v633_v12 = vor.u32 %v797_v3, %v632_v2 }
  0x2a   :  { %494 = vmatpush.bf16.msrb.mxu1 %v757_v13  ;;  %v637_v13 = vor.u32 %v794_v6, %v634_v7 }
  0x2c   :  { %408 = vmatpush.bf16.msrb.mxu2 %v721_v16  ;;  %v605_v16 = vor.u32 %v787_v10, %v602_v11 }
  0x2d   :  { %437 = vmatpush.bf16.msrb.mxu3 %v725_v17  ;;  %466 = vmatpush.bf16.msrb.mxu0 %v729_v24  ;;  %v791_v17 = vld [vmem:[%s1317_s1 + $0x24] sm:$0xf0] }
  0x2e   :  { %495 = vmatpush.bf16.msrb.mxu1 %v733_v25  ;;  %v609_v20 = vor.u32 %v791_v17, %v608_v14 }
  0x30   :  { %409 = vmatpush.bf16.msrb.mxu2 %v697_v28 }
  0x31   :  { %438 = vmatpush.bf16.msrb.mxu3 %v701_v29  ;;  %467 = vmatpush.bf16.msrb.mxu0 %v705_v36 }
  0x32   :  { %496 = vmatpush.bf16.msrb.mxu1 %v709_v37 }
  0x33   :  { %361 = vmatmul.bf16.gmra.mxu0 %v1091_v38  ;;  %371 = vmatmul.bf16.gmra.mxu2 %v1096_v39 }
  0x34   :  { %410 = vmatpush.bf16.msrb.mxu2 %v673_v42  ;;  %390 = vmatmul.bf16.gmra.mxu1 %v1091_v38 }
  0x35   :  { %439 = vmatpush.bf16.msrb.mxu3 %v677_v43  ;;  %468 = vmatpush.bf16.msrb.mxu0 %v681_v50 }
  0x36   :  { %400 = vmatmul.bf16.gmra.mxu3 %v1096_v39  ;;  %497 = vmatpush.bf16.msrb.mxu1 %v685_v51 }
  0x38   :  { %411 = vmatpush.bf16.msrb.mxu2 %v649_v56 }
  0x39   :  { %440 = vmatpush.bf16.msrb.mxu3 %v653_v57  ;;  %469 = vmatpush.bf16.msrb.mxu0 %v657_v0 }
  0x3a   :  { %498 = vmatpush.bf16.msrb.mxu1 %v661_v1 }
  0x3c   :  { %412 = vmatpush.bf16.msrb.mxu2 %v625_v4 }
  0x3d   :  { %441 = vmatpush.bf16.msrb.mxu3 %v629_v5  ;;  %470 = vmatpush.bf16.msrb.mxu0 %v633_v12 }
  0x3e   :  { %499 = vmatpush.bf16.msrb.mxu1 %v637_v13 }
  0x40   :  { %413 = vmatpush.bf16.msrb.mxu2 %v601_v15 }
  0x41   :  { %442 = vmatpush.bf16.msrb.mxu3 %v605_v16  ;;  %471 = vmatpush.bf16.msrb.mxu0 %v609_v20 }
  0x42   :  { %500 = vmatpush.bf16.msrb.mxu1 %v613_v21 }
  0x43   :  { %414 = vmatmul.bf16.vlgmr.msrb.gmra.mxu2 %v981_v52 }
  0x44   :  { %472 = vmatmul.bf16.vlgmr.msrb.gmra.mxu0 %v981_v52 }
  0x45   :  { %501 = vmatmul.bf16.vlgmr.msrb.gmra.mxu1 %v981_v52 }
  0x46   :  { %443 = vmatmul.bf16.vlgmr.msrb.gmra.mxu3 %v981_v52  ;;  %v70_v52 = vld [vmem:[%s1319_s2] sm:$0x3f] }
  0x47   :  { %v72_v22 = vperm.slane %v70_v52, 0  ;;  %v73_v23 = vperm.slane %v70_v52, 1  ;;  %v1226_v61 = vperm.slane %v70_v52, 4  ;;  %v1228_v0 = vperm.slane %v70_v52, 5 }
  0x48   :  { %v1232_v7 = vperm.slane %v70_v52, 2  ;;  %v1237_v8 = vperm.slane %v70_v52, 3 }
  0x53   :  { %419 = vmatmul.bf16.gmra.mxu2 %v1091_v38 }
  0x54   :  { %477 = vmatmul.bf16.gmra.mxu0 %v1091_v38 }
  0x55   :  { %506 = vmatmul.bf16.gmra.mxu1 %v1091_v38 }
  0x56   :  { %448 = vmatmul.bf16.gmra.mxu3 %v1091_v38 }
  0x63   :  { %424 = vmatmul.bf16.gmra.mxu2 %v986_v53 }
  0x64   :  { %482 = vmatmul.bf16.gmra.mxu0 %v986_v53 }
  0x65   :  { %511 = vmatmul.bf16.gmra.mxu1 %v986_v53 }
  0x66   :  { %453 = vmatmul.bf16.gmra.mxu3 %v986_v53 }
  0x73   :  { %429 = vmatmul.bf16.gmra.mxu2 %v1096_v39 }
  0x74   :  { %487 = vmatmul.bf16.gmra.mxu0 %v1096_v39 }
  0x75   :  { %516 = vmatmul.bf16.gmra.mxu1 %v1096_v39 }
  0x76   :  { %458 = vmatmul.bf16.gmra.mxu3 %v1096_v39 }
  0xa0   :  { %v357_v24 = vpop.f32.mrf.mxu0 }
  0xa1   :  { %v358_v25 = vadd.f32 %v357_v24, %v72_v22  ;;  %v386_v26 = vpop.f32.mrf.mxu1 }
  0xa2   :  { %v387_v27 = vadd.f32 %v386_v26, %v73_v23 }
  0xa4   :  { %v522_v28 = vpack.c.bf16 %v387_v27, %v358_v25 }
  0xa6   :  { %546 = vst [vmem:[%s1320_s3] sm:$0xff] %v522_v28  ;;  %v367_v53 = vpop.f32.mrf.mxu2 }
  0xa7   :  { %v368_v29 = vadd.f32 %v367_v53, %v72_v22 }
  0xa8   :  { %v359_v32 = vpop.f32.mrf.mxu0 }
  0xa9   :  { %v396_v30 = vpop.f32.mrf.mxu3  ;;  %v360_v33 = vadd.f32 %v359_v32, %v72_v22  ;;  %v388_v34 = vpop.f32.mrf.mxu1 }
  0xaa   :  { %v397_v31 = vadd.f32 %v396_v30, %v73_v23  ;;  %v389_v36 = vadd.f32 %v388_v34, %v73_v23 }
  0xac   :  { %v534_v35 = vpack.c.bf16 %v397_v31, %v368_v29  ;;  %v525_v37 = vpack.c.bf16 %v389_v36, %v360_v33 }
  0xae   :  { %558 = vst [vmem:[%s1320_s3 + $0x60] sm:$0xff] %v534_v35  ;;  %v369_v38 = vpop.f32.mrf.mxu2 }
  0xaf   :  { %549 = vst [vmem:[%s1320_s3 + $0x18] sm:$0xff] %v525_v37  ;;  %v370_v39 = vadd.f32 %v369_v38, %v72_v22 }
  0xb0   :  { %v362_v42 = vpop.f32.mrf.mxu0 }
  0xb1   :  { %v398_v40 = vpop.f32.mrf.mxu3  ;;  %v363_v43 = vadd.f32 %v362_v42, %v72_v22  ;;  %v391_v44 = vpop.f32.mrf.mxu1 }
  0xb2   :  { %v399_v41 = vadd.f32 %v398_v40, %v73_v23  ;;  %v392_v46 = vadd.f32 %v391_v44, %v73_v23 }
  0xb4   :  { %v537_v45 = vpack.c.bf16 %v399_v41, %v370_v39  ;;  %v528_v47 = vpack.c.bf16 %v392_v46, %v363_v43 }
  0xb6   :  { %561 = vst [vmem:[%s1320_s3 + $0x78] sm:$0xff] %v537_v45  ;;  %v372_v48 = vpop.f32.mrf.mxu2 }
  0xb7   :  { %552 = vst [vmem:[%s1320_s3 + $0x30] sm:$0xff] %v528_v47  ;;  %v373_v49 = vadd.f32 %v372_v48, %v72_v22 }
  0xb8   :  { %v364_v54 = vpop.f32.mrf.mxu0 }
  0xb9   :  { %v401_v50 = vpop.f32.mrf.mxu3  ;;  %v365_v55 = vadd.f32 %v364_v54, %v72_v22  ;;  %v393_v56 = vpop.f32.mrf.mxu1 }
  0xba   :  { %v402_v51 = vadd.f32 %v401_v50, %v73_v23  ;;  %v394_v58 = vadd.f32 %v393_v56, %v73_v23 }
  0xbc   :  { %v540_v57 = vpack.c.bf16 %v402_v51, %v373_v49  ;;  %v531_v59 = vpack.c.bf16 %v394_v58, %v365_v55 }
  0xbe   :  { %564 = vst [vmem:[%s1320_s3 + $0x90] sm:$0xff] %v540_v57  ;;  %v374_v60 = vpop.f32.mrf.mxu2 }
  0xbf   :  { %555 = vst [vmem:[%s1320_s3 + $0x48] sm:$0xff] %v531_v59  ;;  %v375_v62 = vadd.f32 %v374_v60, %v72_v22 }
  0xc1   :  { %v403_v63 = vpop.f32.mrf.mxu3  ;;  %v473_v2 = vpop.f32.mrf.mxu0 }
  0xc2   :  { %v404_v1 = vadd.f32 %v403_v63, %v73_v23  ;;  %v474_v4 = vadd.f32 %v473_v2, %v1226_v61  ;;  %v502_v5 = vpop.f32.mrf.mxu1 }
  0xc3   :  { %v503_v6 = vadd.f32 %v502_v5, %v1228_v0 }
  0xc4   :  { %v543_v3 = vpack.c.bf16 %v404_v1, %v375_v62 }
  0xc5   :  { %v524_v9 = vpack.c.bf16 %v503_v6, %v474_v4 }
  0xc6   :  { %567 = vst [vmem:[%s1320_s3 + $0xa8] sm:$0xff] %v543_v3  ;;  %v415_v10 = vpop.f32.mrf.mxu2 }
  0xc7   :  { %548 = vst [vmem:[%s1320_s3 + $0x10] sm:$0xff] %v524_v9  ;;  %v416_v11 = vadd.f32 %v415_v10, %v1232_v7 }
  0xc9   :  { %v444_v12 = vpop.f32.mrf.mxu3  ;;  %v475_v14 = vpop.f32.mrf.mxu0 }
  0xca   :  { %v445_v13 = vadd.f32 %v444_v12, %v1237_v8  ;;  %v476_v16 = vadd.f32 %v475_v14, %v1226_v61  ;;  %v504_v17 = vpop.f32.mrf.mxu1 }
  0xcb   :  { %v505_v18 = vadd.f32 %v504_v17, %v1228_v0 }
  0xcc   :  { %v523_v15 = vpack.c.bf16 %v445_v13, %v416_v11 }
  0xcd   :  { %v527_v19 = vpack.c.bf16 %v505_v18, %v476_v16 }
  0xce   :  { %547 = vst [vmem:[%s1320_s3 + $0x8] sm:$0xff] %v523_v15  ;;  %v417_v20 = vpop.f32.mrf.mxu2 }
  0xcf   :  { %551 = vst [vmem:[%s1320_s3 + $0x28] sm:$0xff] %v527_v19  ;;  %v418_v21 = vadd.f32 %v417_v20, %v1232_v7 }
  0xd1   :  { %v446_v52 = vpop.f32.mrf.mxu3  ;;  %v478_v23 = vpop.f32.mrf.mxu0 }
  0xd2   :  { %v447_v22 = vadd.f32 %v446_v52, %v1237_v8  ;;  %v479_v25 = vadd.f32 %v478_v23, %v1226_v61  ;;  %v507_v26 = vpop.f32.mrf.mxu1 }
  0xd3   :  { %v508_v27 = vadd.f32 %v507_v26, %v1228_v0 }
  0xd4   :  { %v526_v24 = vpack.c.bf16 %v447_v22, %v418_v21 }
  0xd5   :  { %v530_v28 = vpack.c.bf16 %v508_v27, %v479_v25 }
  0xd6   :  { %550 = vst [vmem:[%s1320_s3 + $0x20] sm:$0xff] %v526_v24  ;;  %v420_v53 = vpop.f32.mrf.mxu2 }
  0xd7   :  { %554 = vst [vmem:[%s1320_s3 + $0x40] sm:$0xff] %v530_v28  ;;  %v421_v29 = vadd.f32 %v420_v53, %v1232_v7 }
  0xd9   :  { %v449_v30 = vpop.f32.mrf.mxu3  ;;  %v480_v32 = vpop.f32.mrf.mxu0 }
  0xda   :  { %v450_v31 = vadd.f32 %v449_v30, %v1237_v8  ;;  %v481_v34 = vadd.f32 %v480_v32, %v1226_v61  ;;  %v509_v35 = vpop.f32.mrf.mxu1 }
  0xdb   :  { %v510_v36 = vadd.f32 %v509_v35, %v1228_v0 }
  0xdc   :  { %v529_v33 = vpack.c.bf16 %v450_v31, %v421_v29 }
  0xdd   :  { %v533_v37 = vpack.c.bf16 %v510_v36, %v481_v34 }
  0xde   :  { %553 = vst [vmem:[%s1320_s3 + $0x38] sm:$0xff] %v529_v33  ;;  %v422_v38 = vpop.f32.mrf.mxu2 }
  0xdf   :  { %557 = vst [vmem:[%s1320_s3 + $0x58] sm:$0xff] %v533_v37  ;;  %v423_v39 = vadd.f32 %v422_v38, %v1232_v7 }
  0xe1   :  { %v451_v40 = vpop.f32.mrf.mxu3  ;;  %v483_v42 = vpop.f32.mrf.mxu0 }
  0xe2   :  { %v452_v41 = vadd.f32 %v451_v40, %v1237_v8  ;;  %v484_v44 = vadd.f32 %v483_v42, %v1226_v61  ;;  %v512_v45 = vpop.f32.mrf.mxu1 }
  0xe3   :  { %v513_v46 = vadd.f32 %v512_v45, %v1228_v0 }
  0xe4   :  { %v532_v43 = vpack.c.bf16 %v452_v41, %v423_v39 }
  0xe5   :  { %v536_v47 = vpack.c.bf16 %v513_v46, %v484_v44 }
  0xe6   :  { %556 = vst [vmem:[%s1320_s3 + $0x50] sm:$0xff] %v532_v43  ;;  %v425_v48 = vpop.f32.mrf.mxu2 }
  0xe7   :  { %560 = vst [vmem:[%s1320_s3 + $0x70] sm:$0xff] %v536_v47  ;;  %v426_v49 = vadd.f32 %v425_v48, %v1232_v7 }
  0xe9   :  { %v454_v50 = vpop.f32.mrf.mxu3  ;;  %v485_v54 = vpop.f32.mrf.mxu0 }
  0xea   :  { %v455_v51 = vadd.f32 %v454_v50, %v1237_v8  ;;  %v486_v56 = vadd.f32 %v485_v54, %v1226_v61  ;;  %v514_v57 = vpop.f32.mrf.mxu1 }
  0xeb   :  { %v515_v58 = vadd.f32 %v514_v57, %v1228_v0 }
  0xec   :  { %v535_v55 = vpack.c.bf16 %v455_v51, %v426_v49 }
  0xed   :  { %v539_v59 = vpack.c.bf16 %v515_v58, %v486_v56 }
  0xee   :  { %559 = vst [vmem:[%s1320_s3 + $0x68] sm:$0xff] %v535_v55  ;;  %v427_v60 = vpop.f32.mrf.mxu2 }
  0xef   :  { %563 = vst [vmem:[%s1320_s3 + $0x88] sm:$0xff] %v539_v59  ;;  %v428_v62 = vadd.f32 %v427_v60, %v1232_v7 }
  0xf1   :  { %v456_v63 = vpop.f32.mrf.mxu3  ;;  %v488_v2 = vpop.f32.mrf.mxu0 }
  0xf2   :  { %v457_v1 = vadd.f32 %v456_v63, %v1237_v8  ;;  %v489_v4 = vadd.f32 %v488_v2, %v1226_v61  ;;  %v517_v5 = vpop.f32.mrf.mxu1 }
  0xf3   :  { %v518_v6 = vadd.f32 %v517_v5, %v1228_v0 }
  0xf4   :  { %v538_v3 = vpack.c.bf16 %v457_v1, %v428_v62 }
  0xf5   :  { %v542_v9 = vpack.c.bf16 %v518_v6, %v489_v4 }
  0xf6   :  { %562 = vst [vmem:[%s1320_s3 + $0x80] sm:$0xff] %v538_v3  ;;  %v430_v10 = vpop.f32.mrf.mxu2 }
  0xf7   :  { %566 = vst [vmem:[%s1320_s3 + $0xa0] sm:$0xff] %v542_v9  ;;  %v431_v11 = vadd.f32 %v430_v10, %v1232_v7 }
  0xf9   :  { %v459_v12 = vpop.f32.mrf.mxu3  ;;  %v490_v14 = vpop.f32.mrf.mxu0 }
  0xfa   :  { %v460_v13 = vadd.f32 %v459_v12, %v1237_v8  ;;  %v491_v16 = vadd.f32 %v490_v14, %v1226_v61  ;;  %v519_v17 = vpop.f32.mrf.mxu1 }
  0xfb   :  { %v520_v18 = vadd.f32 %v519_v17, %v1228_v0 }
  0xfc   :  { %v541_v15 = vpack.c.bf16 %v460_v13, %v431_v11 }
  0xfd   :  { %v545_v19 = vpack.c.bf16 %v520_v18, %v491_v16 }
  0xfe   :  { %565 = vst [vmem:[%s1320_s3 + $0x98] sm:$0xff] %v541_v15  ;;  %v432_v20 = vpop.f32.mrf.mxu2 }
  0xff   :  { %569 = vst [vmem:[%s1320_s3 + $0xb8] sm:$0xff] %v545_v19  ;;  %v433_v21 = vadd.f32 %v432_v20, %v1232_v7 }
 0x101   :  { %v461_v52 = vpop.f32.mrf.mxu3 }
 0x102   :  { %v462_v22 = vadd.f32 %v461_v52, %v1237_v8 }
 0x104   :  { %v544_v23 = vpack.c.bf16 %v462_v22, %v433_v21 }
 0x106   :  { %568 = vst [vmem:[%s1320_s3 + $0xb0] sm:$0xff] %v544_v23 }

// kernel: rnn_classifier_forward.3
= control target key start
LH: loop header
LB: loop body
LE: loop exit
PB: predicated region body
PF: predicated region fallthrough
CT: control target
= control target key end

     0   :  { %s4183_s0 = inlined_call_operand.vmem [shape: bf16[8,8,768], index: 0, kind: input, shape index: {}, may-alias: {0,1}]   ;;  %s4184_s1 = inlined_call_operand.vmem [shape: bf16[8,8,768], index: 1, kind: input, shape index: {}, may-alias: {0,1}]   ;;  %s4185_s2 = inlined_call_operand.vmem [shape: bf16[128,384], index: 2, kind: input, shape index: {}]   ;;  %s4186_s3 = inlined_call_operand.vmem [shape: bf16[128,384], index: 3, kind: input, shape index: {}]   ;;  %s4187_s4 = inlined_call_operand.vmem [shape: f32[1,128], index: 4, kind: input, shape index: {}]   ;;  %s4188_s5 = inlined_call_operand.vmem [shape: f32[1,128], index: 5, kind: input, shape index: {}]   ;;  %s4189_s6 = inlined_call_operand.vmem [shape: s32[8,1], index: 6, kind: input, shape index: {}]   ;;  %s4190_s7 = inlined_call_operand.vmem [shape: bf16[128,128], index: 7, kind: input, shape index: {}]   ;;  %s4191_s8 = inlined_call_operand.vmem [shape: bf16[128,128], index: 8, kind: input, shape index: {}]   ;;  %s4192_s9 = inlined_call_operand.vmem [shape: f32[1,128], index: 9, kind: input, shape index: {}]   ;;  %s4193_s10 = inlined_call_operand.vmem [shape: f32[8,128], index: 10, kind: output, shape index: {}]  }
   0x1   :  { %v2446_v0 = vld [vmem:[%s4185_s2 + $0xa8] sm:$0xf]  ;;  %v2686_v1 = vld [vmem:[%s4185_s2 + $0xb0] sm:$0xf0]  ;;  %v2685_v5 = vld [vmem:[%s4185_s2 + $0xac] sm:$0xf] }
   0x2   :  { %v2545_v2 = vld [vmem:[%s4186_s3 + $0xa8] sm:$0xf]  ;;  %v2984_v3 = vor.u32 %v2686_v1, %v2446_v0  ;;  %v2710_v4 = vld [vmem:[%s4186_s3 + $0xb0] sm:$0xf0]  ;;  %v2448_v6 = vld [vmem:[%s4185_s2 + $0xb4] sm:$0xf0] }
   0x3   :  { %v2995_v7 = vor.u32 %v2710_v4, %v2545_v2  ;;  %v2997_v8 = vor.u32 %v2685_v5, %v2448_v6  ;;  %v2434_v9 = vld [vmem:[%s4185_s2 + $0x90] sm:$0xf]  ;;  %v2683_v10 = vld [vmem:[%s4185_s2 + $0x98] sm:$0xf0]  ;;  %v2682_v14 = vld [vmem:[%s4185_s2 + $0x94] sm:$0xf] }
   0x4   :  { %v2533_v11 = vld [vmem:[%s4186_s3 + $0x90] sm:$0xf]  ;;  %368 = vmatpush.bf16.msra.mxu0 %v2984_v3  ;;  %v3009_v12 = vor.u32 %v2683_v10, %v2434_v9  ;;  %v2707_v13 = vld [vmem:[%s4186_s3 + $0x98] sm:$0xf0]  ;;  %v2436_v15 = vld [vmem:[%s4185_s2 + $0x9c] sm:$0xf0] }
   0x5   :  { %602 = vmatpush.bf16.msra.mxu3 %v2995_v7  ;;  %381 = vmatpush.bf16.msra.mxu1 %v2997_v8  ;;  %v3022_v16 = vor.u32 %v2707_v13, %v2533_v11  ;;  %v3024_v17 = vor.u32 %v2682_v14, %v2436_v15  ;;  %v2422_v18 = vld [vmem:[%s4185_s2 + $0x78] sm:$0xf]  ;;  %v2680_v19 = vld [vmem:[%s4185_s2 + $0x80] sm:$0xf0]  ;;  %v2679_v22 = vld [vmem:[%s4185_s2 + $0x7c] sm:$0xf] }
   0x6   :  { %4239 = vst [vmem:[#allocation6_spill] sm:$0xff] %v3009_v12  ;;  %v2521_v20 = vld [vmem:[%s4186_s3 + $0x78] sm:$0xf]  ;;  %v2704_v21 = vld [vmem:[%s4186_s3 + $0x80] sm:$0xf0]  ;;  %v3045_v24 = vor.u32 %v2680_v19, %v2422_v18 }
   0x7   :  { %4240 = vst [vmem:[#allocation7_spill] sm:$0xff] %v3024_v17  ;;  %v2424_v23 = vld [vmem:[%s4185_s2 + $0x84] sm:$0xf0]  ;;  %v3049_v25 = vor.u32 %v2704_v21, %v2521_v20  ;;  %v2410_v27 = vld [vmem:[%s4185_s2 + $0x60] sm:$0xf] }
   0x8   :  { %369 = vmatpush.bf16.msra.mxu0 %v3009_v12  ;;  %4241 = vst [vmem:[#allocation8_spill] sm:$0xff] %v3045_v24  ;;  %v3051_v26 = vor.u32 %v2679_v22, %v2424_v23  ;;  %v2677_v28 = vld [vmem:[%s4185_s2 + $0x68] sm:$0xf0]  ;;  %v2509_v29 = vld [vmem:[%s4186_s3 + $0x60] sm:$0xf] }
   0x9   :  { %603 = vmatpush.bf16.msra.mxu3 %v3022_v16  ;;  %382 = vmatpush.bf16.msra.mxu1 %v3024_v17  ;;  %v2701_v30 = vld [vmem:[%s4186_s3 + $0x68] sm:$0xf0]  ;;  %v2676_v31 = vld [vmem:[%s4185_s2 + $0x64] sm:$0xf]  ;;  %v2412_v32 = vld [vmem:[%s4185_s2 + $0x6c] sm:$0xf0]  ;;  %v3075_v34 = vor.u32 %v2677_v28, %v2410_v27 }
   0xa   :  { %4242 = vst [vmem:[#allocation9_spill] sm:$0xff] %v3051_v26  ;;  %v2454_v33 = vld [vmem:[%s4185_s2 + $0xb0] sm:$0xf]  ;;  %v2398_v35 = vld [vmem:[%s4185_s2 + $0x48] sm:$0xf]  ;;  %v3088_v38 = vor.u32 %v2701_v30, %v2509_v29  ;;  %v3090_v39 = vor.u32 %v2676_v31, %v2412_v32 }
   0xb   :  { %4243 = vst [vmem:[#allocation10_spill] sm:$0xff] %v3075_v34  ;;  %v2674_v36 = vld [vmem:[%s4185_s2 + $0x50] sm:$0xf0]  ;;  %v2687_v37 = vld [vmem:[%s4185_s2 + $0xb8] sm:$0xf0] }
   0xc   :  { %370 = vmatpush.bf16.msra.mxu0 %v3045_v24  ;;  %4244 = vst [vmem:[#allocation11_spill] sm:$0xff] %v3090_v39  ;;  %v2497_v40 = vld [vmem:[%s4186_s3 + $0x48] sm:$0xf]  ;;  %v2698_v41 = vld [vmem:[%s4186_s3 + $0x50] sm:$0xf0]  ;;  %v3101_v43 = vor.u32 %v2687_v37, %v2454_v33  ;;  %v3116_v48 = vor.u32 %v2674_v36, %v2398_v35 }
   0xd   :  { %604 = vmatpush.bf16.msra.mxu3 %v3049_v25  ;;  %383 = vmatpush.bf16.msra.mxu1 %v3051_v26  ;;  %v2673_v42 = vld [vmem:[%s4185_s2 + $0x4c] sm:$0xf]  ;;  %v2400_v44 = vld [vmem:[%s4185_s2 + $0x54] sm:$0xf0]  ;;  %v2684_v46 = vld [vmem:[%s4185_s2 + $0xa0] sm:$0xf0]  ;;  %v3126_v51 = vor.u32 %v2698_v41, %v2497_v40 }
   0xe   :  { %v2442_v45 = vld [vmem:[%s4185_s2 + $0x98] sm:$0xf]  ;;  %394 = vmatpush.bf16.msra.mxu2 %v3101_v43  ;;  %4245 = vst [vmem:[#allocation12_spill] sm:$0xff] %v3116_v48  ;;  %v2386_v49 = vld [vmem:[%s4185_s2 + $0x30] sm:$0xf]  ;;  %v3128_v52 = vor.u32 %v2673_v42, %v2400_v44 }
   0xf   :  { %v3113_v47 = vor.u32 %v2684_v46, %v2442_v45  ;;  %v2671_v50 = vld [vmem:[%s4185_s2 + $0x38] sm:$0xf0]  ;;  %v2485_v53 = vld [vmem:[%s4186_s3 + $0x30] sm:$0xf]  ;;  %v2430_v54 = vld [vmem:[%s4185_s2 + $0x80] sm:$0xf] }
  0x10   :  { %371 = vmatpush.bf16.msra.mxu0 %v3075_v34  ;;  %4246 = vst [vmem:[#allocation13_spill] sm:$0xff] %v3128_v52  ;;  %v2681_v55 = vld [vmem:[%s4185_s2 + $0x88] sm:$0xf0]  ;;  %v2695_v56 = vld [vmem:[%s4186_s3 + $0x38] sm:$0xf0]  ;;  %v3152_v60 = vor.u32 %v2671_v50, %v2386_v49  ;;  %v3261_v45 = vld [vmem:[%s4189_s6] sm:$0xff] }
  0x11   :  { %605 = vmatpush.bf16.msra.mxu3 %v3088_v38  ;;  %384 = vmatpush.bf16.msra.mxu1 %v3090_v39  ;;  %v2670_v57 = vld [vmem:[%s4185_s2 + $0x34] sm:$0xf]  ;;  %v2388_v58 = vld [vmem:[%s4185_s2 + $0x3c] sm:$0xf0]  ;;  %v3149_v59 = vor.u32 %v2681_v55, %v2430_v54  ;;  %v2418_v61 = vld [vmem:[%s4185_s2 + $0x68] sm:$0xf]  ;;  %v3162_v63 = vor.u32 %v2695_v56, %v2485_v53 }
  0x12   :  { %395 = vmatpush.bf16.msra.mxu2 %v3113_v47  ;;  %4247 = vst [vmem:[#allocation14_spill] sm:$0xff] %v3152_v60  ;;  %v2678_v62 = vld [vmem:[%s4185_s2 + $0x70] sm:$0xf0]  ;;  %v3164_v0 = vor.u32 %v2670_v57, %v2388_v58  ;;  %v2374_v1 = vld [vmem:[%s4185_s2 + $0x18] sm:$0xf]  ;;  %v4194_v49 = vmov 0  }
  0x13   :  { %v2668_v2 = vld [vmem:[%s4185_s2 + $0x20] sm:$0xf0]  ;;  %v2473_v4 = vld [vmem:[%s4186_s3 + $0x18] sm:$0xf]  ;;  %v2667_v6 = vld [vmem:[%s4185_s2 + $0x1c] sm:$0xf]  ;;  %v3185_v10 = vor.u32 %v2678_v62, %v2418_v61  ;;  %2748 = vset.pattern.permute.xlu0 %v4194_v49  ;;  %2749 = vset.pattern.permute.xlu1 %v4194_v49 }
  0x14   :  { %372 = vmatpush.bf16.msra.mxu0 %v3116_v48  ;;  %4248 = vst [vmem:[#allocation15_spill] sm:$0xff] %v3164_v0  ;;  %v2692_v5 = vld [vmem:[%s4186_s3 + $0x20] sm:$0xf0]  ;;  %v2376_v9 = vld [vmem:[%s4185_s2 + $0x24] sm:$0xf0]  ;;  %v3188_v11 = vor.u32 %v2668_v2, %v2374_v1  ;;  %vm2458_vm0 = vcmp.gt.s32.totalorder %v3261_v45, 0  ;;  %2750 = vset.pattern.permute.xlu2 %v4194_v49 }
  0x15   :  { %606 = vmatpush.bf16.msra.mxu3 %v3126_v51  ;;  %385 = vmatpush.bf16.msra.mxu1 %v3128_v52  ;;  %v2406_v13 = vld [vmem:[%s4185_s2 + $0x50] sm:$0xf]  ;;  %v2675_v14 = vld [vmem:[%s4185_s2 + $0x58] sm:$0xf0]  ;;  %v3198_v15 = vor.u32 %v2692_v5, %v2473_v4  ;;  %v3200_v18 = vor.u32 %v2667_v6, %v2376_v9  ;;  %v2362_v19 = vld [vmem:[%s4185_s2] sm:$0xf] }
  0x16   :  { %396 = vmatpush.bf16.msra.mxu2 %v3149_v59  ;;  %4249 = vst [vmem:[#allocation16_spill] sm:$0xff] %v3188_v11  ;;  %v2665_v20 = vld [vmem:[%s4185_s2 + $0x8] sm:$0xf0]  ;;  %v2461_v21 = vld [vmem:[%s4186_s3] sm:$0xf]  ;;  %v3227_v30 = vor.u32 %v2675_v14, %v2406_v13  ;;  %v3278_v55 = vsel %vm2458_vm0, 1, %v4194_v49 }
  0x17   :  { %4250 = vst [vmem:[#allocation17_spill] sm:$0xff] %v3200_v18  ;;  %v2689_v22 = vld [vmem:[%s4186_s3 + $0x8] sm:$0xf0]  ;;  %v2547_v27 = vld [vmem:[%s4186_s3 + $0xb4] sm:$0xf0]  ;;  %v3230_v31 = vor.u32 %v2665_v20, %v2362_v19  ;;  %465 = vperm.xlu0 %2748, %v3278_v55   ;;  %v2919_v1 = vmov 0.0|0.0  }
  0x18   :  { %373 = vmatpush.bf16.msra.mxu0 %v3152_v60  ;;  %v2709_v23 = vld [vmem:[%s4186_s3 + $0xac] sm:$0xf]  ;;  %v2664_v28 = vld [vmem:[%s4185_s2 + $0x4] sm:$0xf]  ;;  %v2364_v29 = vld [vmem:[%s4185_s2 + $0xc] sm:$0xf0]  ;;  %v3240_v35 = vor.u32 %v2689_v22, %v2461_v21 }
  0x19   :  { %607 = vmatpush.bf16.msra.mxu3 %v3162_v63  ;;  %386 = vmatpush.bf16.msra.mxu1 %v3164_v0  ;;  %4251 = vst [vmem:[#allocation18_spill] sm:$0xff] %v3230_v31  ;;  %v2553_v32 = vld [vmem:[%s4186_s3 + $0xb0] sm:$0xf]  ;;  %v2711_v33 = vld [vmem:[%s4186_s3 + $0xb8] sm:$0xf0]  ;;  %v3242_v36 = vor.u32 %v2709_v23, %v2547_v27  ;;  %v3250_v41 = vor.u32 %v2664_v28, %v2364_v29  ;;  %vm2557_vm1 = vcmp.gt.s32.totalorder %v3261_v45, 7 }
  0x1a   :  { %397 = vmatpush.bf16.msra.mxu2 %v3185_v10  ;;  %v2394_v37 = vld [vmem:[%s4185_s2 + $0x38] sm:$0xf]  ;;  %v2672_v40 = vld [vmem:[%s4185_s2 + $0x40] sm:$0xf0]  ;;  %v2706_v42 = vld [vmem:[%s4186_s3 + $0x94] sm:$0xf]  ;;  %v3263_v46 = vor.u32 %v2711_v33, %v2553_v32 }
  0x1b   :  { %4252 = vst [vmem:[#allocation19_spill] sm:$0xff] %v3250_v41  ;;  %v2535_v44 = vld [vmem:[%s4186_s3 + $0x9c] sm:$0xf0]  ;;  %v2541_v50 = vld [vmem:[%s4186_s3 + $0x98] sm:$0xf]  ;;  %v3275_v54 = vor.u32 %v2672_v40, %v2394_v37  ;;  %v3336_v22 = vsel %vm2557_vm1, 1, %v4194_v49 }
  0x1c   :  { %374 = vmatpush.bf16.msra.mxu0 %v3188_v11  ;;  %v2708_v53 = vld [vmem:[%s4186_s3 + $0xa0] sm:$0xf0]  ;;  %v3283_v56 = vor.u32 %v2706_v42, %v2535_v44  ;;  %v2382_v57 = vld [vmem:[%s4185_s2 + $0x20] sm:$0xf]  ;;  %v2669_v58 = vld [vmem:[%s4185_s2 + $0x28] sm:$0xf0] }
  0x1d   :  { %608 = vmatpush.bf16.msra.mxu3 %v3198_v15  ;;  %387 = vmatpush.bf16.msra.mxu1 %v3200_v18  ;;  %v2703_v61 = vld [vmem:[%s4186_s3 + $0x7c] sm:$0xf]  ;;  %v2523_v62 = vld [vmem:[%s4186_s3 + $0x84] sm:$0xf0]  ;;  %v3301_v2 = vor.u32 %v2708_v53, %v2541_v50  ;;  %v2529_v4 = vld [vmem:[%s4186_s3 + $0x80] sm:$0xf]  ;;  %v3311_v6 = vor.u32 %v2669_v58, %v2382_v57 }
  0x1e   :  { %398 = vmatpush.bf16.msra.mxu2 %v3227_v30  ;;  %v2705_v5 = vld [vmem:[%s4186_s3 + $0x88] sm:$0xf0]  ;;  %v3316_v9 = vor.u32 %v2703_v61, %v2523_v62  ;;  %v2370_v13 = vld [vmem:[%s4185_s2 + $0x8] sm:$0xf]  ;;  %v2666_v14 = vld [vmem:[%s4185_s2 + $0x10] sm:$0xf0] }
  0x1f   :  { %v2700_v19 = vld [vmem:[%s4186_s3 + $0x64] sm:$0xf]  ;;  %v2511_v20 = vld [vmem:[%s4186_s3 + $0x6c] sm:$0xf0]  ;;  %v3333_v21 = vor.u32 %v2705_v5, %v2529_v4  ;;  %4253 = vst [vmem:[#allocation20_spill] sm:$0xff] %v3336_v22  ;;  %v3345_v28 = vor.u32 %v2666_v14, %v2370_v13  ;;  %699 = vperm.xlu0 %2748, %v3336_v22   ;;  %vm2572_vm2 = vcmp.gt.s32.totalorder %v3261_v45, 3 }
  0x20   :  { %375 = vmatpush.bf16.msra.mxu0 %v3230_v31  ;;  %v2517_v23 = vld [vmem:[%s4186_s3 + $0x68] sm:$0xf]  ;;  %v2702_v27 = vld [vmem:[%s4186_s3 + $0x70] sm:$0xf0]  ;;  %v3348_v29 = vor.u32 %v2700_v19, %v2511_v20  ;;  %v2697_v32 = vld [vmem:[%s4186_s3 + $0x4c] sm:$0xf] }
  0x21   :  { %609 = vmatpush.bf16.msra.mxu3 %v3240_v35  ;;  %388 = vmatpush.bf16.msra.mxu1 %v3250_v41  ;;  %v2499_v33 = vld [vmem:[%s4186_s3 + $0x54] sm:$0xf0]  ;;  %v3360_v37 = vld [vmem:[%s4183_s0] sm:$0xff]  ;;  %v3364_v40 = vor.u32 %v2702_v27, %v2517_v23  ;;  %v2505_v42 = vld [vmem:[%s4186_s3 + $0x50] sm:$0xf]  ;;  %v1212_v61 = vsel %vm2572_vm2, 1, %v4194_v49 }
  0x22   :  { %399 = vmatpush.bf16.msra.mxu2 %v3275_v54  ;;  %v2699_v44 = vld [vmem:[%s4186_s3 + $0x58] sm:$0xf0]  ;;  %v3375_v50 = vor.u32 %v2697_v32, %v2499_v33  ;;  %v2694_v53 = vld [vmem:[%s4186_s3 + $0x34] sm:$0xf]  ;;  %v2487_v57 = vld [vmem:[%s4186_s3 + $0x3c] sm:$0xf0] }
  0x23   :  { %376 = vmatmul.bf16.vlgmr.msra.gmra.mxu0 %v2919_v1  ;;  %v3386_v58 = vor.u32 %v2699_v44, %v2505_v42  ;;  %v2493_v62 = vld [vmem:[%s4186_s3 + $0x38] sm:$0xf]  ;;  %v2696_v4 = vld [vmem:[%s4186_s3 + $0x40] sm:$0xf0]  ;;  %v3397_v5 = vor.u32 %v2694_v53, %v2487_v57  ;;  %v2691_v13 = vld [vmem:[%s4186_s3 + $0x1c] sm:$0xf] }
  0x24   :  { %615 = vmatpush.bf16.msrb.mxu0 %v3242_v36  ;;  %610 = vmatmul.bf16.vlgmr.msra.gmra.mxu3 %v2919_v1  ;;  %v2475_v14 = vld [vmem:[%s4186_s3 + $0x24] sm:$0xf0]  ;;  %v3408_v19 = vor.u32 %v2696_v4, %v2493_v62  ;;  %v2481_v20 = vld [vmem:[%s4186_s3 + $0x20] sm:$0xf]  ;;  %v2693_v23 = vld [vmem:[%s4186_s3 + $0x28] sm:$0xf0]  ;;  %v407_v4 = vunpack.c.l.bf16 %v3360_v37 }
  0x25   :  { %628 = vmatpush.bf16.msrb.mxu1 %v3263_v46  ;;  %721 = vmatpush.bf16.msrb.mxu3 %v2997_v8  ;;  %v3417_v27 = vor.u32 %v2691_v13, %v2475_v14  ;;  %v2688_v32 = vld [vmem:[%s4186_s3 + $0x4] sm:$0xf]  ;;  %v2463_v33 = vld [vmem:[%s4186_s3 + $0xc] sm:$0xf0]  ;;  %v3428_v42 = vor.u32 %v2693_v23, %v2481_v20  ;;  %v2469_v44 = vld [vmem:[%s4186_s3 + $0x8] sm:$0xf]  ;;  %v408_v14 = vunpack.c.h.bf16 %v3360_v37 }
  0x26   :  { %389 = vmatmul.bf16.vlgmr.msra.gmra.mxu1 %v2919_v1  ;;  %400 = vmatpush.bf16.msra.mxu2 %v3311_v6  ;;  %4254 = vst [vmem:[#allocation21_spill] sm:$0xff] %v3408_v19  ;;  %v2690_v53 = vld [vmem:[%s4186_s3 + $0x10] sm:$0xf0]  ;;  %v3437_v57 = vor.u32 %v2688_v32, %v2463_v33  ;;  %vm2563_vm3 = vcmp.gt.s32.totalorder %v3261_v45, 6  ;;  %v2359_v13 = vld [vmem:[%s4184_s1 + $0xbc] sm:$0xf] }
  0x27   :  { %1214 = vperm.xlu0 %2748, %v1212_v61   ;;  %4255 = vst [vmem:[#allocation22_spill] sm:$0xff] %v3428_v42  ;;  %v3442_v62 = vor.u32 %v2690_v53, %v2469_v44  ;;  %vm2560_vm14 = vcmp.gt.s32.totalorder %v3261_v45, 1 }
  0x28   :  { %616 = vmatpush.bf16.msrb.mxu0 %v3283_v56  ;;  %4256 = vst [vmem:[#allocation23_spill] sm:$0xff] %v3437_v57 }
  0x29   :  { %629 = vmatpush.bf16.msrb.mxu1 %v3301_v2  ;;  %722 = vmatpush.bf16.msrb.mxu3 %v3024_v17  ;;  %4257 = vst [vmem:[#allocation24_spill] sm:$0xff] %v3442_v62 }
  0x2a   :  { %401 = vmatpush.bf16.msra.mxu2 %v3345_v28  ;;  %137 = vst [vmem:[#allocation5 + $0x5c] sm:$0xf] %v2359_v13 }
  0x2c   :  { %617 = vmatpush.bf16.msrb.mxu0 %v3316_v9 }
  0x2d   :  { %630 = vmatpush.bf16.msrb.mxu1 %v3333_v21  ;;  %723 = vmatpush.bf16.msrb.mxu3 %v3051_v26 }
  0x2e   :  { %708 = vmatpush.bf16.msrb.mxu2 %v2984_v3 }
  0x2f   :  { %402 = vmatmul.bf16.vlgmr.msra.gmra.mxu2 %v2919_v1  ;;  %1523 = vperm.xlu0 %2748, %v1212_v61   ;;  %v3451_v61 = vsel %vm2563_vm3, 1, %v4194_v49  ;;  %vm2575_vm3 = vcmp.gt.s32.totalorder %v3261_v45, 4 }
  0x30   :  { %618 = vmatpush.bf16.msrb.mxu0 %v3348_v29 }
  0x31   :  { %631 = vmatpush.bf16.msrb.mxu1 %v3364_v40  ;;  %724 = vmatpush.bf16.msrb.mxu3 %v3090_v39 }
  0x32   :  { %709 = vmatpush.bf16.msrb.mxu2 %v3009_v12 }
  0x34   :  { %619 = vmatpush.bf16.msrb.mxu0 %v3375_v50 }
  0x35   :  { %632 = vmatpush.bf16.msrb.mxu1 %v3386_v58  ;;  %725 = vmatpush.bf16.msrb.mxu3 %v3128_v52 }
  0x36   :  { %710 = vmatpush.bf16.msrb.mxu2 %v3045_v24 }
  0x37   :  { %1832 = vperm.xlu0 %2748, %v3451_v61  }
  0x38   :  { %620 = vmatpush.bf16.msrb.mxu0 %v3397_v5 }
  0x39   :  { %633 = vmatpush.bf16.msrb.mxu1 %v3408_v19  ;;  %726 = vmatpush.bf16.msrb.mxu3 %v3164_v0 }
  0x3a   :  { %711 = vmatpush.bf16.msrb.mxu2 %v3075_v34 }
  0x3c   :  { %621 = vmatpush.bf16.msrb.mxu0 %v3417_v27 }
  0x3d   :  { %634 = vmatpush.bf16.msrb.mxu1 %v3428_v42  ;;  %727 = vmatpush.bf16.msrb.mxu3 %v3200_v18 }
  0x3e   :  { %712 = vmatpush.bf16.msrb.mxu2 %v3116_v48 }
  0x3f   :  { %2140 = vperm.xlu0 %2748, %v3278_v55   ;;  %v3511_v55 = vld [vmem:[%s4184_s1 + $0xb4] sm:$0xff] }
  0x40   :  { %622 = vmatpush.bf16.msrb.mxu0 %v3437_v57  ;;  %v641_v53 = vunpack.c.l.bf16 %v3511_v55 }
  0x41   :  { %635 = vmatpush.bf16.msrb.mxu1 %v3442_v62  ;;  %728 = vmatpush.bf16.msrb.mxu3 %v3250_v41 }
  0x42   :  { %713 = vmatpush.bf16.msrb.mxu2 %v3152_v60 }
  0x43   :  { %623 = vmatmul.bf16.vlgmr.msrb.gmra.mxu0 %v2919_v1 }
  0x44   :  { %734 = vmatpush.bf16.msra.mxu0 %v3101_v43  ;;  %636 = vmatmul.bf16.vlgmr.msrb.gmra.mxu1 %v2919_v1  ;;  %v2336_v1 = vld [vmem:[%s4183_s0 + $0x8] sm:$0xf] }
  0x45   :  { %811 = vmatpush.bf16.msra.mxu1 %v2995_v7  ;;  %837 = vmatpush.bf16.msra.mxu3 %v3263_v46  ;;  %58 = vst [vmem:[#allocation4 + $0x8] sm:$0xf] %v2336_v1 }
  0x46   :  { %714 = vmatpush.bf16.msrb.mxu2 %v3188_v11 }
  0x48   :  { %735 = vmatpush.bf16.msra.mxu0 %v3113_v47 }
  0x49   :  { %812 = vmatpush.bf16.msra.mxu1 %v3022_v16  ;;  %838 = vmatpush.bf16.msra.mxu3 %v3301_v2 }
  0x4a   :  { %715 = vmatpush.bf16.msrb.mxu2 %v3230_v31 }
  0x4c   :  { %736 = vmatpush.bf16.msra.mxu0 %v3149_v59 }
  0x4d   :  { %813 = vmatpush.bf16.msra.mxu1 %v3049_v25  ;;  %839 = vmatpush.bf16.msra.mxu3 %v3333_v21 }
  0x4e   :  { %824 = vmatpush.bf16.msra.mxu2 %v3242_v36 }
  0x50   :  { %737 = vmatpush.bf16.msra.mxu0 %v3185_v10 }
  0x51   :  { %814 = vmatpush.bf16.msra.mxu1 %v3088_v38  ;;  %840 = vmatpush.bf16.msra.mxu3 %v3364_v40 }
  0x52   :  { %825 = vmatpush.bf16.msra.mxu2 %v3283_v56 }
  0x54   :  { %738 = vmatpush.bf16.msra.mxu0 %v3227_v30 }
  0x55   :  { %815 = vmatpush.bf16.msra.mxu1 %v3126_v51  ;;  %841 = vmatpush.bf16.msra.mxu3 %v3386_v58 }
  0x56   :  { %826 = vmatpush.bf16.msra.mxu2 %v3316_v9 }
  0x58   :  { %739 = vmatpush.bf16.msra.mxu0 %v3275_v54 }
  0x59   :  { %816 = vmatpush.bf16.msra.mxu1 %v3162_v63  ;;  %842 = vmatpush.bf16.msra.mxu3 %v3408_v19 }
  0x5a   :  { %827 = vmatpush.bf16.msra.mxu2 %v3348_v29 }
  0x5c   :  { %740 = vmatpush.bf16.msra.mxu0 %v3311_v6 }
  0x5d   :  { %817 = vmatpush.bf16.msra.mxu1 %v3198_v15  ;;  %843 = vmatpush.bf16.msra.mxu3 %v3428_v42 }
  0x5e   :  { %828 = vmatpush.bf16.msra.mxu2 %v3375_v50 }
  0x60   :  { %741 = vmatpush.bf16.msra.mxu0 %v3345_v28 }
  0x61   :  { %818 = vmatpush.bf16.msra.mxu1 %v3240_v35  ;;  %844 = vmatpush.bf16.msra.mxu3 %v3442_v62 }
  0x62   :  { %829 = vmatpush.bf16.msra.mxu2 %v3397_v5 }
  0x64   :  { %914 = vmatpush.bf16.msrb.mxu0 %v2984_v3 }
  0x65   :  { %927 = vmatpush.bf16.msrb.mxu1 %v2997_v8 }
  0x66   :  { %830 = vmatpush.bf16.msra.mxu2 %v3417_v27 }
  0x68   :  { %915 = vmatpush.bf16.msrb.mxu0 %v3009_v12 }
  0x69   :  { %928 = vmatpush.bf16.msrb.mxu1 %v3024_v17 }
  0x6a   :  { %831 = vmatpush.bf16.msra.mxu2 %v3437_v57 }
  0x6c   :  { %916 = vmatpush.bf16.msrb.mxu0 %v3045_v24 }
  0x6d   :  { %929 = vmatpush.bf16.msrb.mxu1 %v3051_v26 }
  0x70   :  { %917 = vmatpush.bf16.msrb.mxu0 %v3075_v34 }
  0x71   :  { %930 = vmatpush.bf16.msrb.mxu1 %v3090_v39 }
  0x74   :  { %918 = vmatpush.bf16.msrb.mxu0 %v3116_v48 }
  0x75   :  { %931 = vmatpush.bf16.msrb.mxu1 %v3128_v52 }
  0x78   :  { %919 = vmatpush.bf16.msrb.mxu0 %v3152_v60 }
  0x79   :  { %932 = vmatpush.bf16.msrb.mxu1 %v3164_v0 }
  0x7c   :  { %920 = vmatpush.bf16.msrb.mxu0 %v3188_v11 }
  0x7d   :  { %933 = vmatpush.bf16.msrb.mxu1 %v3200_v18 }
  0x80   :  { %921 = vmatpush.bf16.msrb.mxu0 %v3230_v31 }
  0x81   :  { %934 = vmatpush.bf16.msrb.mxu1 %v3250_v41 }
  0xa0   :  { %v377_v20 = vpop.f32.mrf.mxu0 }
  0xa1   :  { %v410_v23 = vadd.f32 %v407_v4, %v377_v20 }
  0xa3   :  { %v390_v32 = vpop.f32.mrf.mxu1  ;;  %v2456_v33 = vmul.f32 -1.442695, %v410_v23 }
  0xa4   :  { %v430_v44 = vadd.f32 %v408_v14, %v390_v32 }
  0xa5   :  { %2754 = vpow2.f32 %v2456_v33 }
  0xa6   :  { %v2457_v49 = vmul.f32 -1.442695, %v430_v44 }
  0xa7   :  { %v611_v1 = vpop.f32.mrf.mxu3 }
  0xa8   :  { %2756 = vpow2.f32 %v2457_v49  ;;  %v644_v22 = vadd.f32 %v641_v53, %v611_v1  ;;  %v379_v41 = vpop.f32.mrf.mxu0 }
  0xaa   :  { %v2555_v31 = vmul.f32 -1.442695, %v644_v22 }
  0xab   :  { %v392_v18 = vpop.f32.mrf.mxu1  ;;  %v2755_v11 = vpop.eup %2754 }
  0xac   :  { %v414_v0 = vadd.f32 1.0, %v2755_v11  ;;  %2758 = vpow2.f32 %v2555_v31  ;;  %v3528_v11 = vld [vmem:[%s4187_s4] ss:$0 sm:$0xff]  ;;  %v238_v18 = vld [vmem:[#allocation4 + $0x8] sm:$0xf] }
  0xad   :  { %4258 = vst [vmem:[#allocation25_spill] sm:$0xff] %v3528_v11  ;;  %v409_v62 = vunpack.c.l.bf16 %v238_v18 }
  0xae   :  { %v2757_v13 = vpop.eup %2756  ;;  %2760 = vrcp.f32 %v414_v0  ;;  %vm420_vm4 = vweird.f32 %v414_v0  ;;  %v426_v31 = vand.u32 2147483648, %v414_v0  ;;  %v424_v1 = vand.u32 2147483647, %v414_v0 }
  0xaf   :  { %v434_v37 = vadd.f32 1.0, %v2757_v13  ;;  %v613_v4 = vpop.f32.mrf.mxu3  ;;  %v642_v13 = vunpack.c.h.bf16 %v3511_v55 }
  0xb0   :  { %v427_v48 = vor.u32 1.1754944e-38, %v426_v31  ;;  %vm425_vm9 = vcmp.eq.f32.partialorder %v424_v1, 8.507059e+37 }
  0xb1   :  { %2762 = vrcp.f32 %v434_v37  ;;  %vm440_vm6 = vweird.f32 %v434_v37  ;;  %v444_v34 = vand.u32 2147483647, %v434_v37 }
  0xb2   :  { %v2759_v20 = vpop.eup %2758  ;;  %v403_v14 = vpop.f32.mrf.mxu2 }
  0xb3   :  { %v3522_v23 = vadd.f32 1.0, %v2759_v20  ;;  %vm445_vm11 = vcmp.eq.f32.partialorder %v444_v34, 8.507059e+37  ;;  %v3554_v34 = vld [vmem:[%s4188_s5] ss:$0 sm:$0xff] }
  0xb4   :  { %v2761_v32 = vpop.eup %2760 }
  0xb5   :  { %2764 = vrcp.f32 %v3522_v23  ;;  %v416_v49 = vmul.f32 %v2761_v32, %v414_v0  ;;  %vm421_vm5 = vweird.f32 %v2761_v32  ;;  %vm654_vm12 = vweird.f32 %v3522_v23 }
  0xb6   :  { %vm422_vm8 = vmor %vm420_vm4, %vm421_vm5 }
  0xb7   :  { %v2763_v33 = vpop.eup %2762  ;;  %v417_v22 = vsub.f32 1.0, %v416_v49  ;;  %v453_v49 = vadd.f32 %v3528_v11, %v403_v14 }
  0xb8   :  { %v436_v41 = vmul.f32 %v2763_v33, %v434_v37  ;;  %vm441_vm7 = vweird.f32 %v2763_v33 }
  0xb9   :  { %v418_v53 = vmul.f32 %v2761_v32, %v417_v22  ;;  %vm3534_vm10 = vmor %vm440_vm6, %vm441_vm7  ;;  %vm2569_vm7 = vcmp.gt.s32.totalorder %v3261_v45, 5 }
  0xba   :  { %v437_v44 = vsub.f32 1.0, %v436_v41  ;;  %v405_v4 = vpop.f32.mrf.mxu2  ;;  %v446_v41 = vand.u32 2147483648, %v434_v37 }
  0xbb   :  { %v2765_v20 = vpop.eup %2764  ;;  %v419_v52 = vadd.f32 %v2761_v32, %v418_v53 }
  0xbc   :  { %v438_v60 = vmul.f32 %v2763_v33, %v437_v44  ;;  %v650_v42 = vmul.f32 %v2765_v20, %v3522_v23  ;;  %v447_v11 = vor.u32 1.1754944e-38, %v446_v41  ;;  %vm655_vm13 = vweird.f32 %v2765_v20 }
  0xbd   :  { %v423_v22 = vsel %vm422_vm8, %v2761_v32, %v419_v52  ;;  %vm3544_vm15 = vmor %vm654_vm12, %vm655_vm13 }
  0xbe   :  { %v428_v55 = vsel %vm425_vm9, %v427_v48, %v423_v22  ;;  %v651_v19 = vsub.f32 1.0, %v650_v42  ;;  %v439_v44 = vadd.f32 %v2763_v33, %v438_v60  ;;  %v658_v60 = vand.u32 2147483647, %v3522_v23 }
  0xbf   :  { %v454_v14 = vmul.f32 %v453_v49, %v428_v55 }
  0xc0   :  { %v624_v39 = vpop.f32.mrf.mxu0  ;;  %v652_v26 = vmul.f32 %v2765_v20, %v651_v19  ;;  %v443_v52 = vsel %vm3534_vm10, %v2763_v33, %v439_v44  ;;  %vm659_vm0 = vcmp.eq.f32.partialorder %v658_v60, 8.507059e+37  ;;  %v471_v44 = vld [vmem:[#allocation5 + $0x5c] sm:$0xf] }
  0xc1   :  { %v664_v4 = vadd.f32 %v642_v13, %v624_v39  ;;  %v637_v53 = vpop.f32.mrf.mxu1  ;;  %v455_v31 = vadd.f32 %v454_v14, %v409_v62  ;;  %v660_v39 = vand.u32 2147483648, %v3522_v23  ;;  %v448_v37 = vsel %vm445_vm11, %v447_v11, %v443_v52  ;;  %v466_v13 = vpop.permute.xlu0 %465 }
  0xc2   :  { %v653_v48 = vadd.f32 %v2765_v20, %v652_v26  ;;  %v4263_v62 = vmov 0   ;;  %v457_v11 = vsub.f32 1.0, %v448_v37  ;;  %vm467_vm1 = vcmp.eq.s32.totalorder %v466_v13, 1 }
  0xc3   :  { %v2556_v0 = vmul.f32 -1.442695, %v664_v4  ;;  %v3549_v32 = vsel %vm2560_vm14, 1, %v4263_v62  ;;  %v661_v23 = vor.u32 1.1754944e-38, %v660_v39  ;;  %v459_v55 = vmul.f32 0.0, %v448_v37  ;;  %vm2728_vm2 = vmpackc.low %vm467_vm1, %vm467_vm1 }
  0xc4   :  { %802 = vperm.xlu1 %2749, %v3549_v32   ;;  %v657_v41 = vsel %vm3544_vm15, %v2765_v20, %v653_v48  ;;  %v687_v4 = vadd.f32 %v3554_v34, %v637_v53  ;;  %v643_v52 = vunpack.c.l.bf16 %v471_v44  ;;  %v3579_v13 = vsel %vm2569_vm7, 1, %v4263_v62 }
  0xc5   :  { %2766 = vpow2.f32 %v2556_v0  ;;  %v662_v18 = vsel %vm659_vm0, %v661_v23, %v657_v41 }
  0xc6   :  { %2768 = vtanh.f32 %v455_v31  ;;  %v688_v39 = vmul.f32 %v687_v4, %v662_v18  ;;  %v4265_v18 = vld [vmem:[#allocation21_spill] sm:$0xff] }
  0xc8   :  { %v626_v42 = vpop.f32.mrf.mxu0  ;;  %v689_v48 = vadd.f32 %v688_v39, %v643_v52  ;;  %v4268_v52 = vld [vmem:[#allocation22_spill] sm:$0xff]  ;;  %v4269_v39 = vld [vmem:[#allocation12_spill] sm:$0xff] }
  0xc9   :  { %v639_v33 = vpop.f32.mrf.mxu1  ;;  %v3568_v42 = vsel %vm2575_vm3, 1, %v4263_v62 }
  0xcb   :  { %v2767_v26 = vpop.eup %2766 }
  0xcc   :  { %v2769_v1 = vpop.eup %2768  ;;  %v668_v49 = vadd.f32 1.0, %v2767_v26  ;;  %905 = vperm.xlu1 %2749, %v3451_v61  }
  0xcd   :  { %v458_v22 = vmul.f32 %v2769_v1, %v457_v11 }
  0xce   :  { %2770 = vrcp.f32 %v668_v49  ;;  %v680_v37 = vand.u32 2147483648, %v668_v49  ;;  %v678_v19 = vand.u32 2147483647, %v668_v49  ;;  %vm674_vm5 = vweird.f32 %v668_v49 }
  0xcf   :  { %v460_v14 = vadd.f32 %v459_v55, %v458_v22  ;;  %2772 = vtanh.f32 %v689_v48  ;;  %v3584_v55 = vpop.permute.xlu0 %699  ;;  %v4272_v48 = vld [vmem:[#allocation14_spill] sm:$0xff] }
  0xd0   :  { %v681_v26 = vor.u32 1.1754944e-38, %v680_v37  ;;  %vm679_vm8 = vcmp.eq.f32.partialorder %v678_v19, 8.507059e+37  ;;  %vm701_vm9 = vcmp.eq.s32.totalorder %v3584_v55, 1  ;;  %v4274_v37 = vld [vmem:[#allocation16_spill] sm:$0xff]  ;;  %v4276_v19 = vld [vmem:[#allocation18_spill] sm:$0xff] }
  0xd1   :  { %v2729_v0 = vpack.c.bf16 %v460_v14, %v460_v14  ;;  %v3560_v31 = vsel %vm467_vm1, %v460_v14, 0.0  ;;  %vm2737_vm10 = vmpackc.low %vm701_vm9, %vm701_vm9  ;;  %v4266_v14 = vld [vmem:[#allocation10_spill] sm:$0xff] }
  0xd3   :  { %2730 = vmatmul.msk.bf16.vlgmr.msrb.gmra.mxu2 %vm2728_vm2, %v2729_v0  ;;  %2733 = vmatmul.msk.bf16.vlgmr.msrb.gmra.mxu3 %vm2728_vm2, %v2729_v0 }
  0xd4   :  { %v2771_v20 = vpop.eup %2770  ;;  %2736 = vmatmul.msk.bf16.vlgmr.msra.gmra.mxu0 %vm2728_vm2, %v2729_v0  ;;  %940 = vmatpush.bf16.msrb.mxu2 %v3101_v43  ;;  %v4267_v0 = vld [vmem:[#allocation11_spill] sm:$0xff]  ;;  %vm2566_vm2 = vcmp.gt.s32.totalorder %v3261_v45, 2 }
  0xd5   :  { %v670_v53 = vmul.f32 %v2771_v20, %v668_v49  ;;  %1017 = vmatpush.bf16.msrb.mxu3 %v2995_v7  ;;  %1030 = vmatpush.bf16.msra.mxu0 %v3242_v36  ;;  %vm675_vm4 = vweird.f32 %v2771_v20  ;;  %v2773_v41 = vpop.eup %2772 }
  0xd6   :  { %1317 = vperm.xlu1 %2749, %v3568_v42   ;;  %vm676_vm6 = vmor %vm674_vm5, %vm675_vm4 }
  0xd7   :  { %v671_v60 = vsub.f32 1.0, %v670_v53  ;;  %v4271_v53 = vld [vmem:[#allocation24_spill] sm:$0xff] }
  0xd8   :  { %941 = vmatpush.bf16.msrb.mxu2 %v3113_v47 }
  0xd9   :  { %v672_v61 = vmul.f32 %v2771_v20, %v671_v60  ;;  %1018 = vmatpush.bf16.msrb.mxu3 %v3022_v16  ;;  %1031 = vmatpush.bf16.msra.mxu0 %v3283_v56  ;;  %v4273_v60 = vld [vmem:[#allocation15_spill] sm:$0xff] }
  0xdb   :  { %v673_v33 = vadd.f32 %v2771_v20, %v672_v61  ;;  %v4275_v61 = vld [vmem:[#allocation17_spill] sm:$0xff] }
  0xdc   :  { %942 = vmatpush.bf16.msrb.mxu2 %v3149_v59 }
  0xdd   :  { %v677_v23 = vsel %vm676_vm6, %v2771_v20, %v673_v33  ;;  %1019 = vmatpush.bf16.msrb.mxu3 %v3049_v25  ;;  %1032 = vmatpush.bf16.msra.mxu0 %v3316_v9  ;;  %v4270_v20 = vld [vmem:[#allocation13_spill] sm:$0xff]  ;;  %v4277_v33 = vld [vmem:[#allocation19_spill] sm:$0xff] }
  0xde   :  { %v682_v11 = vsel %vm679_vm8, %v681_v26, %v677_v23  ;;  %1626 = vperm.xlu1 %2749, %v3579_v13   ;;  %v33_v26 = vld [vmem:[%s4183_s0 + $0x18] sm:$0xff] }
  0xdf   :  { %v691_v1 = vsub.f32 1.0, %v682_v11  ;;  %v693_v22 = vmul.f32 0.0, %v682_v11  ;;  %v2350_v23 = vld [vmem:[%s4184_s1 + $0x9c] sm:$0xff] }
  0xe0   :  { %943 = vmatpush.bf16.msrb.mxu2 %v3185_v10  ;;  %v2337_v11 = vld [vmem:[%s4183_s0 + $0x20] sm:$0xf] }
  0xe1   :  { %v692_v49 = vmul.f32 %v2773_v41, %v691_v1  ;;  %1020 = vmatpush.bf16.msrb.mxu3 %v3088_v38  ;;  %1033 = vmatpush.bf16.msra.mxu0 %v3348_v29  ;;  %60 = vst [vmem:[#allocation4 + $0x14] sm:$0xf] %v2337_v11  ;;  %v747_v41 = vunpack.c.l.bf16 %v33_v26 }
  0xe3   :  { %v3588_v4 = vadd.f32 %v693_v22, %v692_v49  ;;  %v748_v49 = vunpack.c.h.bf16 %v33_v26 }
  0xe4   :  { %944 = vmatpush.bf16.msrb.mxu2 %v3227_v30 }
  0xe5   :  { %v2738_v44 = vpack.c.bf16 %v3588_v4, %v3588_v4  ;;  %1021 = vmatpush.bf16.msrb.mxu3 %v3126_v51  ;;  %1034 = vmatpush.bf16.msra.mxu0 %v3375_v50 }
  0xe6   :  { %1935 = vperm.xlu1 %2749, %v3549_v32   ;;  %v4264_v32 = vld [vmem:[#allocation9_spill] sm:$0xff] }
  0xe7   :  { %2739 = vmatmul.msk.bf16.vlgmr.msra.gmra.mxu1 %vm2737_vm10, %v2738_v44  ;;  %2742 = vmatmul.msk.bf16.vlgmr.msra.gmra.mxu2 %vm2737_vm10, %v2738_v44 }
  0xe8   :  { %2745 = vmatmul.msk.bf16.vlgmr.msra.gmra.mxu3 %vm2737_vm10, %v2738_v44  ;;  %1043 = vmatpush.bf16.msra.mxu1 %v3263_v46 }
  0xe9   :  { %945 = vmatpush.bf16.msrb.mxu2 %v3275_v54  ;;  %1022 = vmatpush.bf16.msrb.mxu3 %v3162_v63 }
  0xea   :  { %1035 = vmatpush.bf16.msra.mxu0 %v3397_v5 }
  0xec   :  { %1044 = vmatpush.bf16.msra.mxu1 %v3301_v2 }
  0xed   :  { %946 = vmatpush.bf16.msrb.mxu2 %v3311_v6  ;;  %1023 = vmatpush.bf16.msrb.mxu3 %v3198_v15 }
  0xee   :  { %1036 = vmatpush.bf16.msra.mxu0 %v3417_v27 }
  0xf0   :  { %1045 = vmatpush.bf16.msra.mxu1 %v3333_v21 }
  0xf1   :  { %947 = vmatpush.bf16.msrb.mxu2 %v3345_v28  ;;  %1024 = vmatpush.bf16.msrb.mxu3 %v3240_v35 }
  0xf2   :  { %1037 = vmatpush.bf16.msra.mxu0 %v3437_v57 }
  0xf4   :  { %1046 = vmatpush.bf16.msra.mxu1 %v3364_v40 }
  0xf5   :  { %1120 = vmatpush.bf16.msra.mxu2 %v2984_v3  ;;  %1133 = vmatpush.bf16.msra.mxu3 %v2997_v8 }
  0xf8   :  { %1047 = vmatpush.bf16.msra.mxu1 %v3386_v58 }
  0xf9   :  { %1121 = vmatpush.bf16.msra.mxu2 %v3009_v12  ;;  %1134 = vmatpush.bf16.msra.mxu3 %v3024_v17 }
  0xfc   :  { %1048 = vmatpush.bf16.msra.mxu1 %v4265_v18  ;;  %v4278_v18 = vld [vmem:[#allocation25_spill] sm:$0xff] }
  0xfd   :  { %1122 = vmatpush.bf16.msra.mxu2 %v3045_v24  ;;  %1135 = vmatpush.bf16.msra.mxu3 %v4264_v32 }
 0x100   :  { %1049 = vmatpush.bf16.msra.mxu1 %v4268_v52 }
 0x101   :  { %1123 = vmatpush.bf16.msra.mxu2 %v4266_v14  ;;  %1136 = vmatpush.bf16.msra.mxu3 %v4267_v0  ;;  %v850_v0 = vunpack.c.l.bf16 %v2350_v23 }
 0x104   :  { %1050 = vmatpush.bf16.msra.mxu1 %v4271_v53 }
 0x105   :  { %1124 = vmatpush.bf16.msra.mxu2 %v4269_v39  ;;  %1137 = vmatpush.bf16.msra.mxu3 %v4270_v20 }
 0x109   :  { %1125 = vmatpush.bf16.msra.mxu2 %v4272_v48  ;;  %1138 = vmatpush.bf16.msra.mxu3 %v4273_v60  ;;  %v2358_v48 = vld [vmem:[%s4184_s1 + $0xa4] sm:$0xf] }
 0x10a   :  { %135 = vst [vmem:[#allocation5 + $0x50] sm:$0xf] %v2358_v48 }
 0x10d   :  { %1126 = vmatpush.bf16.msra.mxu2 %v4274_v37  ;;  %1139 = vmatpush.bf16.msra.mxu3 %v4275_v61 }
 0x111   :  { %1127 = vmatpush.bf16.msra.mxu2 %v4276_v19  ;;  %1140 = vmatpush.bf16.msra.mxu3 %v4277_v33 }
 0x151   :  { %v743_v1 = vpop.f32.mrf.mxu0 }
 0x156   :  { %v717_v22 = vpop.f32.mrf.mxu2  ;;  %v730_v44 = vpop.f32.mrf.mxu3 }
 0x157   :  { %v750_v19 = vadd.f32 %v747_v41, %v717_v22  ;;  %v770_v33 = vadd.f32 %v748_v49, %v730_v44 }
 0x159   :  { %v2558_v61 = vmul.f32 -1.442695, %v750_v19  ;;  %v2559_v37 = vmul.f32 -1.442695, %v770_v33  ;;  %v745_v60 = vpop.f32.mrf.mxu0 }
 0x15a   :  { %v851_v60 = vunpack.c.h.bf16 %v2350_v23 }
 0x15b   :  { %2774 = vpow2.f32 %v2558_v61 }
 0x15c   :  { %2776 = vpow2.f32 %v2559_v37 }
 0x15e   :  { %v719_v20 = vpop.f32.mrf.mxu2  ;;  %v732_v39 = vpop.f32.mrf.mxu3 }
 0x161   :  { %v2775_v11 = vpop.eup %2774 }
 0x162   :  { %v2777_v53 = vpop.eup %2776  ;;  %v754_v26 = vadd.f32 1.0, %v2775_v11 }
 0x163   :  { %v774_v14 = vadd.f32 1.0, %v2777_v53 }
 0x164   :  { %2778 = vrcp.f32 %v754_v26  ;;  %v820_v41 = vpop.f32.mrf.mxu1  ;;  %v766_v11 = vand.u32 2147483648, %v754_v26  ;;  %vm760_vm12 = vweird.f32 %v754_v26 }
 0x165   :  { %2780 = vrcp.f32 %v774_v14  ;;  %v853_v19 = vadd.f32 %v850_v0, %v820_v41  ;;  %v764_v0 = vand.u32 2147483647, %v754_v26  ;;  %v705_v41 = vld [vmem:[#allocation4 + $0x14] sm:$0xf]  ;;  %vm780_vm0 = vweird.f32 %v774_v14 }
 0x167   :  { %v2561_v33 = vmul.f32 -1.442695, %v853_v19  ;;  %vm765_vm14 = vcmp.eq.f32.partialorder %v764_v0, 8.507059e+37  ;;  %v3649_v0 = vsel %vm2566_vm2, 1, %v4263_v62 }
 0x168   :  { %1008 = vperm.xlu2 %2750, %v3649_v0  }
 0x169   :  { %2782 = vpow2.f32 %v2561_v33 }
 0x16a   :  { %v2779_v37 = vpop.eup %2778  ;;  %v833_v61 = vpop.f32.mrf.mxu2 }
 0x16b   :  { %v2781_v49 = vpop.eup %2780  ;;  %v756_v22 = vmul.f32 %v2779_v37, %v754_v26  ;;  %v873_v44 = vadd.f32 %v851_v60, %v833_v61  ;;  %v3644_v48 = vpop.f32.mrf.mxu3  ;;  %vm761_vm11 = vweird.f32 %v2779_v37  ;;  %v767_v60 = vor.u32 1.1754944e-38, %v766_v11 }
 0x16c   :  { %v776_v39 = vmul.f32 %v2781_v49, %v774_v14  ;;  %v822_v20 = vpop.f32.mrf.mxu1  ;;  %vm762_vm13 = vmor %vm760_vm12, %vm761_vm11  ;;  %vm781_vm15 = vweird.f32 %v2781_v49 }
 0x16d   :  { %v757_v32 = vsub.f32 1.0, %v756_v22  ;;  %v2562_v52 = vmul.f32 -1.442695, %v873_v44  ;;  %v790_v20 = vadd.f32 %v4278_v18, %v743_v1  ;;  %v749_v44 = vunpack.c.l.bf16 %v705_v41  ;;  %vm782_vm1 = vmor %vm780_vm0, %vm781_vm15  ;;  %v808_v41 = vld [vmem:[#allocation5 + $0x50] sm:$0xf] }
 0x16e   :  { %v777_v53 = vsub.f32 1.0, %v776_v39 }
 0x16f   :  { %v2783_v24 = vpop.eup %2782  ;;  %v758_v17 = vmul.f32 %v2779_v37, %v757_v32  ;;  %2784 = vpow2.f32 %v2562_v52  ;;  %v786_v52 = vand.u32 2147483648, %v774_v14 }
 0x170   :  { %v857_v23 = vadd.f32 1.0, %v2783_v24  ;;  %v778_v19 = vmul.f32 %v2781_v49, %v777_v53  ;;  %v784_v53 = vand.u32 2147483647, %v774_v14  ;;  %1111 = vperm.xlu2 %2750, %v3579_v13  }
 0x171   :  { %v759_v33 = vadd.f32 %v2779_v37, %v758_v17  ;;  %v787_v1 = vor.u32 1.1754944e-38, %v786_v52  ;;  %v852_v52 = vunpack.c.l.bf16 %v808_v41 }
 0x172   :  { %2786 = vrcp.f32 %v857_v23  ;;  %v835_v61 = vpop.f32.mrf.mxu2  ;;  %v779_v32 = vadd.f32 %v2781_v49, %v778_v19  ;;  %vm785_vm3 = vcmp.eq.f32.partialorder %v784_v53, 8.507059e+37  ;;  %v869_v45 = vand.u32 2147483648, %v857_v23 }
 0x173   :  { %v763_v22 = vsel %vm762_vm13, %v2779_v37, %v759_v33  ;;  %v848_v39 = vpop.f32.mrf.mxu3  ;;  %v867_v19 = vand.u32 2147483647, %v857_v23  ;;  %vm863_vm6 = vweird.f32 %v857_v23 }
 0x174   :  { %v768_v12 = vsel %vm765_vm14, %v767_v60, %v763_v22  ;;  %v783_v61 = vsel %vm782_vm1, %v2781_v49, %v779_v32  ;;  %v803_v60 = vpop.permute.xlu1 %802 }
 0x175   :  { %v2785_v57 = vpop.eup %2784  ;;  %v791_v24 = vmul.f32 %v790_v20, %v768_v12  ;;  %v3655_v12 = vld [vmem:[%s4183_s0 + $0x30] sm:$0xff]  ;;  %vm804_vm5 = vcmp.eq.s32.totalorder %v803_v60, 1  ;;  %vm868_vm8 = vcmp.eq.f32.partialorder %v867_v19, 8.507059e+37 }
 0x176   :  { %v877_v17 = vadd.f32 1.0, %v2785_v57  ;;  %v788_v57 = vsel %vm785_vm3, %v787_v1, %v783_v61  ;;  %v893_v61 = vadd.f32 %v3554_v34, %v3644_v48 }
 0x177   :  { %v792_v26 = vadd.f32 %v791_v24, %v749_v44  ;;  %v794_v20 = vsub.f32 1.0, %v788_v57  ;;  %v796_v32 = vmul.f32 %v788_v57, %v3560_v31  ;;  %v870_v24 = vor.u32 1.1754944e-38, %v869_v45 }
 0x178   :  { %v2787_v11 = vpop.eup %2786  ;;  %2788 = vrcp.f32 %v877_v17  ;;  %v887_v41 = vand.u32 2147483647, %v877_v17  ;;  %vm883_vm11 = vweird.f32 %v877_v17  ;;  %1420 = vperm.xlu2 %2750, %v3568_v42  }
 0x179   :  { %2790 = vtanh.f32 %v792_v26  ;;  %v859_v37 = vmul.f32 %v2787_v11, %v857_v23  ;;  %vm864_vm4 = vweird.f32 %v2787_v11  ;;  %v889_v23 = vand.u32 2147483648, %v877_v17 }
 0x17a   :  { %vm865_vm7 = vmor %vm863_vm6, %vm864_vm4  ;;  %vm888_vm13 = vcmp.eq.f32.partialorder %v887_v41, 8.507059e+37  ;;  %v4294_v41 = vld [vmem:[#allocation16_spill] sm:$0xff] }
 0x17b   :  { %v860_v14 = vsub.f32 1.0, %v859_v37  ;;  %v890_v19 = vor.u32 1.1754944e-38, %v889_v23  ;;  %v4293_v23 = vld [vmem:[#allocation15_spill] sm:$0xff] }
 0x17d   :  { %v861_v49 = vmul.f32 %v2787_v11, %v860_v14 }
 0x17e   :  { %v2789_v33 = vpop.eup %2788 }
 0x17f   :  { %v2791_v62 = vpop.eup %2790  ;;  %v879_v22 = vmul.f32 %v2789_v33, %v877_v17  ;;  %v862_v44 = vadd.f32 %v2787_v11, %v861_v49  ;;  %vm884_vm10 = vweird.f32 %v2789_v33  ;;  %v702_v17 = vsel %vm701_vm9, %v3588_v4, 0.0  ;;  %v4279_v4 = vld [vmem:[#allocation20_spill] sm:$0xff] }
 0x180   :  { %v795_v39 = vmul.f32 %v2791_v62, %v794_v20  ;;  %vm885_vm12 = vmor %vm883_vm11, %vm884_vm10  ;;  %v906_v20 = vpop.permute.xlu1 %905  ;;  %1729 = vperm.xlu2 %2750, %v3649_v0   ;;  %v4280_v0 = vld [vmem:[#allocation23_spill] sm:$0xff] }
 0x181   :  { %v880_v53 = vsub.f32 1.0, %v879_v22  ;;  %v866_v26 = vsel %vm865_vm7, %v2787_v11, %v862_v44  ;;  %vm907_vm14 = vcmp.eq.s32.totalorder %v906_v20, 1  ;;  %v4281_v22 = vld [vmem:[#allocation6_spill] sm:$0xff]  ;;  %v4282_v44 = vld [vmem:[#allocation21_spill] sm:$0xff] }
 0x182   :  { %v797_v1 = vadd.f32 %v796_v32, %v795_v39  ;;  %v871_v37 = vsel %vm868_vm8, %v870_v24, %v866_v26  ;;  %v4283_v39 = vld [vmem:[#allocation7_spill] sm:$0xff]  ;;  %v4284_v32 = vld [vmem:[#allocation8_spill] sm:$0xff]  ;;  %v4286_v24 = vld [vmem:[#allocation9_spill] sm:$0xff] }
 0x183   :  { %v894_v14 = vmul.f32 %v893_v61, %v871_v37  ;;  %v881_v18 = vmul.f32 %v2789_v33, %v880_v53  ;;  %v4287_v53 = vld [vmem:[#allocation10_spill] sm:$0xff]  ;;  %v4288_v26 = vld [vmem:[#allocation24_spill] sm:$0xff]  ;;  %v4289_v61 = vld [vmem:[#allocation11_spill] sm:$0xff] }
 0x184   :  { %v3663_v57 = vsel %vm804_vm5, %v797_v1, %v3560_v31  ;;  %v4290_v1 = vld [vmem:[#allocation12_spill] sm:$0xff]  ;;  %v4291_v37 = vld [vmem:[#allocation13_spill] sm:$0xff] }
 0x185   :  { %v913_v11 = vpack.c.bf16 %v3663_v57, %v3663_v57  ;;  %v895_v45 = vadd.f32 %v894_v14, %v852_v52  ;;  %v882_v49 = vadd.f32 %v2789_v33, %v881_v18  ;;  %v4285_v52 = vld [vmem:[#allocation22_spill] sm:$0xff] }
 0x186   :  { %v4292_v14 = vld [vmem:[#allocation14_spill] sm:$0xff] }
 0x187   :  { %2792 = vtanh.f32 %v895_v45  ;;  %v886_v48 = vsel %vm885_vm12, %v2789_v33, %v882_v49  ;;  %922 = vmatmul.bf16.vlgmr.msrb.gmra.mxu0 %v913_v11  ;;  %935 = vmatmul.bf16.vlgmr.msrb.gmra.mxu1 %v913_v11  ;;  %v4296_v45 = vld [vmem:[#allocation18_spill] sm:$0xff]  ;;  %v4297_v49 = vld [vmem:[#allocation19_spill] sm:$0xff] }
 0x188   :  { %948 = vmatmul.bf16.vlgmr.msrb.gmra.mxu2 %v913_v11  ;;  %1146 = vmatpush.bf16.msrb.mxu0 %v3101_v43  ;;  %v891_v13 = vsel %vm888_vm13, %v890_v19, %v886_v48  ;;  %v4295_v11 = vld [vmem:[#allocation17_spill] sm:$0xff]  ;;  %v2349_v48 = vld [vmem:[%s4184_s1 + $0x84] sm:$0xff] }
 0x189   :  { %1223 = vmatpush.bf16.msrb.mxu1 %v2995_v7  ;;  %1236 = vmatpush.bf16.msrb.mxu2 %v3242_v36  ;;  %v897_v31 = vsub.f32 1.0, %v891_v13  ;;  %v899_v60 = vmul.f32 %v891_v13, %v702_v17  ;;  %v2338_v19 = vld [vmem:[%s4183_s0 + $0x38] sm:$0xf]  ;;  %v953_v13 = vunpack.c.l.bf16 %v3655_v12 }
 0x18a   :  { %2038 = vperm.xlu2 %2750, %v4279_v4   ;;  %62 = vst [vmem:[#allocation4 + $0x20] sm:$0xf] %v2338_v19  ;;  %v2357_v19 = vld [vmem:[%s4184_s1 + $0x8c] sm:$0xf] }
 0x18b   :  { %133 = vst [vmem:[#allocation5 + $0x44] sm:$0xf] %v2357_v19 }
 0x18c   :  { %1147 = vmatpush.bf16.msrb.mxu0 %v3113_v47 }
 0x18d   :  { %v2793_v18 = vpop.eup %2792  ;;  %1224 = vmatpush.bf16.msrb.mxu1 %v3022_v16  ;;  %1237 = vmatpush.bf16.msrb.mxu2 %v3283_v56 }
 0x18e   :  { %v898_v33 = vmul.f32 %v2793_v18, %v897_v31  ;;  %v954_v31 = vunpack.c.h.bf16 %v3655_v12  ;;  %v1057_v12 = vunpack.c.h.bf16 %v2349_v48 }
 0x190   :  { %v900_v62 = vadd.f32 %v899_v60, %v898_v33  ;;  %1148 = vmatpush.bf16.msrb.mxu0 %v3149_v59 }
 0x191   :  { %1225 = vmatpush.bf16.msrb.mxu1 %v3049_v25  ;;  %1238 = vmatpush.bf16.msrb.mxu2 %v3316_v9 }
 0x192   :  { %v3680_v42 = vsel %vm907_vm14, %v900_v62, %v702_v17 }
 0x193   :  { %v1016_v55 = vpack.c.bf16 %v3680_v42, %v3680_v42 }
 0x194   :  { %1149 = vmatpush.bf16.msrb.mxu0 %v3185_v10 }
 0x195   :  { %1025 = vmatmul.bf16.vlgmr.msrb.gmra.mxu3 %v1016_v55  ;;  %1226 = vmatpush.bf16.msrb.mxu1 %v3088_v38 }
 0x196   :  { %1249 = vmatpush.bf16.msrb.mxu3 %v3263_v46  ;;  %1239 = vmatpush.bf16.msrb.mxu2 %v3348_v29 }
 0x197   :  { %1038 = vmatmul.bf16.vlgmr.msra.gmra.mxu0 %v1016_v55  ;;  %1051 = vmatmul.bf16.vlgmr.msra.gmra.mxu1 %v1016_v55 }
 0x198   :  { %1150 = vmatpush.bf16.msrb.mxu0 %v3227_v30 }
 0x199   :  { %1227 = vmatpush.bf16.msrb.mxu1 %v3126_v51 }
 0x19a   :  { %1250 = vmatpush.bf16.msrb.mxu3 %v3301_v2  ;;  %1240 = vmatpush.bf16.msrb.mxu2 %v3375_v50 }
 0x19c   :  { %1151 = vmatpush.bf16.msrb.mxu0 %v3275_v54 }
 0x19d   :  { %1228 = vmatpush.bf16.msrb.mxu1 %v3162_v63 }
 0x19e   :  { %1251 = vmatpush.bf16.msrb.mxu3 %v3333_v21  ;;  %1241 = vmatpush.bf16.msrb.mxu2 %v3397_v5 }
 0x1a0   :  { %1152 = vmatpush.bf16.msrb.mxu0 %v3311_v6 }
 0x1a1   :  { %1229 = vmatpush.bf16.msrb.mxu1 %v3198_v15 }
 0x1a2   :  { %1252 = vmatpush.bf16.msrb.mxu3 %v3364_v40  ;;  %1242 = vmatpush.bf16.msrb.mxu2 %v3417_v27 }
 0x1a4   :  { %1153 = vmatpush.bf16.msrb.mxu0 %v3345_v28 }
 0x1a5   :  { %1230 = vmatpush.bf16.msrb.mxu1 %v3240_v35 }
 0x1a6   :  { %1253 = vmatpush.bf16.msrb.mxu3 %v3386_v58  ;;  %1243 = vmatpush.bf16.msrb.mxu2 %v4280_v0 }
 0x1a8   :  { %1326 = vmatpush.bf16.msra.mxu0 %v2984_v3 }
 0x1a9   :  { %1339 = vmatpush.bf16.msra.mxu1 %v2997_v8 }
 0x1aa   :  { %1254 = vmatpush.bf16.msrb.mxu3 %v4282_v44 }
 0x1ac   :  { %1327 = vmatpush.bf16.msra.mxu0 %v4281_v22 }
 0x1ad   :  { %1340 = vmatpush.bf16.msra.mxu1 %v4283_v39 }
 0x1ae   :  { %1255 = vmatpush.bf16.msrb.mxu3 %v4285_v52 }
 0x1b0   :  { %1328 = vmatpush.bf16.msra.mxu0 %v4284_v32 }
 0x1b1   :  { %1341 = vmatpush.bf16.msra.mxu1 %v4286_v24 }
 0x1b2   :  { %1256 = vmatpush.bf16.msrb.mxu3 %v4288_v26 }
 0x1b4   :  { %1329 = vmatpush.bf16.msra.mxu0 %v4287_v53 }
 0x1b5   :  { %1342 = vmatpush.bf16.msra.mxu1 %v4289_v61 }
 0x1b8   :  { %1330 = vmatpush.bf16.msra.mxu0 %v4290_v1 }
 0x1b9   :  { %1343 = vmatpush.bf16.msra.mxu1 %v4291_v37 }
 0x1bc   :  { %1331 = vmatpush.bf16.msra.mxu0 %v4292_v14 }
 0x1bd   :  { %1344 = vmatpush.bf16.msra.mxu1 %v4293_v23 }
 0x1c0   :  { %1332 = vmatpush.bf16.msra.mxu0 %v4294_v41 }
 0x1c1   :  { %1345 = vmatpush.bf16.msra.mxu1 %v4295_v11 }
 0x1c4   :  { %1333 = vmatpush.bf16.msra.mxu0 %v4296_v45 }
 0x1c5   :  { %1346 = vmatpush.bf16.msra.mxu1 %v4297_v49 }
 0x204   :  { %v923_v18 = vpop.f32.mrf.mxu0  ;;  %v936_v17 = vpop.f32.mrf.mxu1 }
 0x205   :  { %v956_v33 = vadd.f32 %v953_v13, %v923_v18  ;;  %v976_v60 = vadd.f32 %v954_v31, %v936_v17 }
 0x207   :  { %v2564_v20 = vmul.f32 -1.442695, %v956_v33  ;;  %v2565_v62 = vmul.f32 -1.442695, %v976_v60  ;;  %v1056_v33 = vunpack.c.l.bf16 %v2349_v48  ;;  %v911_v48 = vld [vmem:[#allocation4 + $0x20] sm:$0xf] }
 0x209   :  { %2794 = vpow2.f32 %v2564_v20 }
 0x20a   :  { %2796 = vpow2.f32 %v2565_v62 }
 0x20b   :  { %v949_v55 = vpop.f32.mrf.mxu2 }
 0x20c   :  { %v925_v4 = vpop.f32.mrf.mxu0  ;;  %v938_v49 = vpop.f32.mrf.mxu1 }
 0x20f   :  { %v2795_v45 = vpop.eup %2794 }
 0x210   :  { %v2797_v11 = vpop.eup %2796  ;;  %v960_v41 = vadd.f32 1.0, %v2795_v45 }
 0x211   :  { %v980_v23 = vadd.f32 1.0, %v2797_v11 }
 0x212   :  { %2798 = vrcp.f32 %v960_v41  ;;  %v972_v19 = vand.u32 2147483648, %v960_v41  ;;  %v970_v61 = vand.u32 2147483647, %v960_v41  ;;  %vm966_vm15 = vweird.f32 %v960_v41 }
 0x213   :  { %2800 = vrcp.f32 %v980_v23  ;;  %v951_v13 = vpop.f32.mrf.mxu2  ;;  %vm986_vm3 = vweird.f32 %v980_v23 }
 0x214   :  { %v1039_v31 = vpop.f32.mrf.mxu0  ;;  %v3736_v18 = vpop.f32.mrf.mxu1  ;;  %v973_v53 = vor.u32 1.1754944e-38, %v972_v19  ;;  %vm971_vm1 = vcmp.eq.f32.partialorder %v970_v61, 8.507059e+37 }
 0x215   :  { %v1079_v17 = vadd.f32 %v1057_v12, %v1039_v31 }
 0x217   :  { %v2568_v60 = vmul.f32 -1.442695, %v1079_v17 }
 0x218   :  { %v2799_v49 = vpop.eup %2798  ;;  %v1026_v20 = vpop.f32.mrf.mxu3 }
 0x219   :  { %v2801_v62 = vpop.eup %2800  ;;  %v962_v45 = vmul.f32 %v2799_v49, %v960_v41  ;;  %2802 = vpow2.f32 %v2568_v60  ;;  %v1059_v4 = vadd.f32 %v1056_v33, %v1026_v20  ;;  %vm967_vm9 = vweird.f32 %v2799_v49 }
 0x21a   :  { %v982_v14 = vmul.f32 %v2801_v62, %v980_v23  ;;  %vm968_vm0 = vmor %vm966_vm15, %vm967_vm9  ;;  %v955_v20 = vunpack.c.l.bf16 %v911_v48  ;;  %vm987_vm2 = vweird.f32 %v2801_v62  ;;  %v990_v41 = vand.u32 2147483647, %v980_v23 }
 0x21b   :  { %v963_v26 = vsub.f32 1.0, %v962_v45  ;;  %v2567_v11 = vmul.f32 -1.442695, %v1059_v4  ;;  %vm988_vm4 = vmor %vm986_vm3, %vm987_vm2 }
 0x21c   :  { %v983_v37 = vsub.f32 1.0, %v982_v14  ;;  %v1041_v1 = vpop.f32.mrf.mxu0  ;;  %v1054_v52 = vpop.f32.mrf.mxu1  ;;  %v4298_v14 = vld [vmem:[#allocation25_spill] sm:$0xff]  ;;  %vm991_vm5 = vcmp.eq.f32.partialorder %v990_v41, 8.507059e+37  ;;  %v1014_v41 = vld [vmem:[#allocation5 + $0x44] sm:$0xf] }
 0x21d   :  { %v964_v13 = vmul.f32 %v2799_v49, %v963_v26  ;;  %2804 = vpow2.f32 %v2567_v11  ;;  %v996_v1 = vadd.f32 %v4298_v14, %v949_v55  ;;  %v992_v11 = vand.u32 2147483648, %v980_v23  ;;  %v1009_v14 = vpop.permute.xlu2 %1008 }
 0x21e   :  { %v984_v12 = vmul.f32 %v2801_v62, %v983_v37  ;;  %vm1010_vm6 = vcmp.eq.s32.totalorder %v1009_v14, 1 }
 0x21f   :  { %v2803_v31 = vpop.eup %2802  ;;  %v965_v17 = vadd.f32 %v2799_v49, %v964_v13 }
 0x220   :  { %v3738_v60 = vadd.f32 1.0, %v2803_v31  ;;  %v1028_v33 = vpop.f32.mrf.mxu3  ;;  %v985_v26 = vadd.f32 %v2801_v62, %v984_v12 }
 0x221   :  { %v969_v45 = vsel %vm968_vm0, %v2799_v49, %v965_v17  ;;  %v993_v49 = vor.u32 1.1754944e-38, %v992_v11 }
 0x222   :  { %v974_v52 = vsel %vm971_vm1, %v973_v53, %v969_v45  ;;  %2806 = vrcp.f32 %v3738_v60  ;;  %v989_v31 = vsel %vm988_vm4, %v2801_v62, %v985_v26  ;;  %vm1089_vm13 = vweird.f32 %v3738_v60 }
 0x223   :  { %v2805_v37 = vpop.eup %2804  ;;  %v997_v4 = vmul.f32 %v996_v1, %v974_v52  ;;  %v994_v55 = vsel %vm991_vm5, %v993_v49, %v989_v31 }
 0x224   :  { %v1063_v13 = vadd.f32 1.0, %v2805_v37  ;;  %v1000_v12 = vsub.f32 1.0, %v994_v55  ;;  %v1002_v23 = vmul.f32 %v994_v55, %v3663_v57  ;;  %v1099_v55 = vadd.f32 %v3554_v34, %v3736_v18 }
 0x225   :  { %v998_v19 = vadd.f32 %v997_v4, %v955_v20  ;;  %v1093_v34 = vand.u32 2147483647, %v3738_v60 }
 0x226   :  { %2808 = vrcp.f32 %v1063_v13  ;;  %v1075_v52 = vand.u32 2147483648, %v1063_v13  ;;  %v1073_v37 = vand.u32 2147483647, %v1063_v13  ;;  %vm1069_vm8 = vweird.f32 %v1063_v13 }
 0x227   :  { %2810 = vtanh.f32 %v998_v19  ;;  %vm1094_vm9 = vcmp.eq.f32.partialorder %v1093_v34, 8.507059e+37  ;;  %v2348_v34 = vld [vmem:[%s4184_s1 + $0x6c] sm:$0xff] }
 0x228   :  { %v2807_v61 = vpop.eup %2806  ;;  %v1076_v49 = vor.u32 1.1754944e-38, %v1075_v52  ;;  %vm1074_vm11 = vcmp.eq.f32.partialorder %v1073_v37, 8.507059e+37  ;;  %v4300_v37 = vld [vmem:[#allocation11_spill] sm:$0xff] }
 0x229   :  { %v1085_v53 = vmul.f32 %v2807_v61, %v3738_v60  ;;  %vm1090_vm12 = vweird.f32 %v2807_v61 }
 0x22a   :  { %vm1091_vm14 = vmor %vm1089_vm13, %vm1090_vm12 }
 0x22b   :  { %v1086_v45 = vsub.f32 1.0, %v1085_v53 }
 0x22c   :  { %v2809_v48 = vpop.eup %2808 }
 0x22d   :  { %v2811_v17 = vpop.eup %2810  ;;  %v1065_v33 = vmul.f32 %v2809_v48, %v1063_v13  ;;  %vm1070_vm7 = vweird.f32 %v2809_v48  ;;  %v1087_v4 = vmul.f32 %v2807_v61, %v1086_v45 }
 0x22e   :  { %v1001_v1 = vmul.f32 %v2811_v17, %v1000_v12  ;;  %vm1071_vm10 = vmor %vm1069_vm8, %vm1070_vm7  ;;  %v1058_v12 = vunpack.c.l.bf16 %v1014_v41  ;;  %v4302_v41 = vld [vmem:[#allocation12_spill] sm:$0xff] }
 0x22f   :  { %v1066_v20 = vsub.f32 1.0, %v1065_v33  ;;  %v1088_v33 = vadd.f32 %v2807_v61, %v1087_v4  ;;  %v4301_v4 = vld [vmem:[#allocation22_spill] sm:$0xff] }
 0x230   :  { %v1003_v62 = vadd.f32 %v1002_v23, %v1001_v1 }
 0x231   :  { %v1067_v26 = vmul.f32 %v2809_v48, %v1066_v20  ;;  %v1092_v13 = vsel %vm1091_vm14, %v2807_v61, %v1088_v33  ;;  %v1112_v20 = vpop.permute.xlu2 %1111  ;;  %v4310_v33 = vld [vmem:[#allocation19_spill] sm:$0xff] }
 0x232   :  { %v3745_v11 = vsel %vm1010_vm6, %v1003_v62, %v3663_v57  ;;  %v1095_v57 = vand.u32 2147483648, %v3738_v60  ;;  %vm1113_vm15 = vcmp.eq.s32.totalorder %v1112_v20, 1 }
 0x233   :  { %v1119_v19 = vpack.c.bf16 %v3745_v11, %v3745_v11  ;;  %v1068_v31 = vadd.f32 %v2809_v48, %v1067_v26 }
 0x235   :  { %v1072_v53 = vsel %vm1071_vm10, %v2809_v48, %v1068_v31  ;;  %1128 = vmatmul.bf16.vlgmr.msra.gmra.mxu2 %v1119_v19  ;;  %1141 = vmatmul.bf16.vlgmr.msra.gmra.mxu3 %v1119_v19  ;;  %v1096_v48 = vor.u32 1.1754944e-38, %v1095_v57  ;;  %v4304_v31 = vld [vmem:[#allocation24_spill] sm:$0xff]  ;;  %v37_v57 = vld [vmem:[%s4183_s0 + $0x48] sm:$0xff] }
 0x236   :  { %v1077_v17 = vsel %vm1074_vm11, %v1076_v49, %v1072_v53  ;;  %1154 = vmatmul.bf16.vlgmr.msrb.gmra.mxu0 %v1119_v19  ;;  %1352 = vmatpush.bf16.msra.mxu2 %v3101_v43  ;;  %v4303_v19 = vld [vmem:[#allocation13_spill] sm:$0xff]  ;;  %v4305_v49 = vld [vmem:[#allocation14_spill] sm:$0xff]  ;;  %v4307_v53 = vld [vmem:[#allocation16_spill] sm:$0xff] }
 0x237   :  { %v1100_v45 = vmul.f32 %v1099_v55, %v1077_v17  ;;  %1429 = vmatpush.bf16.msra.mxu3 %v2995_v7  ;;  %1442 = vmatpush.bf16.msrb.mxu0 %v3242_v36  ;;  %v1097_v14 = vsel %vm1094_vm9, %v1096_v48, %v1092_v13  ;;  %v4306_v55 = vld [vmem:[#allocation15_spill] sm:$0xff]  ;;  %v4309_v17 = vld [vmem:[#allocation18_spill] sm:$0xff]  ;;  %v1159_v13 = vunpack.c.l.bf16 %v37_v57  ;;  %v1160_v48 = vunpack.c.h.bf16 %v37_v57 }
 0x238   :  { %v1103_v60 = vsub.f32 1.0, %v1097_v14  ;;  %v1105_v61 = vmul.f32 %v1097_v14, %v3680_v42  ;;  %v1262_v57 = vunpack.c.l.bf16 %v2348_v34 }
 0x239   :  { %v1101_v18 = vadd.f32 %v1100_v45, %v1058_v12  ;;  %v4308_v12 = vld [vmem:[#allocation17_spill] sm:$0xff]  ;;  %v2339_v45 = vld [vmem:[%s4183_s0 + $0x50] sm:$0xf] }
 0x23a   :  { %1353 = vmatpush.bf16.msra.mxu2 %v3113_v47  ;;  %64 = vst [vmem:[#allocation4 + $0x2c] sm:$0xf] %v2339_v45 }
 0x23b   :  { %2812 = vtanh.f32 %v1101_v18  ;;  %1430 = vmatpush.bf16.msra.mxu3 %v3022_v16  ;;  %1443 = vmatpush.bf16.msrb.mxu0 %v3283_v56 }
 0x23e   :  { %1354 = vmatpush.bf16.msra.mxu2 %v3149_v59 }
 0x23f   :  { %1431 = vmatpush.bf16.msra.mxu3 %v3049_v25  ;;  %1444 = vmatpush.bf16.msrb.mxu0 %v3316_v9 }
 0x241   :  { %v2813_v1 = vpop.eup %2812 }
 0x242   :  { %v1104_v23 = vmul.f32 %v2813_v1, %v1103_v60  ;;  %1355 = vmatpush.bf16.msra.mxu2 %v3185_v10 }
 0x243   :  { %1432 = vmatpush.bf16.msra.mxu3 %v3088_v38  ;;  %1445 = vmatpush.bf16.msrb.mxu0 %v3348_v29 }
 0x244   :  { %v1106_v62 = vadd.f32 %v1105_v61, %v1104_v23 }
 0x246   :  { %v3768_v52 = vsel %vm1113_vm15, %v1106_v62, %v3680_v42  ;;  %1356 = vmatpush.bf16.msra.mxu2 %v3227_v30  ;;  %v4299_v42 = vld [vmem:[#allocation10_spill] sm:$0xff] }
 0x247   :  { %v1222_v26 = vpack.c.bf16 %v3768_v52, %v3768_v52  ;;  %1433 = vmatpush.bf16.msra.mxu3 %v3126_v51  ;;  %1446 = vmatpush.bf16.msrb.mxu0 %v3375_v50 }
 0x249   :  { %1231 = vmatmul.bf16.vlgmr.msrb.gmra.mxu1 %v1222_v26  ;;  %1244 = vmatmul.bf16.vlgmr.msrb.gmra.mxu2 %v1222_v26 }
 0x24a   :  { %1257 = vmatmul.bf16.vlgmr.msrb.gmra.mxu3 %v1222_v26  ;;  %1455 = vmatpush.bf16.msrb.mxu1 %v3263_v46  ;;  %v2356_v26 = vld [vmem:[%s4184_s1 + $0x74] sm:$0xf] }
 0x24b   :  { %1357 = vmatpush.bf16.msra.mxu2 %v3275_v54  ;;  %1434 = vmatpush.bf16.msra.mxu3 %v3162_v63  ;;  %131 = vst [vmem:[#allocation5 + $0x38] sm:$0xf] %v2356_v26 }
 0x24c   :  { %1447 = vmatpush.bf16.msrb.mxu0 %v3397_v5 }
 0x24e   :  { %1456 = vmatpush.bf16.msrb.mxu1 %v3301_v2 }
 0x24f   :  { %1358 = vmatpush.bf16.msra.mxu2 %v3311_v6  ;;  %1435 = vmatpush.bf16.msra.mxu3 %v3198_v15 }
 0x250   :  { %1448 = vmatpush.bf16.msrb.mxu0 %v3417_v27 }
 0x252   :  { %1457 = vmatpush.bf16.msrb.mxu1 %v3333_v21 }
 0x253   :  { %1359 = vmatpush.bf16.msra.mxu2 %v3345_v28  ;;  %1436 = vmatpush.bf16.msra.mxu3 %v3240_v35 }
 0x254   :  { %1449 = vmatpush.bf16.msrb.mxu0 %v4280_v0 }
 0x256   :  { %1458 = vmatpush.bf16.msrb.mxu1 %v3364_v40 }
 0x257   :  { %1532 = vmatpush.bf16.msrb.mxu2 %v2984_v3  ;;  %1545 = vmatpush.bf16.msrb.mxu3 %v2997_v8 }
 0x25a   :  { %1459 = vmatpush.bf16.msrb.mxu1 %v3386_v58 }
 0x25b   :  { %1533 = vmatpush.bf16.msrb.mxu2 %v4281_v22  ;;  %1546 = vmatpush.bf16.msrb.mxu3 %v4283_v39 }
 0x25e   :  { %1460 = vmatpush.bf16.msrb.mxu1 %v4282_v44 }
 0x25f   :  { %1534 = vmatpush.bf16.msrb.mxu2 %v4284_v32  ;;  %1547 = vmatpush.bf16.msrb.mxu3 %v4286_v24 }
 0x262   :  { %1461 = vmatpush.bf16.msrb.mxu1 %v4301_v4 }
 0x263   :  { %1535 = vmatpush.bf16.msrb.mxu2 %v4299_v42  ;;  %1548 = vmatpush.bf16.msrb.mxu3 %v4300_v37 }
 0x266   :  { %1462 = vmatpush.bf16.msrb.mxu1 %v4304_v31 }
 0x267   :  { %1536 = vmatpush.bf16.msrb.mxu2 %v4302_v41  ;;  %1549 = vmatpush.bf16.msrb.mxu3 %v4303_v19  ;;  %v1117_v41 = vld [vmem:[#allocation4 + $0x2c] sm:$0xf] }
 0x268   :  { %v1161_v37 = vunpack.c.l.bf16 %v1117_v41 }
 0x26b   :  { %1537 = vmatpush.bf16.msrb.mxu2 %v4305_v49  ;;  %1550 = vmatpush.bf16.msrb.mxu3 %v4306_v55 }
 0x26f   :  { %1538 = vmatpush.bf16.msrb.mxu2 %v4307_v53  ;;  %1551 = vmatpush.bf16.msrb.mxu3 %v4308_v12 }
 0x273   :  { %1539 = vmatpush.bf16.msrb.mxu2 %v4309_v17  ;;  %1552 = vmatpush.bf16.msrb.mxu3 %v4310_v33 }
 0x2b3   :  { %v1155_v18 = vpop.f32.mrf.mxu0 }
 0x2b8   :  { %v1129_v14 = vpop.f32.mrf.mxu2  ;;  %v1142_v60 = vpop.f32.mrf.mxu3 }
 0x2b9   :  { %v1162_v1 = vadd.f32 %v1159_v13, %v1129_v14  ;;  %v1182_v23 = vadd.f32 %v1160_v48, %v1142_v60  ;;  %v1263_v14 = vunpack.c.h.bf16 %v2348_v34 }
 0x2bb   :  { %v2570_v61 = vmul.f32 -1.442695, %v1162_v1  ;;  %v2571_v20 = vmul.f32 -1.442695, %v1182_v23  ;;  %v1157_v62 = vpop.f32.mrf.mxu0 }
 0x2bd   :  { %2814 = vpow2.f32 %v2570_v61 }
 0x2be   :  { %2816 = vpow2.f32 %v2571_v20 }
 0x2c0   :  { %v1131_v45 = vpop.f32.mrf.mxu2  ;;  %v1144_v33 = vpop.f32.mrf.mxu3 }
 0x2c3   :  { %v2815_v17 = vpop.eup %2814 }
 0x2c4   :  { %v2817_v12 = vpop.eup %2816  ;;  %v1166_v53 = vadd.f32 1.0, %v2815_v17 }
 0x2c5   :  { %v1186_v55 = vadd.f32 1.0, %v2817_v12 }
 0x2c6   :  { %2818 = vrcp.f32 %v1166_v53  ;;  %v1232_v13 = vpop.f32.mrf.mxu1  ;;  %v1178_v19 = vand.u32 2147483648, %v1166_v53  ;;  %vm1172_vm1 = vweird.f32 %v1166_v53 }
 0x2c7   :  { %2820 = vrcp.f32 %v1186_v55  ;;  %v1265_v48 = vadd.f32 %v1262_v57, %v1232_v13  ;;  %v1176_v57 = vand.u32 2147483647, %v1166_v53  ;;  %v1198_v41 = vand.u32 2147483648, %v1186_v55 }
 0x2c8   :  { %vm1192_vm5 = vweird.f32 %v1186_v55 }
 0x2c9   :  { %v2573_v60 = vmul.f32 -1.442695, %v1265_v48  ;;  %vm1177_vm3 = vcmp.eq.f32.partialorder %v1176_v57, 8.507059e+37  ;;  %v1199_v57 = vor.u32 1.1754944e-38, %v1198_v41 }
 0x2cb   :  { %2822 = vpow2.f32 %v2573_v60 }
 0x2cc   :  { %v2819_v1 = vpop.eup %2818  ;;  %v1245_v23 = vpop.f32.mrf.mxu2 }
 0x2cd   :  { %v2821_v61 = vpop.eup %2820  ;;  %v1168_v20 = vmul.f32 %v2819_v1, %v1166_v53  ;;  %v1285_v62 = vadd.f32 %v1263_v14, %v1245_v23  ;;  %v3820_v26 = vpop.f32.mrf.mxu3  ;;  %vm1173_vm0 = vweird.f32 %v2819_v1  ;;  %v1179_v14 = vor.u32 1.1754944e-38, %v1178_v19 }
 0x2ce   :  { %v1188_v33 = vmul.f32 %v2821_v61, %v1186_v55  ;;  %v1234_v45 = vpop.f32.mrf.mxu1  ;;  %vm1174_vm2 = vmor %vm1172_vm1, %vm1173_vm0  ;;  %vm1193_vm4 = vweird.f32 %v2821_v61  ;;  %v1196_v19 = vand.u32 2147483647, %v1186_v55  ;;  %v1220_v55 = vld [vmem:[#allocation5 + $0x38] sm:$0xf] }
 0x2cf   :  { %v1169_v49 = vsub.f32 1.0, %v1168_v20  ;;  %v2574_v17 = vmul.f32 -1.442695, %v1285_v62  ;;  %v3825_v20 = vld [vmem:[%s4187_s4] ss:$0 sm:$0xff]  ;;  %vm1194_vm6 = vmor %vm1192_vm5, %vm1193_vm4  ;;  %v1264_v41 = vunpack.c.l.bf16 %v1220_v55 }
 0x2d0   :  { %v1189_v12 = vsub.f32 1.0, %v1188_v33  ;;  %4311 = vst [vmem:[#allocation20_spill] sm:$0xff] %v3825_v20  ;;  %v1202_v62 = vadd.f32 %v3825_v20, %v1155_v18  ;;  %vm1197_vm7 = vcmp.eq.f32.partialorder %v1196_v19, 8.507059e+37 }
 0x2d1   :  { %v1170_v31 = vmul.f32 %v2819_v1, %v1169_v49  ;;  %2824 = vpow2.f32 %v2574_v17  ;;  %v2823_v34 = vpop.eup %2822 }
 0x2d2   :  { %v1190_v13 = vmul.f32 %v2821_v61, %v1189_v12  ;;  %v1269_v60 = vadd.f32 1.0, %v2823_v34 }
 0x2d3   :  { %v1171_v48 = vadd.f32 %v2819_v1, %v1170_v31 }
 0x2d4   :  { %v1247_v23 = vpop.f32.mrf.mxu2  ;;  %2826 = vrcp.f32 %v1269_v60  ;;  %v1191_v17 = vadd.f32 %v2821_v61, %v1190_v13  ;;  %vm1275_vm10 = vweird.f32 %v1269_v60 }
 0x2d5   :  { %v1175_v49 = vsel %vm1174_vm2, %v2819_v1, %v1171_v48  ;;  %v1260_v33 = vpop.f32.mrf.mxu3  ;;  %v3831_v23 = vld [vmem:[%s4183_s0 + $0x60] sm:$0xff] }
 0x2d6   :  { %v1180_v45 = vsel %vm1177_vm3, %v1179_v14, %v1175_v49  ;;  %v1195_v18 = vsel %vm1194_vm6, %v2821_v61, %v1191_v17 }
 0x2d7   :  { %v2825_v31 = vpop.eup %2824  ;;  %v1203_v53 = vmul.f32 %v1202_v62, %v1180_v45  ;;  %v1200_v48 = vsel %vm1197_vm7, %v1199_v57, %v1195_v18  ;;  %v1281_v62 = vand.u32 2147483648, %v1269_v60  ;;  %v1215_v18 = vpop.permute.xlu0 %1214 }
 0x2d8   :  { %v1289_v12 = vadd.f32 1.0, %v2825_v31  ;;  %v1206_v45 = vsub.f32 1.0, %v1200_v48  ;;  %v1208_v17 = vmul.f32 %v1200_v48, %v3745_v11  ;;  %vm1216_vm13 = vcmp.eq.s32.totalorder %v1215_v18, 1 }
 0x2d9   :  { %v1204_v34 = vadd.f32 %v1203_v53, %v1161_v37  ;;  %v1279_v37 = vand.u32 2147483647, %v1269_v60  ;;  %v1282_v19 = vor.u32 1.1754944e-38, %v1281_v62 }
 0x2da   :  { %2828 = vrcp.f32 %v1289_v12  ;;  %v2827_v1 = vpop.eup %2826  ;;  %vm1295_vm9 = vweird.f32 %v1289_v12 }
 0x2db   :  { %2830 = vtanh.f32 %v1204_v34  ;;  %v1271_v13 = vmul.f32 %v2827_v1, %v1269_v60  ;;  %vm1276_vm8 = vweird.f32 %v2827_v1  ;;  %vm1280_vm12 = vcmp.eq.f32.partialorder %v1279_v37, 8.507059e+37 }
 0x2dc   :  { %vm1277_vm11 = vmor %vm1275_vm10, %vm1276_vm8 }
 0x2dd   :  { %v1272_v14 = vsub.f32 1.0, %v1271_v13  ;;  %v3837_v13 = vld [vmem:[%s4188_s5] ss:$0 sm:$0xff] }
 0x2df   :  { %v1273_v33 = vmul.f32 %v2827_v1, %v1272_v14  ;;  %v1305_v14 = vadd.f32 %v3837_v13, %v3820_v26 }
 0x2e0   :  { %v2829_v49 = vpop.eup %2828 }
 0x2e1   :  { %v2831_v31 = vpop.eup %2830  ;;  %v1291_v53 = vmul.f32 %v2829_v49, %v1289_v12  ;;  %v1274_v20 = vadd.f32 %v2827_v1, %v1273_v33  ;;  %vm1296_vm14 = vweird.f32 %v2829_v49 }
 0x2e2   :  { %v1207_v61 = vmul.f32 %v2831_v31, %v1206_v45  ;;  %v1301_v45 = vand.u32 2147483648, %v1289_v12  ;;  %vm1297_vm15 = vmor %vm1295_vm9, %vm1296_vm14 }
 0x2e3   :  { %v1292_v34 = vsub.f32 1.0, %v1291_v53  ;;  %v1278_v57 = vsel %vm1277_vm11, %v2827_v1, %v1274_v20  ;;  %v1299_v1 = vand.u32 2147483647, %v1289_v12 }
 0x2e4   :  { %v1209_v33 = vadd.f32 %v1208_v17, %v1207_v61  ;;  %v1283_v48 = vsel %vm1280_vm12, %v1282_v19, %v1278_v57  ;;  %v1302_v26 = vor.u32 1.1754944e-38, %v1301_v45  ;;  %v4313_v57 = vld [vmem:[#allocation24_spill] sm:$0xff] }
 0x2e5   :  { %v1293_v60 = vmul.f32 %v2829_v49, %v1292_v34  ;;  %v1306_v55 = vmul.f32 %v1305_v14, %v1283_v48  ;;  %vm1300_vm0 = vcmp.eq.f32.partialorder %v1299_v1, 8.507059e+37  ;;  %v1318_v34 = vpop.permute.xlu1 %1317  ;;  %v4314_v14 = vld [vmem:[#allocation12_spill] sm:$0xff]  ;;  %v4317_v48 = vld [vmem:[#allocation15_spill] sm:$0xff] }
 0x2e6   :  { %v3842_v62 = vsel %vm1216_vm13, %v1209_v33, %v3745_v11  ;;  %vm1319_vm1 = vcmp.eq.s32.totalorder %v1318_v34, 1  ;;  %v4315_v33 = vld [vmem:[#allocation13_spill] sm:$0xff]  ;;  %v4318_v45 = vld [vmem:[#allocation16_spill] sm:$0xff]  ;;  %v4321_v1 = vld [vmem:[#allocation19_spill] sm:$0xff] }
 0x2e7   :  { %v1294_v20 = vadd.f32 %v2829_v49, %v1293_v60  ;;  %v1325_v37 = vpack.c.bf16 %v3842_v62, %v3842_v62  ;;  %v1307_v31 = vadd.f32 %v1306_v55, %v1264_v41  ;;  %v4316_v60 = vld [vmem:[#allocation14_spill] sm:$0xff]  ;;  %v4319_v55 = vld [vmem:[#allocation17_spill] sm:$0xff] }
 0x2e9   :  { %v1298_v53 = vsel %vm1297_vm15, %v2829_v49, %v1294_v20  ;;  %1334 = vmatmul.bf16.vlgmr.msra.gmra.mxu0 %v1325_v37  ;;  %1347 = vmatmul.bf16.vlgmr.msra.gmra.mxu1 %v1325_v37  ;;  %2832 = vtanh.f32 %v1307_v31  ;;  %v4320_v20 = vld [vmem:[#allocation18_spill] sm:$0xff]  ;;  %v2340_v31 = vld [vmem:[%s4183_s0 + $0x68] sm:$0xf] }
 0x2ea   :  { %1360 = vmatmul.bf16.vlgmr.msra.gmra.mxu2 %v1325_v37  ;;  %1558 = vmatpush.bf16.msra.mxu0 %v3101_v43  ;;  %v1303_v11 = vsel %vm1300_vm0, %v1302_v26, %v1298_v53  ;;  %v2347_v37 = vld [vmem:[%s4184_s1 + $0x54] sm:$0xff]  ;;  %66 = vst [vmem:[#allocation4 + $0x38] sm:$0xf] %v2340_v31  ;;  %v1365_v53 = vunpack.c.l.bf16 %v3831_v23  ;;  %v1366_v26 = vunpack.c.h.bf16 %v3831_v23  ;;  %v2355_v31 = vld [vmem:[%s4184_s1 + $0x5c] sm:$0xf] }
 0x2eb   :  { %1635 = vmatpush.bf16.msra.mxu1 %v2995_v7  ;;  %1648 = vmatpush.bf16.msra.mxu2 %v3242_v36  ;;  %v1309_v12 = vsub.f32 1.0, %v1303_v11  ;;  %v1311_v17 = vmul.f32 %v1303_v11, %v3768_v52  ;;  %v1469_v23 = vunpack.c.h.bf16 %v2347_v37  ;;  %129 = vst [vmem:[#allocation5 + $0x2c] sm:$0xf] %v2355_v31 }
 0x2ee   :  { %1559 = vmatpush.bf16.msra.mxu0 %v3113_v47 }
 0x2ef   :  { %1636 = vmatpush.bf16.msra.mxu1 %v3022_v16  ;;  %1649 = vmatpush.bf16.msra.mxu2 %v3283_v56  ;;  %v2833_v49 = vpop.eup %2832 }
 0x2f0   :  { %v1310_v61 = vmul.f32 %v2833_v49, %v1309_v12 }
 0x2f2   :  { %1560 = vmatpush.bf16.msra.mxu0 %v3149_v59  ;;  %v1312_v41 = vadd.f32 %v1311_v17, %v1310_v61 }
 0x2f3   :  { %1637 = vmatpush.bf16.msra.mxu1 %v3049_v25  ;;  %1650 = vmatpush.bf16.msra.mxu2 %v3316_v9 }
 0x2f4   :  { %v3857_v19 = vsel %vm1319_vm1, %v1312_v41, %v3768_v52  ;;  %v4312_v52 = vld [vmem:[#allocation11_spill] sm:$0xff] }
 0x2f5   :  { %v1428_v18 = vpack.c.bf16 %v3857_v19, %v3857_v19 }
 0x2f6   :  { %1561 = vmatpush.bf16.msra.mxu0 %v3185_v10 }
 0x2f7   :  { %1638 = vmatpush.bf16.msra.mxu1 %v3088_v38  ;;  %1651 = vmatpush.bf16.msra.mxu2 %v3348_v29 }
 0x2f8   :  { %1437 = vmatmul.bf16.vlgmr.msra.gmra.mxu3 %v1428_v18 }
 0x2f9   :  { %1450 = vmatmul.bf16.vlgmr.msrb.gmra.mxu0 %v1428_v18  ;;  %1463 = vmatmul.bf16.vlgmr.msrb.gmra.mxu1 %v1428_v18 }
 0x2fa   :  { %1562 = vmatpush.bf16.msra.mxu0 %v3227_v30  ;;  %1661 = vmatpush.bf16.msra.mxu3 %v3263_v46 }
 0x2fb   :  { %1639 = vmatpush.bf16.msra.mxu1 %v3126_v51  ;;  %1652 = vmatpush.bf16.msra.mxu2 %v3375_v50 }
 0x2fe   :  { %1563 = vmatpush.bf16.msra.mxu0 %v3275_v54  ;;  %1662 = vmatpush.bf16.msra.mxu3 %v3301_v2 }
 0x2ff   :  { %1640 = vmatpush.bf16.msra.mxu1 %v3162_v63  ;;  %1653 = vmatpush.bf16.msra.mxu2 %v3397_v5 }
 0x302   :  { %1564 = vmatpush.bf16.msra.mxu0 %v3311_v6  ;;  %1663 = vmatpush.bf16.msra.mxu3 %v3333_v21 }
 0x303   :  { %1641 = vmatpush.bf16.msra.mxu1 %v3198_v15  ;;  %1654 = vmatpush.bf16.msra.mxu2 %v3417_v27 }
 0x306   :  { %1565 = vmatpush.bf16.msra.mxu0 %v3345_v28  ;;  %1664 = vmatpush.bf16.msra.mxu3 %v3364_v40 }
 0x307   :  { %1642 = vmatpush.bf16.msra.mxu1 %v3240_v35  ;;  %1655 = vmatpush.bf16.msra.mxu2 %v4280_v0 }
 0x30a   :  { %1738 = vmatpush.bf16.msrb.mxu0 %v2984_v3  ;;  %1665 = vmatpush.bf16.msra.mxu3 %v3386_v58 }
 0x30b   :  { %1751 = vmatpush.bf16.msrb.mxu1 %v2997_v8 }
 0x30e   :  { %1739 = vmatpush.bf16.msrb.mxu0 %v4281_v22  ;;  %1666 = vmatpush.bf16.msra.mxu3 %v4282_v44 }
 0x30f   :  { %1752 = vmatpush.bf16.msrb.mxu1 %v4283_v39 }
 0x312   :  { %1740 = vmatpush.bf16.msrb.mxu0 %v4284_v32  ;;  %1667 = vmatpush.bf16.msra.mxu3 %v4301_v4 }
 0x313   :  { %1753 = vmatpush.bf16.msrb.mxu1 %v4286_v24 }
 0x316   :  { %1741 = vmatpush.bf16.msrb.mxu0 %v4299_v42  ;;  %1668 = vmatpush.bf16.msra.mxu3 %v4313_v57 }
 0x317   :  { %1754 = vmatpush.bf16.msrb.mxu1 %v4312_v52 }
 0x31a   :  { %1742 = vmatpush.bf16.msrb.mxu0 %v4314_v14 }
 0x31b   :  { %1755 = vmatpush.bf16.msrb.mxu1 %v4315_v33 }
 0x31e   :  { %1743 = vmatpush.bf16.msrb.mxu0 %v4316_v60 }
 0x31f   :  { %1756 = vmatpush.bf16.msrb.mxu1 %v4317_v48 }
 0x322   :  { %1744 = vmatpush.bf16.msrb.mxu0 %v4318_v45 }
 0x323   :  { %1757 = vmatpush.bf16.msrb.mxu1 %v4319_v55 }
 0x326   :  { %1745 = vmatpush.bf16.msrb.mxu0 %v4320_v20 }
 0x327   :  { %1758 = vmatpush.bf16.msrb.mxu1 %v4321_v1 }
 0x366   :  { %v1335_v11 = vpop.f32.mrf.mxu0  ;;  %v1348_v12 = vpop.f32.mrf.mxu1 }
 0x367   :  { %v1368_v49 = vadd.f32 %v1365_v53, %v1335_v11  ;;  %v1388_v61 = vadd.f32 %v1366_v26, %v1348_v12 }
 0x369   :  { %v2576_v17 = vmul.f32 -1.442695, %v1368_v49  ;;  %v2577_v34 = vmul.f32 -1.442695, %v1388_v61  ;;  %v1468_v49 = vunpack.c.l.bf16 %v2347_v37 }
 0x36b   :  { %2834 = vpow2.f32 %v2576_v17 }
 0x36c   :  { %2836 = vpow2.f32 %v2577_v34 }
 0x36d   :  { %v1361_v41 = vpop.f32.mrf.mxu2 }
 0x36e   :  { %v1337_v18 = vpop.f32.mrf.mxu0  ;;  %v1350_v1 = vpop.f32.mrf.mxu1 }
 0x371   :  { %v2835_v20 = vpop.eup %2834 }
 0x372   :  { %v2837_v55 = vpop.eup %2836  ;;  %v1372_v45 = vadd.f32 1.0, %v2835_v20 }
 0x373   :  { %v1392_v48 = vadd.f32 1.0, %v2837_v55 }
 0x374   :  { %2838 = vrcp.f32 %v1372_v45  ;;  %v1384_v33 = vand.u32 2147483648, %v1372_v45  ;;  %v1382_v52 = vand.u32 2147483647, %v1372_v45  ;;  %vm1378_vm3 = vweird.f32 %v1372_v45 }
 0x375   :  { %2840 = vrcp.f32 %v1392_v48  ;;  %v1363_v53 = vpop.f32.mrf.mxu2  ;;  %vm1398_vm7 = vweird.f32 %v1392_v48 }
 0x376   :  { %v1451_v26 = vpop.f32.mrf.mxu0  ;;  %v3911_v11 = vpop.f32.mrf.mxu1  ;;  %vm1383_vm5 = vcmp.eq.f32.partialorder %v1382_v52, 8.507059e+37 }
 0x377   :  { %v1491_v12 = vadd.f32 %v1469_v23, %v1451_v26  ;;  %v1323_v23 = vld [vmem:[#allocation4 + $0x38] sm:$0xf] }
 0x379   :  { %v2580_v61 = vmul.f32 -1.442695, %v1491_v12  ;;  %v1385_v12 = vor.u32 1.1754944e-38, %v1384_v33 }
 0x37a   :  { %v2839_v1 = vpop.eup %2838 }
 0x37b   :  { %v2841_v17 = vpop.eup %2840  ;;  %v1374_v34 = vmul.f32 %v2839_v1, %v1372_v45  ;;  %2842 = vpow2.f32 %v2580_v61  ;;  %v1438_v20 = vpop.f32.mrf.mxu3  ;;  %vm1379_vm2 = vweird.f32 %v2839_v1  ;;  %v1402_v45 = vand.u32 2147483647, %v1392_v48 }
 0x37c   :  { %v1394_v18 = vmul.f32 %v2841_v17, %v1392_v48  ;;  %v1471_v57 = vadd.f32 %v1468_v49, %v1438_v20  ;;  %vm1380_vm4 = vmor %vm1378_vm3, %vm1379_vm2  ;;  %v1367_v49 = vunpack.c.l.bf16 %v1323_v23  ;;  %v4322_v20 = vld [vmem:[#allocation20_spill] sm:$0xff]  ;;  %vm1399_vm6 = vweird.f32 %v2841_v17 }
 0x37d   :  { %v1375_v60 = vsub.f32 1.0, %v1374_v34  ;;  %vm1400_vm8 = vmor %vm1398_vm7, %vm1399_vm6  ;;  %vm1403_vm10 = vcmp.eq.f32.partialorder %v1402_v45, 8.507059e+37 }
 0x37e   :  { %v1395_v55 = vsub.f32 1.0, %v1394_v18  ;;  %v2579_v31 = vmul.f32 -1.442695, %v1471_v57  ;;  %v1453_v4 = vpop.f32.mrf.mxu0  ;;  %v1466_v14 = vpop.f32.mrf.mxu1  ;;  %v1408_v57 = vadd.f32 %v4322_v20, %v1361_v41  ;;  %v1404_v18 = vand.u32 2147483648, %v1392_v48 }
 0x37f   :  { %v1376_v53 = vmul.f32 %v2839_v1, %v1375_v60  ;;  %v1421_v48 = vpop.permute.xlu2 %1420 }
 0x380   :  { %v1396_v44 = vmul.f32 %v2841_v17, %v1395_v55  ;;  %2844 = vpow2.f32 %v2579_v31  ;;  %v1405_v23 = vor.u32 1.1754944e-38, %v1404_v18  ;;  %vm1422_vm11 = vcmp.eq.s32.totalorder %v1421_v48, 1 }
 0x381   :  { %v2843_v37 = vpop.eup %2842  ;;  %v1377_v26 = vadd.f32 %v2839_v1, %v1376_v53 }
 0x382   :  { %v3913_v61 = vadd.f32 1.0, %v2843_v37  ;;  %v1397_v14 = vadd.f32 %v2841_v17, %v1396_v44 }
 0x383   :  { %v1381_v34 = vsel %vm1380_vm4, %v2839_v1, %v1377_v26  ;;  %v1440_v4 = vpop.f32.mrf.mxu3 }
 0x384   :  { %v1386_v60 = vsel %vm1383_vm5, %v1385_v12, %v1381_v34  ;;  %2846 = vrcp.f32 %v3913_v61  ;;  %v1401_v37 = vsel %vm1400_vm8, %v2841_v17, %v1397_v14  ;;  %vm1501_vm0 = vweird.f32 %v3913_v61 }
 0x385   :  { %v1409_v55 = vmul.f32 %v1408_v57, %v1386_v60  ;;  %v1406_v41 = vsel %vm1403_vm10, %v1405_v23, %v1401_v37  ;;  %v1426_v37 = vld [vmem:[#allocation5 + $0x2c] sm:$0xf] }
 0x386   :  { %v2845_v31 = vpop.eup %2844  ;;  %v1412_v44 = vsub.f32 1.0, %v1406_v41  ;;  %v1414_v57 = vmul.f32 %v1406_v41, %v3842_v62 }
 0x387   :  { %v1410_v33 = vadd.f32 %v1409_v55, %v1367_v49  ;;  %v1475_v53 = vadd.f32 1.0, %v2845_v31 }
 0x389   :  { %2848 = vtanh.f32 %v1410_v33  ;;  %v1487_v14 = vand.u32 2147483648, %v1475_v53  ;;  %v1485_v31 = vand.u32 2147483647, %v1475_v53  ;;  %vm1481_vm13 = vweird.f32 %v1475_v53 }
 0x38a   :  { %2850 = vrcp.f32 %v1475_v53  ;;  %v2847_v52 = vpop.eup %2846 }
 0x38b   :  { %v1497_v1 = vmul.f32 %v2847_v52, %v3913_v61  ;;  %v1488_v41 = vor.u32 1.1754944e-38, %v1487_v14  ;;  %vm1486_vm9 = vcmp.eq.f32.partialorder %v1485_v31, 8.507059e+37  ;;  %vm1502_vm15 = vweird.f32 %v2847_v52  ;;  %v1524_v14 = vpop.permute.xlu0 %1523 }
 0x38c   :  { %vm1503_vm1 = vmor %vm1501_vm0, %vm1502_vm15  ;;  %vm1525_vm3 = vcmp.eq.s32.totalorder %v1524_v14, 1 }
 0x38d   :  { %v1498_v49 = vsub.f32 1.0, %v1497_v1 }
 0x38f   :  { %v2849_v26 = vpop.eup %2848  ;;  %v1499_v33 = vmul.f32 %v2847_v52, %v1498_v49 }
 0x390   :  { %v2851_v12 = vpop.eup %2850  ;;  %v1413_v34 = vmul.f32 %v2849_v26, %v1412_v44  ;;  %v1470_v44 = vunpack.c.l.bf16 %v1426_v37  ;;  %v4328_v37 = vld [vmem:[#allocation14_spill] sm:$0xff] }
 0x391   :  { %v1477_v4 = vmul.f32 %v2851_v12, %v1475_v53  ;;  %vm1482_vm12 = vweird.f32 %v2851_v12  ;;  %v1500_v26 = vadd.f32 %v2847_v52, %v1499_v33  ;;  %v4325_v33 = vld [vmem:[#allocation12_spill] sm:$0xff] }
 0x392   :  { %v1415_v60 = vadd.f32 %v1414_v57, %v1413_v34  ;;  %vm1483_vm14 = vmor %vm1481_vm13, %vm1482_vm12  ;;  %v1507_v34 = vand.u32 2147483648, %v3913_v61 }
 0x393   :  { %v1478_v17 = vsub.f32 1.0, %v1477_v4  ;;  %v1505_v4 = vand.u32 2147483647, %v3913_v61 }
 0x394   :  { %v3920_v18 = vsel %vm1422_vm11, %v1415_v60, %v3842_v62  ;;  %v1511_v62 = vadd.f32 %v3837_v13, %v3911_v11  ;;  %v1508_v48 = vor.u32 1.1754944e-38, %v1507_v34 }
 0x395   :  { %v1479_v55 = vmul.f32 %v2851_v12, %v1478_v17  ;;  %v1531_v45 = vpack.c.bf16 %v3920_v18, %v3920_v18  ;;  %vm1506_vm2 = vcmp.eq.f32.partialorder %v1505_v4, 8.507059e+37 }
 0x397   :  { %v1480_v23 = vadd.f32 %v2851_v12, %v1479_v55  ;;  %1540 = vmatmul.bf16.vlgmr.msrb.gmra.mxu2 %v1531_v45  ;;  %1553 = vmatmul.bf16.vlgmr.msrb.gmra.mxu3 %v1531_v45 }
 0x398   :  { %1566 = vmatmul.bf16.vlgmr.msra.gmra.mxu0 %v1531_v45  ;;  %1764 = vmatpush.bf16.msrb.mxu2 %v3101_v43 }
 0x399   :  { %v1484_v1 = vsel %vm1483_vm14, %v2851_v12, %v1480_v23  ;;  %1841 = vmatpush.bf16.msrb.mxu3 %v2995_v7  ;;  %1854 = vmatpush.bf16.msra.mxu0 %v3242_v36  ;;  %v1504_v12 = vsel %vm1503_vm1, %v2847_v52, %v1500_v26  ;;  %v4331_v23 = vld [vmem:[#allocation16_spill] sm:$0xff] }
 0x39a   :  { %v1489_v53 = vsel %vm1486_vm9, %v1488_v41, %v1484_v1  ;;  %v1509_v60 = vsel %vm1506_vm2, %v1508_v48, %v1504_v12  ;;  %v4334_v41 = vld [vmem:[#allocation19_spill] sm:$0xff]  ;;  %v2346_v1 = vld [vmem:[%s4184_s1 + $0x3c] sm:$0xff] }
 0x39b   :  { %v1512_v57 = vmul.f32 %v1511_v62, %v1489_v53  ;;  %v1515_v61 = vsub.f32 1.0, %v1509_v60  ;;  %v1517_v52 = vmul.f32 %v1509_v60, %v3857_v19  ;;  %v41_v62 = vld [vmem:[%s4183_s0 + $0x78] sm:$0xff] }
 0x39c   :  { %1765 = vmatpush.bf16.msrb.mxu2 %v3113_v47  ;;  %v1571_v53 = vunpack.c.l.bf16 %v41_v62  ;;  %v1572_v34 = vunpack.c.h.bf16 %v41_v62 }
 0x39d   :  { %v1513_v11 = vadd.f32 %v1512_v57, %v1470_v44  ;;  %1842 = vmatpush.bf16.msrb.mxu3 %v3022_v16  ;;  %1855 = vmatpush.bf16.msra.mxu0 %v3283_v56  ;;  %v2341_v44 = vld [vmem:[%s4183_s0 + $0x80] sm:$0xf] }
 0x39e   :  { %68 = vst [vmem:[#allocation4 + $0x44] sm:$0xf] %v2341_v44 }
 0x39f   :  { %2852 = vtanh.f32 %v1513_v11 }
 0x3a0   :  { %1766 = vmatpush.bf16.msrb.mxu2 %v3149_v59 }
 0x3a1   :  { %1843 = vmatpush.bf16.msrb.mxu3 %v3049_v25  ;;  %1856 = vmatpush.bf16.msra.mxu0 %v3316_v9 }
 0x3a4   :  { %1767 = vmatpush.bf16.msrb.mxu2 %v3185_v10 }
 0x3a5   :  { %v2853_v49 = vpop.eup %2852  ;;  %1844 = vmatpush.bf16.msrb.mxu3 %v3088_v38  ;;  %1857 = vmatpush.bf16.msra.mxu0 %v3348_v29 }
 0x3a6   :  { %v1516_v17 = vmul.f32 %v2853_v49, %v1515_v61  ;;  %v2354_v49 = vld [vmem:[%s4184_s1 + $0x44] sm:$0xf] }
 0x3a7   :  { %127 = vst [vmem:[#allocation5 + $0x20] sm:$0xf] %v2354_v49  ;;  %v1529_v49 = vld [vmem:[#allocation4 + $0x44] sm:$0xf] }
 0x3a8   :  { %v1518_v55 = vadd.f32 %v1517_v52, %v1516_v17  ;;  %1768 = vmatpush.bf16.msrb.mxu2 %v3227_v30 }
 0x3a9   :  { %1845 = vmatpush.bf16.msrb.mxu3 %v3126_v51  ;;  %1858 = vmatpush.bf16.msra.mxu0 %v3375_v50 }
 0x3aa   :  { %v3946_v31 = vsel %vm1525_vm3, %v1518_v55, %v3857_v19  ;;  %v4324_v19 = vld [vmem:[#allocation11_spill] sm:$0xff] }
 0x3ab   :  { %v1634_v45 = vpack.c.bf16 %v3946_v31, %v3946_v31 }
 0x3ac   :  { %1769 = vmatpush.bf16.msrb.mxu2 %v3275_v54 }
 0x3ad   :  { %1643 = vmatmul.bf16.vlgmr.msra.gmra.mxu1 %v1634_v45  ;;  %1656 = vmatmul.bf16.vlgmr.msra.gmra.mxu2 %v1634_v45 }
 0x3ae   :  { %1669 = vmatmul.bf16.vlgmr.msra.gmra.mxu3 %v1634_v45  ;;  %1867 = vmatpush.bf16.msra.mxu1 %v3263_v46 }
 0x3af   :  { %1846 = vmatpush.bf16.msrb.mxu3 %v3162_v63  ;;  %1859 = vmatpush.bf16.msra.mxu0 %v3397_v5 }
 0x3b0   :  { %1770 = vmatpush.bf16.msrb.mxu2 %v3311_v6 }
 0x3b2   :  { %1868 = vmatpush.bf16.msra.mxu1 %v3301_v2 }
 0x3b3   :  { %1847 = vmatpush.bf16.msrb.mxu3 %v3198_v15  ;;  %1860 = vmatpush.bf16.msra.mxu0 %v3417_v27 }
 0x3b4   :  { %1771 = vmatpush.bf16.msrb.mxu2 %v3345_v28 }
 0x3b6   :  { %1869 = vmatpush.bf16.msra.mxu1 %v3333_v21 }
 0x3b7   :  { %1848 = vmatpush.bf16.msrb.mxu3 %v3240_v35  ;;  %1861 = vmatpush.bf16.msra.mxu0 %v4280_v0 }
 0x3b8   :  { %1944 = vmatpush.bf16.msra.mxu2 %v2984_v3  ;;  %v4323_v3 = vld [vmem:[#allocation21_spill] sm:$0xff] }
 0x3ba   :  { %1870 = vmatpush.bf16.msra.mxu1 %v3364_v40 }
 0x3bb   :  { %1957 = vmatpush.bf16.msra.mxu3 %v2997_v8  ;;  %v4326_v8 = vld [vmem:[#allocation22_spill] sm:$0xff] }
 0x3bc   :  { %1945 = vmatpush.bf16.msra.mxu2 %v4281_v22  ;;  %v4327_v22 = vld [vmem:[#allocation13_spill] sm:$0xff] }
 0x3be   :  { %1871 = vmatpush.bf16.msra.mxu1 %v3386_v58 }
 0x3bf   :  { %1958 = vmatpush.bf16.msra.mxu3 %v4283_v39  ;;  %v4329_v39 = vld [vmem:[#allocation24_spill] sm:$0xff] }
 0x3c0   :  { %1946 = vmatpush.bf16.msra.mxu2 %v4284_v32  ;;  %v4330_v32 = vld [vmem:[#allocation15_spill] sm:$0xff] }
 0x3c2   :  { %1872 = vmatpush.bf16.msra.mxu1 %v4323_v3 }
 0x3c3   :  { %1959 = vmatpush.bf16.msra.mxu3 %v4286_v24  ;;  %v4332_v24 = vld [vmem:[#allocation17_spill] sm:$0xff] }
 0x3c4   :  { %1947 = vmatpush.bf16.msra.mxu2 %v4299_v42  ;;  %v4333_v42 = vld [vmem:[#allocation18_spill] sm:$0xff] }
 0x3c6   :  { %1873 = vmatpush.bf16.msra.mxu1 %v4326_v8 }
 0x3c7   :  { %1960 = vmatpush.bf16.msra.mxu3 %v4324_v19 }
 0x3c8   :  { %1948 = vmatpush.bf16.msra.mxu2 %v4325_v33  ;;  %v1674_v33 = vunpack.c.l.bf16 %v2346_v1 }
 0x3ca   :  { %1874 = vmatpush.bf16.msra.mxu1 %v4329_v39 }
 0x3cb   :  { %1961 = vmatpush.bf16.msra.mxu3 %v4327_v22 }
 0x3cc   :  { %1949 = vmatpush.bf16.msra.mxu2 %v4328_v37 }
 0x3cf   :  { %1962 = vmatpush.bf16.msra.mxu3 %v4330_v32 }
 0x3d0   :  { %1950 = vmatpush.bf16.msra.mxu2 %v4331_v23  ;;  %v1675_v23 = vunpack.c.h.bf16 %v2346_v1 }
 0x3d3   :  { %1963 = vmatpush.bf16.msra.mxu3 %v4332_v24 }
 0x3d4   :  { %1951 = vmatpush.bf16.msra.mxu2 %v4333_v42 }
 0x3d7   :  { %1964 = vmatpush.bf16.msra.mxu3 %v4334_v41 }
 0x415   :  { %v1567_v26 = vpop.f32.mrf.mxu0 }
 0x41a   :  { %v1541_v57 = vpop.f32.mrf.mxu2  ;;  %v1554_v4 = vpop.f32.mrf.mxu3 }
 0x41b   :  { %v1574_v11 = vadd.f32 %v1571_v53, %v1541_v57  ;;  %v1594_v12 = vadd.f32 %v1572_v34, %v1554_v4 }
 0x41d   :  { %v2582_v48 = vmul.f32 -1.442695, %v1574_v11  ;;  %v2583_v60 = vmul.f32 -1.442695, %v1594_v12  ;;  %v1569_v61 = vpop.f32.mrf.mxu0 }
 0x41f   :  { %2854 = vpow2.f32 %v2582_v48 }
 0x420   :  { %2856 = vpow2.f32 %v2583_v60 }
 0x422   :  { %v1543_v17 = vpop.f32.mrf.mxu2  ;;  %v1556_v52 = vpop.f32.mrf.mxu3 }
 0x425   :  { %v2855_v14 = vpop.eup %2854 }
 0x426   :  { %v2857_v55 = vpop.eup %2856  ;;  %v1578_v45 = vadd.f32 1.0, %v2855_v14 }
 0x427   :  { %v1598_v19 = vadd.f32 1.0, %v2857_v55 }
 0x428   :  { %2858 = vrcp.f32 %v1578_v45  ;;  %v1590_v4 = vand.u32 2147483648, %v1578_v45  ;;  %v1588_v60 = vand.u32 2147483647, %v1578_v45  ;;  %vm1584_vm5 = vweird.f32 %v1578_v45 }
 0x429   :  { %2860 = vrcp.f32 %v1598_v19  ;;  %vm1604_vm10 = vweird.f32 %v1598_v19 }
 0x42a   :  { %v1644_v22 = vpop.f32.mrf.mxu1  ;;  %v1591_v14 = vor.u32 1.1754944e-38, %v1590_v4  ;;  %vm1589_vm7 = vcmp.eq.f32.partialorder %v1588_v60, 8.507059e+37 }
 0x42b   :  { %v1677_v37 = vadd.f32 %v1674_v33, %v1644_v22  ;;  %v1614_v33 = vadd.f32 %v4322_v20, %v1567_v26  ;;  %v1573_v22 = vunpack.c.l.bf16 %v1529_v49  ;;  %v4001_v20 = vld [vmem:[%s4183_s0 + $0x90] sm:$0xff] }
 0x42d   :  { %v2585_v32 = vmul.f32 -1.442695, %v1677_v37 }
 0x42e   :  { %v2859_v24 = vpop.eup %2858 }
 0x42f   :  { %v2861_v42 = vpop.eup %2860  ;;  %v1580_v41 = vmul.f32 %v2859_v24, %v1578_v45  ;;  %2862 = vpow2.f32 %v2585_v32  ;;  %vm1585_vm4 = vweird.f32 %v2859_v24 }
 0x430   :  { %v1600_v62 = vmul.f32 %v2861_v42, %v1598_v19  ;;  %v1657_v44 = vpop.f32.mrf.mxu2  ;;  %vm1586_vm6 = vmor %vm1584_vm5, %vm1585_vm4  ;;  %vm1605_vm8 = vweird.f32 %v2861_v42 }
 0x431   :  { %v1581_v53 = vsub.f32 1.0, %v1580_v41  ;;  %v1697_v34 = vadd.f32 %v1675_v23, %v1657_v44  ;;  %v3995_v57 = vpop.f32.mrf.mxu3  ;;  %v1610_v44 = vand.u32 2147483648, %v1598_v19  ;;  %vm1606_vm11 = vmor %vm1604_vm10, %vm1605_vm8 }
 0x432   :  { %v1601_v11 = vsub.f32 1.0, %v1600_v62  ;;  %v1646_v12 = vpop.f32.mrf.mxu1 }
 0x433   :  { %v1582_v48 = vmul.f32 %v2859_v24, %v1581_v53  ;;  %v2586_v61 = vmul.f32 -1.442695, %v1697_v34  ;;  %v1608_v34 = vand.u32 2147483647, %v1598_v19  ;;  %v1611_v26 = vor.u32 1.1754944e-38, %v1610_v44 }
 0x434   :  { %v1602_v17 = vmul.f32 %v2861_v42, %v1601_v11 }
 0x435   :  { %v2863_v1 = vpop.eup %2862  ;;  %v1583_v52 = vadd.f32 %v2859_v24, %v1582_v48  ;;  %2864 = vpow2.f32 %v2586_v61  ;;  %vm1609_vm12 = vcmp.eq.f32.partialorder %v1608_v34, 8.507059e+37 }
 0x436   :  { %v1681_v55 = vadd.f32 1.0, %v2863_v1  ;;  %v1603_v23 = vadd.f32 %v2861_v42, %v1602_v17  ;;  %v1632_v1 = vld [vmem:[#allocation5 + $0x20] sm:$0xf] }
 0x437   :  { %v1587_v37 = vsel %vm1586_vm6, %v2859_v24, %v1583_v52 }
 0x438   :  { %v1592_v32 = vsel %vm1589_vm7, %v1591_v14, %v1587_v37  ;;  %2866 = vrcp.f32 %v1681_v55  ;;  %v1659_v41 = vpop.f32.mrf.mxu2  ;;  %v1607_v4 = vsel %vm1606_vm11, %v2861_v42, %v1603_v23  ;;  %v1693_v49 = vand.u32 2147483648, %v1681_v55  ;;  %v1627_v37 = vpop.permute.xlu1 %1626 }
 0x439   :  { %v1615_v62 = vmul.f32 %v1614_v33, %v1592_v32  ;;  %v1672_v53 = vpop.f32.mrf.mxu3  ;;  %v1612_v60 = vsel %vm1609_vm12, %v1611_v26, %v1607_v4  ;;  %v1691_v42 = vand.u32 2147483647, %v1681_v55  ;;  %vm1687_vm14 = vweird.f32 %v1681_v55 }
 0x43a   :  { %v1618_v19 = vsub.f32 1.0, %v1612_v60  ;;  %vm1628_vm9 = vcmp.eq.s32.totalorder %v1627_v37, 1  ;;  %v1676_v41 = vunpack.c.l.bf16 %v1632_v1 }
 0x43b   :  { %v2865_v45 = vpop.eup %2864  ;;  %v1616_v11 = vadd.f32 %v1615_v62, %v1573_v22  ;;  %v1620_v22 = vmul.f32 %v1612_v60, %v3920_v18  ;;  %v1694_v62 = vor.u32 1.1754944e-38, %v1693_v49  ;;  %vm1692_vm0 = vcmp.eq.f32.partialorder %v1691_v42, 8.507059e+37 }
 0x43c   :  { %v1701_v12 = vadd.f32 1.0, %v2865_v45  ;;  %v1717_v45 = vadd.f32 %v3837_v13, %v3995_v57 }
 0x43d   :  { %2868 = vtanh.f32 %v1616_v11 }
 0x43e   :  { %v2867_v24 = vpop.eup %2866  ;;  %2870 = vrcp.f32 %v1701_v12  ;;  %v1713_v11 = vand.u32 2147483648, %v1701_v12  ;;  %vm1707_vm2 = vweird.f32 %v1701_v12 }
 0x43f   :  { %v1683_v48 = vmul.f32 %v2867_v24, %v1681_v55  ;;  %vm1688_vm13 = vweird.f32 %v2867_v24 }
 0x440   :  { %vm1689_vm15 = vmor %vm1687_vm14, %vm1688_vm13  ;;  %v1714_v13 = vor.u32 1.1754944e-38, %v1713_v11 }
 0x441   :  { %v1684_v61 = vsub.f32 1.0, %v1683_v48 }
 0x443   :  { %v2869_v17 = vpop.eup %2868  ;;  %v1685_v52 = vmul.f32 %v2867_v24, %v1684_v61  ;;  %v1711_v61 = vand.u32 2147483647, %v1701_v12 }
 0x444   :  { %v2871_v14 = vpop.eup %2870  ;;  %v1619_v33 = vmul.f32 %v2869_v17, %v1618_v19 }
 0x445   :  { %v1703_v32 = vmul.f32 %v2871_v14, %v1701_v12  ;;  %v1686_v23 = vadd.f32 %v2867_v24, %v1685_v52  ;;  %vm1708_vm1 = vweird.f32 %v2871_v14  ;;  %vm1712_vm4 = vcmp.eq.f32.partialorder %v1711_v61, 8.507059e+37 }
 0x446   :  { %v1621_v44 = vadd.f32 %v1620_v22, %v1619_v33  ;;  %vm1709_vm3 = vmor %vm1707_vm2, %vm1708_vm1 }
 0x447   :  { %v1704_v53 = vsub.f32 1.0, %v1703_v32  ;;  %v1690_v34 = vsel %vm1689_vm15, %v2867_v24, %v1686_v23 }
 0x448   :  { %v1695_v4 = vsel %vm1692_vm0, %v1694_v62, %v1690_v34  ;;  %v4007_v26 = vsel %vm1628_vm9, %v1621_v44, %v3920_v18 }
 0x449   :  { %v1705_v48 = vmul.f32 %v2871_v14, %v1704_v53  ;;  %v1718_v60 = vmul.f32 %v1717_v45, %v1695_v4  ;;  %v1737_v55 = vpack.c.bf16 %v4007_v26, %v4007_v26 }
 0x44b   :  { %v1706_v49 = vadd.f32 %v2871_v14, %v1705_v48  ;;  %v1719_v19 = vadd.f32 %v1718_v60, %v1676_v41  ;;  %1746 = vmatmul.bf16.vlgmr.msrb.gmra.mxu0 %v1737_v55  ;;  %1759 = vmatmul.bf16.vlgmr.msrb.gmra.mxu1 %v1737_v55  ;;  %v4067_v60 = vld [vmem:[%s4187_s4] ss:$0 sm:$0xff] }
 0x44c   :  { %1772 = vmatmul.bf16.vlgmr.msrb.gmra.mxu2 %v1737_v55  ;;  %1970 = vmatpush.bf16.msrb.mxu0 %v3101_v43 }
 0x44d   :  { %v1710_v57 = vsel %vm1709_vm3, %v2871_v14, %v1706_v49  ;;  %2872 = vtanh.f32 %v1719_v19  ;;  %2046 = vmatpush.bf16.msrb.mxu1 %v2995_v7  ;;  %2059 = vmatpush.bf16.msrb.mxu2 %v3242_v36  ;;  %v1730_v7 = vpop.permute.xlu2 %1729 }
 0x44e   :  { %v1715_v18 = vsel %vm1712_vm4, %v1714_v13, %v1710_v57  ;;  %vm1731_vm5 = vcmp.eq.s32.totalorder %v1730_v7, 1 }
 0x44f   :  { %v1721_v12 = vsub.f32 1.0, %v1715_v18  ;;  %v1723_v43 = vmul.f32 %v1715_v18, %v3946_v31 }
 0x450   :  { %1971 = vmatpush.bf16.msrb.mxu0 %v3113_v47 }
 0x451   :  { %2047 = vmatpush.bf16.msrb.mxu1 %v3022_v16  ;;  %2060 = vmatpush.bf16.msrb.mxu2 %v3283_v56 }
 0x453   :  { %v2873_v24 = vpop.eup %2872 }
 0x454   :  { %v1722_v17 = vmul.f32 %v2873_v24, %v1721_v12  ;;  %1972 = vmatpush.bf16.msrb.mxu0 %v3149_v59  ;;  %v1778_v59 = vunpack.c.h.bf16 %v4001_v20 }
 0x455   :  { %2048 = vmatpush.bf16.msrb.mxu1 %v3049_v25  ;;  %2061 = vmatpush.bf16.msrb.mxu2 %v3316_v9  ;;  %v2345_v25 = vld [vmem:[%s4184_s1 + $0x24] sm:$0xff] }
 0x456   :  { %v1724_v36 = vadd.f32 %v1723_v43, %v1722_v17 }
 0x458   :  { %v4022_v47 = vsel %vm1731_vm5, %v1724_v36, %v3946_v31  ;;  %1973 = vmatpush.bf16.msrb.mxu0 %v3185_v10  ;;  %v1880_v31 = vunpack.c.l.bf16 %v2345_v25 }
 0x459   :  { %v1840_v16 = vpack.c.bf16 %v4022_v47, %v4022_v47  ;;  %2049 = vmatpush.bf16.msrb.mxu1 %v3088_v38  ;;  %2062 = vmatpush.bf16.msrb.mxu2 %v3348_v29  ;;  %v2342_v38 = vld [vmem:[%s4183_s0 + $0x98] sm:$0xf]  ;;  %v1881_v29 = vunpack.c.h.bf16 %v2345_v25 }
 0x45a   :  { %70 = vst [vmem:[#allocation4 + $0x50] sm:$0xf] %v2342_v38 }
 0x45b   :  { %1849 = vmatmul.bf16.vlgmr.msrb.gmra.mxu3 %v1840_v16  ;;  %1862 = vmatmul.bf16.vlgmr.msra.gmra.mxu0 %v1840_v16 }
 0x45c   :  { %1875 = vmatmul.bf16.vlgmr.msra.gmra.mxu1 %v1840_v16  ;;  %1974 = vmatpush.bf16.msrb.mxu0 %v3227_v30 }
 0x45d   :  { %2072 = vmatpush.bf16.msrb.mxu3 %v3263_v46  ;;  %2050 = vmatpush.bf16.msrb.mxu1 %v3126_v51  ;;  %v1777_v51 = vunpack.c.l.bf16 %v4001_v20 }
 0x45e   :  { %2063 = vmatpush.bf16.msrb.mxu2 %v3375_v50 }
 0x460   :  { %1975 = vmatpush.bf16.msrb.mxu0 %v3275_v54 }
 0x461   :  { %2073 = vmatpush.bf16.msrb.mxu3 %v3301_v2  ;;  %2051 = vmatpush.bf16.msrb.mxu1 %v3162_v63  ;;  %v1735_v44 = vld [vmem:[#allocation4 + $0x50] sm:$0xf] }
 0x462   :  { %2064 = vmatpush.bf16.msrb.mxu2 %v3397_v5  ;;  %v1779_v4 = vunpack.c.l.bf16 %v1735_v44  ;;  %v45_v44 = vld [vmem:[%s4183_s0 + $0xa8] sm:$0xff] }
 0x464   :  { %1976 = vmatpush.bf16.msrb.mxu0 %v3311_v6 }
 0x465   :  { %2074 = vmatpush.bf16.msrb.mxu3 %v3333_v21  ;;  %2052 = vmatpush.bf16.msrb.mxu1 %v3198_v15 }
 0x466   :  { %2065 = vmatpush.bf16.msrb.mxu2 %v3417_v27 }
 0x468   :  { %1977 = vmatpush.bf16.msrb.mxu0 %v3345_v28 }
 0x469   :  { %2075 = vmatpush.bf16.msrb.mxu3 %v3364_v40  ;;  %2053 = vmatpush.bf16.msrb.mxu1 %v3240_v35  ;;  %v2353_v40 = vld [vmem:[%s4184_s1 + $0x2c] sm:$0xf] }
 0x46a   :  { %2066 = vmatpush.bf16.msrb.mxu2 %v4280_v0  ;;  %125 = vst [vmem:[#allocation5 + $0x14] sm:$0xf] %v2353_v40 }
 0x46d   :  { %2076 = vmatpush.bf16.msrb.mxu3 %v3386_v58 }
 0x471   :  { %2077 = vmatpush.bf16.msrb.mxu3 %v4323_v3 }
 0x475   :  { %2078 = vmatpush.bf16.msrb.mxu3 %v4326_v8 }
 0x479   :  { %2079 = vmatpush.bf16.msrb.mxu3 %v4329_v39 }
 0x4c8   :  { %v1747_v63 = vpop.f32.mrf.mxu0  ;;  %v1760_v10 = vpop.f32.mrf.mxu1 }
 0x4c9   :  { %v1780_v15 = vadd.f32 %v1777_v51, %v1747_v63  ;;  %v1800_v30 = vadd.f32 %v1778_v59, %v1760_v10 }
 0x4cb   :  { %v2588_v35 = vmul.f32 -1.442695, %v1780_v15  ;;  %v2589_v46 = vmul.f32 -1.442695, %v1800_v30  ;;  %v1833_v30 = vpop.permute.xlu0 %1832 }
 0x4cc   :  { %vm1834_vm9 = vcmp.eq.s32.totalorder %v1833_v30, 1 }
 0x4cd   :  { %2874 = vpow2.f32 %v2588_v35 }
 0x4ce   :  { %2876 = vpow2.f32 %v2589_v46 }
 0x4cf   :  { %v1773_v54 = vpop.f32.mrf.mxu2 }
 0x4d0   :  { %v1749_v56 = vpop.f32.mrf.mxu0  ;;  %v1762_v2 = vpop.f32.mrf.mxu1  ;;  %v1820_v55 = vadd.f32 %v4067_v60, %v1773_v54 }
 0x4d3   :  { %v2875_v6 = vpop.eup %2874 }
 0x4d4   :  { %v2877_v9 = vpop.eup %2876  ;;  %v1784_v21 = vadd.f32 1.0, %v2875_v6 }
 0x4d5   :  { %v1804_v28 = vadd.f32 1.0, %v2877_v9 }
 0x4d6   :  { %2878 = vrcp.f32 %v1784_v21  ;;  %v1796_v33 = vand.u32 2147483648, %v1784_v21  ;;  %v1794_v32 = vand.u32 2147483647, %v1784_v21  ;;  %vm1790_vm7 = vweird.f32 %v1784_v21 }
 0x4d7   :  { %2880 = vrcp.f32 %v1804_v28  ;;  %v1775_v50 = vpop.f32.mrf.mxu2  ;;  %v1816_v13 = vand.u32 2147483648, %v1804_v28  ;;  %vm1810_vm12 = vweird.f32 %v1804_v28  ;;  %v1814_v18 = vand.u32 2147483647, %v1804_v28 }
 0x4d8   :  { %v1863_v58 = vpop.f32.mrf.mxu0  ;;  %v1797_v45 = vor.u32 1.1754944e-38, %v1796_v33  ;;  %vm1795_vm10 = vcmp.eq.f32.partialorder %v1794_v32, 8.507059e+37 }
 0x4d9   :  { %v1903_v5 = vadd.f32 %v1881_v29, %v1863_v58  ;;  %v4060_v27 = vpop.f32.mrf.mxu1  ;;  %v1817_v7 = vor.u32 1.1754944e-38, %v1816_v13  ;;  %vm1815_vm14 = vcmp.eq.f32.partialorder %v1814_v18, 8.507059e+37  ;;  %v1838_v29 = vld [vmem:[#allocation5 + $0x14] sm:$0xf]  ;;  %v2719_v18 = vld [vmem:[%s4190_s7 + $0x38] sm:$0xff] }
 0x4da   :  { %2292 = vmatpush.bf16.msra.mxu1 %v2719_v18 }
 0x4db   :  { %v2592_v0 = vmul.f32 -1.442695, %v1903_v5  ;;  %v1882_v5 = vunpack.c.l.bf16 %v1838_v29 }
 0x4dc   :  { %v2879_v3 = vpop.eup %2878 }
 0x4dd   :  { %v2881_v8 = vpop.eup %2880  ;;  %v1786_v39 = vmul.f32 %v2879_v3, %v1784_v21  ;;  %2882 = vpow2.f32 %v2592_v0  ;;  %vm1791_vm6 = vweird.f32 %v2879_v3 }
 0x4de   :  { %v1806_v20 = vmul.f32 %v2881_v8, %v1804_v28  ;;  %v1850_v1 = vpop.f32.mrf.mxu3  ;;  %vm1792_vm8 = vmor %vm1790_vm7, %vm1791_vm6  ;;  %vm1811_vm11 = vweird.f32 %v2881_v8 }
 0x4df   :  { %v1787_v52 = vsub.f32 1.0, %v1786_v39  ;;  %v1883_v42 = vadd.f32 %v1880_v31, %v1850_v1  ;;  %vm1812_vm13 = vmor %vm1810_vm12, %vm1811_vm11 }
 0x4e0   :  { %v1807_v14 = vsub.f32 1.0, %v1806_v20  ;;  %v1865_v22 = vpop.f32.mrf.mxu0 }
 0x4e1   :  { %v1788_v37 = vmul.f32 %v2879_v3, %v1787_v52  ;;  %v2591_v23 = vmul.f32 -1.442695, %v1883_v42  ;;  %v1878_v41 = vpop.f32.mrf.mxu1  ;;  %v1936_v22 = vpop.permute.xlu1 %1935 }
 0x4e2   :  { %v1808_v62 = vmul.f32 %v2881_v8, %v1807_v14  ;;  %vm1937_vm7 = vcmp.eq.s32.totalorder %v1936_v22, 1 }
 0x4e3   :  { %v2883_v53 = vpop.eup %2882  ;;  %v1789_v34 = vadd.f32 %v2879_v3, %v1788_v37  ;;  %2884 = vpow2.f32 %v2591_v23 }
 0x4e4   :  { %v4062_v11 = vadd.f32 1.0, %v2883_v53  ;;  %v1809_v61 = vadd.f32 %v2881_v8, %v1808_v62  ;;  %v2343_v53 = vld [vmem:[%s4183_s0 + $0xb0] sm:$0xf] }
 0x4e5   :  { %v1793_v48 = vsel %vm1792_vm8, %v2879_v3, %v1789_v34  ;;  %72 = vst [vmem:[#allocation4 + $0x5c] sm:$0xf] %v2343_v53  ;;  %v2727_v34 = vld [vmem:[%s4191_s8 + $0x38] sm:$0xff] }
 0x4e6   :  { %v1798_v49 = vsel %vm1795_vm10, %v1797_v45, %v1793_v48  ;;  %v1852_v19 = vpop.f32.mrf.mxu3  ;;  %2886 = vrcp.f32 %v4062_v11  ;;  %v1813_v17 = vsel %vm1812_vm13, %v2881_v8, %v1809_v61  ;;  %v1919_v8 = vand.u32 2147483648, %v4062_v11  ;;  %2231 = vmatpush.bf16.msra.mxu0 %v2727_v34  ;;  %v2726_v45 = vld [vmem:[%s4191_s8 + $0x30] sm:$0xff]  ;;  %v2724_v61 = vld [vmem:[%s4191_s8 + $0x20] sm:$0xff] }
 0x4e7   :  { %v1821_v57 = vmul.f32 %v1820_v55, %v1798_v49  ;;  %v1818_v16 = vsel %vm1815_vm14, %v1817_v7, %v1813_v17  ;;  %vm1913_vm4 = vweird.f32 %v4062_v11  ;;  %v1917_v20 = vand.u32 2147483647, %v4062_v11  ;;  %v2718_v7 = vld [vmem:[%s4190_s7 + $0x30] sm:$0xff] }
 0x4e8   :  { %v1824_v25 = vsub.f32 1.0, %v1818_v16  ;;  %v1826_v10 = vmul.f32 %v1818_v16, %v4007_v26  ;;  %v1920_v42 = vor.u32 1.1754944e-38, %v1919_v8  ;;  %v1983_v48 = vunpack.c.l.bf16 %v45_v44  ;;  %2293 = vmatpush.bf16.msra.mxu1 %v2718_v7  ;;  %v2722_v16 = vld [vmem:[%s4191_s8 + $0x10] sm:$0xff] }
 0x4e9   :  { %v2885_v12 = vpop.eup %2884  ;;  %v1822_v24 = vadd.f32 %v1821_v57, %v1779_v4  ;;  %vm1918_vm6 = vcmp.eq.f32.partialorder %v1917_v20, 8.507059e+37  ;;  %v2725_v4 = vld [vmem:[%s4191_s8 + $0x28] sm:$0xff]  ;;  %v1984_v55 = vunpack.c.h.bf16 %v45_v44  ;;  %v2712_v44 = vld [vmem:[%s4190_s7] sm:$0xff] }
 0x4ea   :  { %v1887_v43 = vadd.f32 1.0, %v2885_v12  ;;  %2232 = vmatpush.bf16.msra.mxu0 %v2726_v45 }
 0x4eb   :  { %2888 = vtanh.f32 %v1822_v24 }
 0x4ec   :  { %2890 = vrcp.f32 %v1887_v43  ;;  %v2887_v36 = vpop.eup %2886  ;;  %v1899_v56 = vand.u32 2147483648, %v1887_v43  ;;  %v1897_v9 = vand.u32 2147483647, %v1887_v43  ;;  %vm1893_vm0 = vweird.f32 %v1887_v43 }
 0x4ed   :  { %v1909_v38 = vmul.f32 %v2887_v36, %v4062_v11  ;;  %vm1914_vm3 = vweird.f32 %v2887_v36 }
 0x4ee   :  { %v1900_v50 = vor.u32 1.1754944e-38, %v1899_v56  ;;  %vm1898_vm2 = vcmp.eq.f32.partialorder %v1897_v9, 8.507059e+37  ;;  %vm1915_vm5 = vmor %vm1913_vm4, %vm1914_vm3  ;;  %2233 = vmatpush.bf16.msra.mxu0 %v2725_v4  ;;  %v2715_v9 = vld [vmem:[%s4190_s7 + $0x18] sm:$0xff] }
 0x4ef   :  { %v1910_v46 = vsub.f32 1.0, %v1909_v38 }
 0x4f1   :  { %v2889_v51 = vpop.eup %2888  ;;  %v1911_v28 = vmul.f32 %v2887_v36, %v1910_v46  ;;  %v2716_v46 = vld [vmem:[%s4190_s7 + $0x20] sm:$0xff] }
 0x4f2   :  { %v2891_v59 = vpop.eup %2890  ;;  %v1825_v63 = vmul.f32 %v2889_v51, %v1824_v25  ;;  %2234 = vmatpush.bf16.msra.mxu0 %v2724_v61  ;;  %v2717_v51 = vld [vmem:[%s4190_s7 + $0x28] sm:$0xff] }
 0x4f3   :  { %v1889_v15 = vmul.f32 %v2891_v59, %v1887_v43  ;;  %vm1894_vm15 = vweird.f32 %v2891_v59  ;;  %v1912_v31 = vadd.f32 %v2887_v36, %v1911_v28  ;;  %v2723_v43 = vld [vmem:[%s4191_s8 + $0x18] sm:$0xff]  ;;  %2294 = vmatpush.bf16.msra.mxu1 %v2717_v51 }
 0x4f4   :  { %v1827_v35 = vadd.f32 %v1826_v10, %v1825_v63  ;;  %vm1895_vm1 = vmor %vm1893_vm0, %vm1894_vm15  ;;  %v2721_v63 = vld [vmem:[%s4191_s8 + $0x8] sm:$0xff] }
 0x4f5   :  { %v1890_v54 = vsub.f32 1.0, %v1889_v15  ;;  %v1916_v52 = vsel %vm1915_vm5, %v2887_v36, %v1912_v31  ;;  %v2352_v36 = vld [vmem:[%s4184_s1 + $0x14] sm:$0xf] }
 0x4f6   :  { %v4074_v2 = vsel %vm1834_vm9, %v1827_v35, %v4007_v26  ;;  %v4081_v26 = vld [vmem:[%s4188_s5] ss:$0 sm:$0xff]  ;;  %2235 = vmatpush.bf16.msra.mxu0 %v2723_v43  ;;  %123 = vst [vmem:[#allocation5 + $0x8] sm:$0xf] %v2352_v36 }
 0x4f7   :  { %v1891_v6 = vmul.f32 %v2891_v59, %v1890_v54  ;;  %v1943_v21 = vpack.c.bf16 %v4074_v2, %v4074_v2  ;;  %v1923_v58 = vadd.f32 %v4081_v26, %v4060_v27  ;;  %v1921_v27 = vsel %vm1918_vm6, %v1920_v42, %v1916_v52  ;;  %2295 = vmatpush.bf16.msra.mxu1 %v2716_v46  ;;  %v2720_v54 = vld [vmem:[%s4191_s8] sm:$0xff] }
 0x4f8   :  { %v1927_v14 = vsub.f32 1.0, %v1921_v27  ;;  %v1929_v32 = vmul.f32 %v1921_v27, %v4022_v47 }
 0x4f9   :  { %v1892_v40 = vadd.f32 %v2891_v59, %v1891_v6  ;;  %1952 = vmatmul.bf16.vlgmr.msra.gmra.mxu2 %v1943_v21  ;;  %1965 = vmatmul.bf16.vlgmr.msra.gmra.mxu3 %v1943_v21 }
 0x4fa   :  { %1978 = vmatmul.bf16.vlgmr.msrb.gmra.mxu0 %v1943_v21 }
 0x4fb   :  { %v1896_v0 = vsel %vm1895_vm1, %v2891_v59, %v1892_v40  ;;  %2236 = vmatpush.bf16.msra.mxu0 %v2722_v16  ;;  %2296 = vmatpush.bf16.msra.mxu1 %v2715_v9 }
 0x4fc   :  { %v1901_v3 = vsel %vm1898_vm2, %v1900_v50, %v1896_v0 }
 0x4fd   :  { %v1924_v39 = vmul.f32 %v1923_v58, %v1901_v3  ;;  %v2714_v58 = vld [vmem:[%s4190_s7 + $0x10] sm:$0xff] }
 0x4ff   :  { %v1925_v1 = vadd.f32 %v1924_v39, %v1882_v5  ;;  %2237 = vmatpush.bf16.msra.mxu0 %v2721_v63  ;;  %2297 = vmatpush.bf16.msra.mxu1 %v2714_v58 }
 0x501   :  { %2892 = vtanh.f32 %v1925_v1 }
 0x503   :  { %2238 = vmatpush.bf16.msra.mxu0 %v2720_v54 }
 0x507   :  { %v2893_v33 = vpop.eup %2892 }
 0x508   :  { %v1928_v37 = vmul.f32 %v2893_v33, %v1927_v14  ;;  %v2713_v14 = vld [vmem:[%s4190_s7 + $0x8] sm:$0xff]  ;;  %v1941_v33 = vld [vmem:[#allocation4 + $0x5c] sm:$0xf] }
 0x509   :  { %2298 = vmatpush.bf16.msra.mxu1 %v2713_v14 }
 0x50a   :  { %v1930_v23 = vadd.f32 %v1929_v32, %v1928_v37 }
 0x50c   :  { %v4090_v41 = vsel %vm1937_vm7, %v1930_v23, %v4022_v47  ;;  %v4103_v47 = vld [vmem:[%s4184_s1 + $0xc] sm:$0xff] }
 0x50d   :  { %v2045_v62 = vpack.c.bf16 %v4090_v41, %v4090_v41  ;;  %v2085_v35 = vunpack.c.l.bf16 %v4103_v47  ;;  %v2086_v28 = vunpack.c.h.bf16 %v4103_v47  ;;  %v1985_v47 = vunpack.c.l.bf16 %v1941_v33  ;;  %2299 = vmatpush.bf16.msra.mxu1 %v2712_v44 }
 0x50f   :  { %2054 = vmatmul.bf16.vlgmr.msrb.gmra.mxu1 %v2045_v62  ;;  %2067 = vmatmul.bf16.vlgmr.msrb.gmra.mxu2 %v2045_v62 }
 0x510   :  { %2080 = vmatmul.bf16.vlgmr.msrb.gmra.mxu3 %v2045_v62 }
 0x577   :  { %v4111_v11 = vpop.f32.mrf.mxu0 }
 0x578   :  { %v2026_v53 = vadd.f32 %v4067_v60, %v4111_v11 }
 0x57c   :  { %v1953_v49 = vpop.f32.mrf.mxu2  ;;  %v1966_v19 = vpop.f32.mrf.mxu3 }
 0x57d   :  { %v1986_v13 = vadd.f32 %v1983_v48, %v1953_v49  ;;  %v2006_v57 = vadd.f32 %v1984_v55, %v1966_v19 }
 0x57f   :  { %v2594_v12 = vmul.f32 -1.442695, %v1986_v13  ;;  %v2595_v24 = vmul.f32 -1.442695, %v2006_v57  ;;  %v1981_v17 = vpop.f32.mrf.mxu0 }
 0x581   :  { %2894 = vpow2.f32 %v2594_v12 }
 0x582   :  { %2896 = vpow2.f32 %v2595_v24 }
 0x584   :  { %v1955_v25 = vpop.f32.mrf.mxu2  ;;  %v1968_v38 = vpop.f32.mrf.mxu3 }
 0x585   :  { %v2039_v25 = vpop.permute.xlu2 %2038  ;;  %v2043_v38 = vld [vmem:[#allocation5 + $0x8] sm:$0xf] }
 0x586   :  { %vm2040_vm2 = vcmp.eq.s32.totalorder %v2039_v25, 1  ;;  %v2087_v46 = vunpack.c.l.bf16 %v2043_v38 }
 0x587   :  { %v2895_v59 = vpop.eup %2894 }
 0x588   :  { %v2897_v10 = vpop.eup %2896  ;;  %v1990_v15 = vadd.f32 1.0, %v2895_v59 }
 0x589   :  { %v4140_v30 = vadd.f32 1.0, %v2897_v10 }
 0x58a   :  { %2898 = vrcp.f32 %v1990_v15  ;;  %v2002_v39 = vand.u32 2147483648, %v1990_v15  ;;  %v2000_v42 = vand.u32 2147483647, %v1990_v15  ;;  %vm1996_vm10 = vweird.f32 %v1990_v15 }
 0x58b   :  { %2900 = vrcp.f32 %v4140_v30  ;;  %v2022_v61 = vand.u32 2147483648, %v4140_v30  ;;  %vm2016_vm14 = vweird.f32 %v4140_v30  ;;  %v2020_v19 = vand.u32 2147483647, %v4140_v30 }
 0x58c   :  { %v2055_v56 = vpop.f32.mrf.mxu1  ;;  %v2003_v23 = vor.u32 1.1754944e-38, %v2002_v39  ;;  %vm2001_vm12 = vcmp.eq.f32.partialorder %v2000_v42, 8.507059e+37 }
 0x58d   :  { %v2088_v6 = vadd.f32 %v2085_v35, %v2055_v56  ;;  %v2023_v18 = vor.u32 1.1754944e-38, %v2022_v61  ;;  %vm2021_vm15 = vcmp.eq.f32.partialorder %v2020_v19, 8.507059e+37 }
 0x58f   :  { %v2597_v21 = vmul.f32 -1.442695, %v2088_v6 }
 0x590   :  { %v2899_v29 = vpop.eup %2898 }
 0x591   :  { %v2901_v40 = vpop.eup %2900  ;;  %v1992_v50 = vmul.f32 %v2899_v29, %v1990_v15  ;;  %2902 = vpow2.f32 %v2597_v21  ;;  %vm1997_vm8 = vweird.f32 %v2899_v29 }
 0x592   :  { %v2012_v5 = vmul.f32 %v2901_v40, %v4140_v30  ;;  %v2068_v0 = vpop.f32.mrf.mxu2  ;;  %vm1998_vm11 = vmor %vm1996_vm10, %vm1997_vm8  ;;  %vm2017_vm13 = vweird.f32 %v2901_v40 }
 0x593   :  { %v1993_v31 = vsub.f32 1.0, %v1992_v50  ;;  %v2108_v3 = vadd.f32 %v2086_v28, %v2068_v0  ;;  %v4158_v8 = vpop.f32.mrf.mxu3  ;;  %vm2018_vm9 = vmor %vm2016_vm14, %vm2017_vm13 }
 0x594   :  { %v2013_v20 = vsub.f32 1.0, %v2012_v5  ;;  %v2057_v1 = vpop.f32.mrf.mxu1  ;;  %v2128_v21 = vadd.f32 %v4081_v26, %v4158_v8 }
 0x595   :  { %v1994_v52 = vmul.f32 %v2899_v29, %v1993_v31  ;;  %v2598_v27 = vmul.f32 -1.442695, %v2108_v3 }
 0x596   :  { %v2014_v22 = vmul.f32 %v2901_v40, %v2013_v20 }
 0x597   :  { %v2903_v37 = vpop.eup %2902  ;;  %v1995_v32 = vadd.f32 %v2899_v29, %v1994_v52  ;;  %2904 = vpow2.f32 %v2598_v27  ;;  %v2141_v52 = vpop.permute.xlu0 %2140 }
 0x598   :  { %v2092_v62 = vadd.f32 1.0, %v2903_v37  ;;  %v2015_v4 = vadd.f32 %v2901_v40, %v2014_v22  ;;  %vm2142_vm10 = vcmp.eq.s32.totalorder %v2141_v52, 1 }
 0x599   :  { %v1999_v34 = vsel %vm1998_vm11, %v2899_v29, %v1995_v32  ;;  %v2753_v32 = vld [vmem:[%s4192_s9] ss:$0 sm:$0xff] }
 0x59a   :  { %v2004_v45 = vsel %vm2001_vm12, %v2003_v23, %v1999_v34  ;;  %2906 = vrcp.f32 %v2092_v62  ;;  %v2070_v48 = vpop.f32.mrf.mxu2  ;;  %v2019_v60 = vsel %vm2018_vm9, %v2901_v40, %v2015_v4  ;;  %v2104_v36 = vand.u32 2147483648, %v2092_v62 }
 0x59b   :  { %v2027_v55 = vmul.f32 %v2026_v53, %v2004_v45  ;;  %v2083_v49 = vpop.f32.mrf.mxu3  ;;  %v2024_v24 = vsel %vm2021_vm15, %v2023_v18, %v2019_v60  ;;  %v2102_v59 = vand.u32 2147483647, %v2092_v62  ;;  %vm2098_vm1 = vweird.f32 %v2092_v62 }
 0x59c   :  { %v2030_v7 = vsub.f32 1.0, %v2024_v24  ;;  %v2032_v15 = vmul.f32 %v2024_v24, %v4074_v2  ;;  %v2105_v54 = vor.u32 1.1754944e-38, %v2104_v36 }
 0x59d   :  { %v2905_v13 = vpop.eup %2904  ;;  %v2028_v57 = vadd.f32 %v2027_v55, %v1985_v47  ;;  %vm2103_vm4 = vcmp.eq.f32.partialorder %v2102_v59, 8.507059e+37 }
 0x59e   :  { %v2112_v11 = vadd.f32 1.0, %v2905_v13 }
 0x59f   :  { %2908 = vtanh.f32 %v2028_v57 }
 0x5a0   :  { %v2907_v12 = vpop.eup %2906  ;;  %2910 = vrcp.f32 %v2112_v11  ;;  %v2124_v28 = vand.u32 2147483648, %v2112_v11  ;;  %v2122_v0 = vand.u32 2147483647, %v2112_v11  ;;  %vm2118_vm6 = vweird.f32 %v2112_v11 }
 0x5a1   :  { %v2094_v17 = vmul.f32 %v2907_v12, %v2092_v62  ;;  %vm2099_vm0 = vweird.f32 %v2907_v12 }
 0x5a2   :  { %vm2100_vm3 = vmor %vm2098_vm1, %vm2099_vm0  ;;  %v2125_v39 = vor.u32 1.1754944e-38, %v2124_v28  ;;  %vm2123_vm8 = vcmp.eq.f32.partialorder %v2122_v0, 8.507059e+37 }
 0x5a3   :  { %v2095_v43 = vsub.f32 1.0, %v2094_v17 }
 0x5a5   :  { %v2909_v16 = vpop.eup %2908  ;;  %v2096_v51 = vmul.f32 %v2907_v12, %v2095_v43 }
 0x5a6   :  { %v2911_v63 = vpop.eup %2910  ;;  %v2031_v10 = vmul.f32 %v2909_v16, %v2030_v7 }
 0x5a7   :  { %v2114_v30 = vmul.f32 %v2911_v63, %v2112_v11  ;;  %v2097_v35 = vadd.f32 %v2907_v12, %v2096_v51  ;;  %vm2119_vm5 = vweird.f32 %v2911_v63 }
 0x5a8   :  { %v2033_v56 = vadd.f32 %v2032_v15, %v2031_v10  ;;  %vm2120_vm7 = vmor %vm2118_vm6, %vm2119_vm5 }
 0x5a9   :  { %v2115_v6 = vsub.f32 1.0, %v2114_v30  ;;  %v2101_v9 = vsel %vm2100_vm3, %v2907_v12, %v2097_v35 }
 0x5aa   :  { %v2106_v29 = vsel %vm2103_vm4, %v2105_v54, %v2101_v9  ;;  %v2041_v40 = vsel %vm2040_vm2, %v2033_v56, %v4074_v2 }
 0x5ab   :  { %v2116_v50 = vmul.f32 %v2911_v63, %v2115_v6  ;;  %v2129_v58 = vmul.f32 %v2128_v21, %v2106_v29  ;;  %v2150_v5 = vpack.c.bf16 %v2041_v40, %v2041_v40 }
 0x5ad   :  { %v2117_v31 = vadd.f32 %v2911_v63, %v2116_v50  ;;  %v2130_v3 = vadd.f32 %v2129_v58, %v2087_v46  ;;  %2239 = vmatmul.bf16.vlgmr.msra.gmra.mxu0 %v2150_v5 }
 0x5af   :  { %v2121_v20 = vsel %vm2120_vm7, %v2911_v63, %v2117_v31  ;;  %2912 = vtanh.f32 %v2130_v3 }
 0x5b0   :  { %v2126_v1 = vsel %vm2123_vm8, %v2125_v39, %v2121_v20 }
 0x5b1   :  { %v2132_v26 = vsub.f32 1.0, %v2126_v1  ;;  %v2134_v2 = vmul.f32 %v2126_v1, %v4090_v41 }
 0x5b5   :  { %v2913_v8 = vpop.eup %2912 }
 0x5b6   :  { %v2133_v42 = vmul.f32 %v2913_v8, %v2132_v26 }
 0x5b8   :  { %v2135_v27 = vadd.f32 %v2134_v2, %v2133_v42 }
 0x5ba   :  { %v2143_v14 = vsel %vm2142_vm10, %v2135_v27, %v4090_v41 }
 0x5bb   :  { %v2149_v33 = vpack.c.bf16 %v2143_v14, %v2143_v14 }
 0x5bd   :  { %2300 = vmatmul.bf16.vlgmr.msra.gmra.mxu1 %v2149_v33 }
 0x62a   :  { %v2240_v22 = vpop.f32.mrf.mxu0 }
 0x632   :  { %v2242_v37 = vpop.f32.mrf.mxu0 }
 0x63a   :  { %v2301_v23 = vpop.f32.mrf.mxu1 }
 0x63b   :  { %v2302_v62 = vadd.f32 %v2301_v23, %v2240_v22 }
 0x63d   :  { %v2309_v44 = vadd.f32 %v2753_v32, %v2302_v62 }
 0x63f   :  { %2310 = vst [vmem:[%s4193_s10] sm:$0xff] %v2309_v44 }
 0x642   :  { %v2303_v53 = vpop.f32.mrf.mxu1 }

</bundles_post_ra>
